<compile_context>
chip_gen: v7x
topology: tpu7x:2x2x1
jax: 0.10.0
libtpu: 0.0.40
codegen_flags: <defaults>
</compile_context>

<pallas_src>
import functools

import jax
import jax.numpy as jnp
from jax.experimental import pallas as pl
from jax.experimental.pallas import tpu as pltpu

LANES = 128


def _round_up(x, m):
    return (x + m - 1) // m * m


def _pick_tile_h(H, W, cmax, max_th=8, acc_budget_bytes=1 << 20):
    """Largest divisor of H that is <= max_th and keeps the f32 accumulator bounded."""
    # TODO(synk): prime / awkward H degrades to small tiles; padding H with masked
    #             rows would keep full-size tiles.
    best = 1
    for th in range(1, min(H, max_th) + 1):
        if H % th != 0:
            continue
        if (th + 2) * W * cmax * 4 <= acc_budget_bytes:
            best = th
    return best


def _vmem_limit_bytes(H, W, c1p, c_p, c2p, TH):
    xp = (H + 4) * (W + 2) * c1p * 2
    w1 = 3 * 3 * c1p * c_p * 2
    w2 = 3 * 3 * c_p * c2p * 2
    vecs = 2 * (c_p + c2p) * 4
    outb = TH * W * c2p * 4
    pm = (TH + 2) * (W + 2) * c_p * 2
    live = (TH + 2) * W * (3 * max(c1p, c_p) * 2 + max(c_p, c2p) * 4)
    total = 2 * (xp + w1 + w2 + vecs + outb) + pm + 2 * live + (4 << 20)
    # never below the 32 MiB default (avoids over-tight limits), never above v7x physical
    return int(min(max(total, 32 << 20), 64 << 20))


# ---------------------------------------------------------------------------
# Fused RepBottleneck kernel:
#   cv1 (reparameterized RepConv 3x3) -> bf16 mid halo window in VMEM scratch ->
#   cv2 (Conv 3x3 + BN + SiLU) -> optional residual add from resident input.
# ---------------------------------------------------------------------------
def _rep_bottleneck_kernel(xp_ref, w1_ref, s1_ref, b1_ref, w2_ref, s2_ref, b2_ref,
                           o_ref, pm_ref, *, add_residual: bool):
    TH, W, Cout = o_ref.shape[1], o_ref.shape[2], o_ref.shape[3]
    Cin = xp_ref.shape[3]
    Cmid = pm_ref.shape[2]

    r = pl.program_id(1)
    row0 = pl.multiple_of(r * TH, TH)

    # ---- cv1: TH+2 halo rows of `mid` (rows row0-1 .. row0+TH) --------------
    # Input xp is padded by 2 rows / 1 col, so the full halo batch is one slab.
    M1 = (TH + 2) * W
    acc1 = jnp.zeros((M1, Cmid), jnp.float32)
    for dx in range(3):
        xdx = xp_ref[0, pl.ds(row0, TH + 4), pl.ds(dx, W), :]        # (TH+4, W, Cin) bf16
        slab = jnp.concatenate(
            [xdx[dy:dy + TH + 2].reshape(M1, Cin) for dy in range(3)], axis=1)
        acc1 = acc1 + jnp.dot(slab, w1_ref[dx],
                              preferred_element_type=jnp.float32)
    y1 = acc1 * s1_ref[...] + b1_ref[...]                            # folded BN affine
    mid = (y1 * jax.nn.sigmoid(y1)).astype(jnp.bfloat16)             # SiLU in f32 -> bf16

    # Stash mid in the VMEM scratch with a 1-col zero border; zero the top/bottom
    # halo rows when they fall outside the image (they are cv2's zero padding).
    pm_ref[:, pl.ds(1, W), :] = mid.reshape(TH + 2, W, Cmid)
    zcol = jnp.zeros((TH + 2, Cmid), jnp.bfloat16)
    pm_ref[:, 0, :] = zcol
    pm_ref[:, W + 1, :] = zcol
    zrow = jnp.zeros((W + 2, Cmid), jnp.bfloat16)

    @pl.when(r == 0)
    def _():
        pm_ref[0, :, :] = zrow

    @pl.when(r == pl.num_programs(1) - 1)
    def _():
        pm_ref[TH + 1, :, :] = zrow

    # ---- cv2: 3x3 conv + folded BN affine + SiLU (+ fused residual) ---------
    M2 = TH * W
    acc2 = jnp.zeros((M2, Cout), jnp.float32)
    for dx in range(3):
        mdx = pm_ref[:, pl.ds(dx, W), :]                             # (TH+2, W, Cmid) bf16
        slab = jnp.concatenate(
            [mdx[dy:dy + TH].reshape(M2, Cmid) for dy in range(3)], axis=1)
        acc2 = acc2 + jnp.dot(slab, w2_ref[dx],
                              preferred_element_type=jnp.float32)
    y2 = acc2 * s2_ref[...] + b2_ref[...]
    out = (y2 * jax.nn.sigmoid(y2)).reshape(TH, W, Cout)
    if add_residual:
        # Residual read straight from the resident bf16 padded input window.
        res = xp_ref[0, pl.ds(row0 + 2, TH), pl.ds(1, W), :]
        out = out + res.astype(jnp.float32)
    o_ref[0] = out.astype(o_ref.dtype)


def rep_bottleneck_pallas(xp, kp, *, add_residual, max_tile_h=8):
    """xp: (N, H+4, W+2, c1p) bf16 padded input. Returns (N, H, W, c2p) f32."""
    N = xp.shape[0]
    H, W = xp.shape[1] - 4, xp.shape[2] - 2
    c1p, c_p, c2p = kp["c1p"], kp["c_p"], kp["c2p"]
    TH = _pick_tile_h(H, W, max(c_p, c2p), max_th=max_tile_h)

    in_specs = [
        pl.BlockSpec((1, H + 4, W + 2, c1p), lambda n, r: (n, 0, 0, 0)),
        pl.BlockSpec((3, 3 * c1p, c_p), lambda n, r: (0, 0, 0)),
        pl.BlockSpec((1, c_p), lambda n, r: (0, 0)),
        pl.BlockSpec((1, c_p), lambda n, r: (0, 0)),
        pl.BlockSpec((3, 3 * c_p, c2p), lambda n, r: (0, 0, 0)),
        pl.BlockSpec((1, c2p), lambda n, r: (0, 0)),
        pl.BlockSpec((1, c2p), lambda n, r: (0, 0)),
    ]
    args = [xp, kp["w_cv1"], kp["scale_cv1"], kp["bias_cv1"],
            kp["w_cv2"], kp["scale_cv2"], kp["bias_cv2"]]

    kernel = functools.partial(_rep_bottleneck_kernel, add_residual=add_residual)
    return pl.pallas_call(
        kernel,
        out_shape=jax.ShapeDtypeStruct((N, H, W, c2p), jnp.float32),
        grid=(N, H // TH),
        in_specs=in_specs,
        out_specs=pl.BlockSpec((1, TH, W, c2p), lambda n, r: (n, r, 0, 0)),
        scratch_shapes=[pltpu.VMEM((TH + 2, W + 2, c_p), jnp.bfloat16)],
        compiler_params=pltpu.CompilerParams(
            dimension_semantics=("parallel", "parallel"),
            vmem_limit_bytes=_vmem_limit_bytes(H, W, c1p, c_p, c2p, TH)),
    )(*args)


# ---------------------------------------------------------------------------
# Parameter construction (deterministic, synthetic) + BN folding + RepConv
# reparameterization + lane padding.
# ---------------------------------------------------------------------------
def _fold_bn(key, cout, eps=1e-3):
    kg, kb, km, kv = jax.random.split(key, 4)
    gamma = 1.0 + 0.1 * jax.random.normal(kg, (cout,), jnp.float32)
    beta = 0.1 * jax.random.normal(kb, (cout,), jnp.float32)
    mean = 0.1 * jax.random.normal(km, (cout,), jnp.float32)
    var = jnp.abs(jax.random.normal(kv, (cout,), jnp.float32)) + 1.0
    scale = gamma / jnp.sqrt(var + eps)       # eval-mode BatchNorm folded
    bias = beta - mean * scale
    return scale, bias


def init_rep_bottleneck_params(key, c1, c2, e=0.5):
    c_ = int(c2 * e)
    k = jax.random.split(key, 6)
    raw = {
        "c1": c1, "c2": c2, "c_": c_,
        # RepConv branch 1: 3x3 conv (HWIO) + BN
        "w3_1": jax.random.normal(k[0], (3, 3, c1, c_), jnp.float32) * 0.1,
        # RepConv branch 2: 1x1 conv + BN
        "w1_1": jax.random.normal(k[1], (c1, c_), jnp.float32) * 0.1,
        # cv2: 3x3 conv (HWIO) + BN
        "w_2": jax.random.normal(k[2], (3, 3, c_, c2), jnp.float32) * 0.1,
    }
    raw["s3_1"], raw["b3_1"] = _fold_bn(k[3], c_)
    raw["s1_1"], raw["b1_1"] = _fold_bn(k[4], c_)
    raw["s_2"], raw["b_2"] = _fold_bn(k[5], c2)
    return raw


def prepare_kernel_params(raw, lanes=LANES):
    """Reparameterize RepConv, lane-pad channels, build per-dx (3*Cin, Cout) bf16 slabs."""
    c1, c_, c2 = raw["c1"], raw["c_"], raw["c2"]
    c1p, c_p, c2p = (_round_up(c, lanes) for c in (c1, c_, c2))

    # RepConv reparameterization: mid = s3*(conv3x3(x) + (s1/s3)*conv1x1(x)) + (b3+b1)
    # -> fold w1*(s1/s3) into the 3x3 center tap, keep a single f32 post-scale s3.
    ratio = raw["s1_1"] / raw["s3_1"]                              # (c_,)
    w3 = raw["w3_1"].at[1, 1].add(raw["w1_1"] * ratio[None, :])
    bias1 = raw["b3_1"] + raw["b1_1"]

    def dx_slab(w, cip, cop):      # (3,3,ci,co) HWIO -> (dx, 3*cip, cop) bf16
        w = jnp.pad(w, ((0, 0), (0, 0), (0, cip - w.shape[2]), (0, cop - w.shape[3])))
        w = jnp.transpose(w, (1, 0, 2, 3))                         # (dx, dy, ci, co)
        return w.reshape(3, 3 * cip, cop).astype(jnp.bfloat16)

    def vec(v, cop):
        return jnp.pad(v, (0, cop - v.shape[0])).reshape(1, cop).astype(jnp.float32)

    return {
        "c1": c1, "c2": c2, "c1p": c1p, "c_p": c_p, "c2p": c2p,
        "w_cv1": dx_slab(w3, c1p, c_p),
        "scale_cv1": vec(raw["s3_1"], c_p),
        "bias_cv1": vec(bias1, c_p),
        "w_cv2": dx_slab(raw["w_2"], c_p, c2p),
        "scale_cv2": vec(raw["s_2"], c2p),
        "bias_cv2": vec(raw["b_2"], c2p),
    }


# ---------------------------------------------------------------------------
# RepBottleneck forward (NCHW in / NCHW out, matching PyTorch)
# ---------------------------------------------------------------------------
def rep_bottleneck_forward(kp, x_nchw, shortcut=True):
    N, c1, H, W = x_nchw.shape
    # NCHW f32 -> NHWC bf16; one combined pad supplies the conv halo (2 rows / 1 col,
    # two rows so the cv1 halo-row batch is a single slab) and the channel lane pad.
    x = jnp.transpose(x_nchw, (0, 2, 3, 1)).astype(jnp.bfloat16)
    xp = jnp.pad(x, ((0, 0), (2, 2), (1, 1), (0, kp["c1p"] - c1)))

    add = bool(shortcut) and (c1 == kp["c2"])
    out = rep_bottleneck_pallas(xp, kp, add_residual=add)
    out = out[..., :kp["c2"]]
    return jnp.transpose(out, (0, 3, 1, 2))                         # -> NCHW


# ---------------------------------------------------------------------------
# Pure-JAX reference (two-branch RepConv, lax conv, bf16-in / f32-accumulate)
# ---------------------------------------------------------------------------
def rep_bottleneck_reference(raw, x_nchw, shortcut=True):
    c1, c2, c_ = raw["c1"], raw["c2"], raw["c_"]

    def conv(a, w):
        return jax.lax.conv_general_dilated(
            a, w, (1, 1), "SAME",
            dimension_numbers=("NHWC", "HWIO", "NHWC"),
            preferred_element_type=jnp.float32,
            precision=jax.lax.Precision.HIGHEST)

    x = jnp.transpose(x_nchw, (0, 2, 3, 1)).astype(jnp.float32)
    xb = x.astype(jnp.bfloat16)

    w3 = raw["w3_1"].astype(jnp.bfloat16)
    w1 = raw["w1_1"].reshape(1, 1, c1, c_).astype(jnp.bfloat16)
    y = (conv(xb, w3) * raw["s3_1"] + raw["b3_1"]
         + conv(xb, w1) * raw["s1_1"] + raw["b1_1"])
    mid = y * jax.nn.sigmoid(y)

    midb = mid.astype(jnp.bfloat16)
    y2 = conv(midb, raw["w_2"].astype(jnp.bfloat16)) * raw["s_2"] + raw["b_2"]
    y2 = y2 * jax.nn.sigmoid(y2)

    out = x + y2 if (shortcut and c1 == c2) else y2
    return jnp.transpose(out, (0, 3, 1, 2))


if __name__ == "__main__":
    key = jax.random.PRNGKey(0)
    k_x, k_p = jax.random.split(key)

    # Small shapes consistent with the module: NCHW input, c1 == c2 so shortcut adds.
    N, C1, H, W = 2, 4, 16, 16
    C2 = 4
    x = jax.random.normal(k_x, (N, C1, H, W), jnp.float32)

    raw = init_rep_bottleneck_params(k_p, C1, C2, e=0.5)
    kparams = prepare_kernel_params(raw)

    # shortcut=True (residual fused in-kernel)
    out = jax.block_until_ready(rep_bottleneck_forward(kparams, x, shortcut=True))
    ref = jax.block_until_ready(rep_bottleneck_reference(raw, x, shortcut=True))
    assert out.shape == (N, C2, H, W), out.shape
    err = float(jnp.max(jnp.abs(out - ref)))
    # RepConv branch folding changes bf16 weight rounding slightly vs. the two-branch
    # reference; tolerance covers that (real indexing/halo bugs give O(0.1+) errors).
    assert err < 1e-2, err

    # shortcut=False path (no residual input / add)
    out2 = jax.block_until_ready(rep_bottleneck_forward(kparams, x, shortcut=False))
    ref2 = jax.block_until_ready(rep_bottleneck_reference(raw, x, shortcut=False))
    err2 = float(jnp.max(jnp.abs(out2 - ref2)))
    assert err2 < 1e-2, err2

    print("KERNEL_OK")
</pallas_src>

<mosaic_0001>
module attributes {stable_mosaic.version = 11 : i64} {
  func.func @_rep_bottleneck_kernel(%arg0: i32, %arg1: i32, %arg2: memref<1x20x18x128xbf16, #tpu.memory_space<vmem>>, %arg3: memref<3x384x128xbf16, #tpu.memory_space<vmem>>, %arg4: memref<1x128xf32, #tpu.memory_space<vmem>>, %arg5: memref<1x128xf32, #tpu.memory_space<vmem>>, %arg6: memref<3x384x128xbf16, #tpu.memory_space<vmem>>, %arg7: memref<1x128xf32, #tpu.memory_space<vmem>>, %arg8: memref<1x128xf32, #tpu.memory_space<vmem>>, %arg9: memref<1x8x16x128xf32, #tpu.memory_space<vmem>>, %arg10: memref<10x18x128xbf16, #tpu.memory_space<vmem>>) attributes {dimension_semantics = [#tpu.dimension_semantics<parallel>, #tpu.dimension_semantics<parallel>], iteration_bounds = array<i64: 2, 2>, scalar_prefetch = 0 : i64, scratch_operands = 1 : i64, tpu.core_type = #tpu.core_type<tc>, window_params = [{transform_indices = @transform_0, window_bounds = array<i64: 1, 20, 18, 128>}, {pipeline_mode = #tpu.pipeline_mode<synchronous>, transform_indices = @transform_1, window_bounds = array<i64: 3, 384, 128>}, {pipeline_mode = #tpu.pipeline_mode<synchronous>, transform_indices = @transform_2, window_bounds = array<i64: 1, 128>}, {pipeline_mode = #tpu.pipeline_mode<synchronous>, transform_indices = @transform_3, window_bounds = array<i64: 1, 128>}, {pipeline_mode = #tpu.pipeline_mode<synchronous>, transform_indices = @transform_4, window_bounds = array<i64: 3, 384, 128>}, {pipeline_mode = #tpu.pipeline_mode<synchronous>, transform_indices = @transform_5, window_bounds = array<i64: 1, 128>}, {pipeline_mode = #tpu.pipeline_mode<synchronous>, transform_indices = @transform_6, window_bounds = array<i64: 1, 128>}, {transform_indices = @transform_7, window_bounds = array<i64: 1, 8, 16, 128>}]} {
    %c8_i32 = arith.constant 8 : i32
    %0 = arith.muli %arg1, %c8_i32 : i32
    %1 = tpu.assume_multiple %0, 8 : i32
    %cst = arith.constant 0.000000e+00 : f32
    %2 = vector.broadcast %cst : f32 to vector<160x128xf32>
    %c0 = arith.constant 0 : index
    %3 = arith.index_cast %1 : i32 to index
    %c0_0 = arith.constant 0 : index
    %c0_1 = arith.constant 0 : index
    %4 = vector.load %arg2[%c0, %3, %c0_0, %c0_1] : memref<1x20x18x128xbf16, #tpu.memory_space<vmem>>, vector<1x12x16x128xbf16>
    %5 = vector.shape_cast %4 : vector<1x12x16x128xbf16> to vector<12x16x128xbf16>
    %6 = vector.extract_strided_slice %5 {offsets = [0, 0, 0], sizes = [10, 16, 128], strides = [1, 1, 1]} : vector<12x16x128xbf16> to vector<10x16x128xbf16>
    %7 = vector.shape_cast %6 : vector<10x16x128xbf16> to vector<160x128xbf16>
    %8 = vector.extract_strided_slice %5 {offsets = [1, 0, 0], sizes = [10, 16, 128], strides = [1, 1, 1]} : vector<12x16x128xbf16> to vector<10x16x128xbf16>
    %9 = vector.shape_cast %8 : vector<10x16x128xbf16> to vector<160x128xbf16>
    %10 = vector.extract_strided_slice %5 {offsets = [2, 0, 0], sizes = [10, 16, 128], strides = [1, 1, 1]} : vector<12x16x128xbf16> to vector<10x16x128xbf16>
    %11 = vector.shape_cast %10 : vector<10x16x128xbf16> to vector<160x128xbf16>
    %12 = tpu.concatenate %7, %9, %11 in 1 : vector<160x128xbf16>, vector<160x128xbf16>, vector<160x128xbf16> -> vector<160x384xbf16>
    %c0_2 = arith.constant 0 : index
    %c0_3 = arith.constant 0 : index
    %c0_4 = arith.constant 0 : index
    %13 = vector.load %arg3[%c0_2, %c0_3, %c0_4] : memref<3x384x128xbf16, #tpu.memory_space<vmem>>, vector<1x384x128xbf16>
    %14 = vector.shape_cast %13 : vector<1x384x128xbf16> to vector<384x128xbf16>
    %cst_5 = arith.constant dense<0.000000e+00> : vector<160x128xf32>
    %15 = tpu.matmul %12, %14, %cst_5 {dimension_numbers = #tpu.dot_dimension_numbers<[1], [0], [0], [1], [0, 0, 1, 1], [], []>} : vector<160x384xbf16>, vector<384x128xbf16>, vector<160x128xf32> -> vector<160x128xf32>
    %16 = arith.addf %2, %15 : vector<160x128xf32>
    %c0_6 = arith.constant 0 : index
    %17 = arith.index_cast %1 : i32 to index
    %c1 = arith.constant 1 : index
    %c0_7 = arith.constant 0 : index
    %18 = vector.load %arg2[%c0_6, %17, %c1, %c0_7] : memref<1x20x18x128xbf16, #tpu.memory_space<vmem>>, vector<1x12x16x128xbf16>
    %19 = vector.shape_cast %18 : vector<1x12x16x128xbf16> to vector<12x16x128xbf16>
    %20 = vector.extract_strided_slice %19 {offsets = [0, 0, 0], sizes = [10, 16, 128], strides = [1, 1, 1]} : vector<12x16x128xbf16> to vector<10x16x128xbf16>
    %21 = vector.shape_cast %20 : vector<10x16x128xbf16> to vector<160x128xbf16>
    %22 = vector.extract_strided_slice %19 {offsets = [1, 0, 0], sizes = [10, 16, 128], strides = [1, 1, 1]} : vector<12x16x128xbf16> to vector<10x16x128xbf16>
    %23 = vector.shape_cast %22 : vector<10x16x128xbf16> to vector<160x128xbf16>
    %24 = vector.extract_strided_slice %19 {offsets = [2, 0, 0], sizes = [10, 16, 128], strides = [1, 1, 1]} : vector<12x16x128xbf16> to vector<10x16x128xbf16>
    %25 = vector.shape_cast %24 : vector<10x16x128xbf16> to vector<160x128xbf16>
    %26 = tpu.concatenate %21, %23, %25 in 1 : vector<160x128xbf16>, vector<160x128xbf16>, vector<160x128xbf16> -> vector<160x384xbf16>
    %c1_8 = arith.constant 1 : index
    %c0_9 = arith.constant 0 : index
    %c0_10 = arith.constant 0 : index
    %27 = vector.load %arg3[%c1_8, %c0_9, %c0_10] : memref<3x384x128xbf16, #tpu.memory_space<vmem>>, vector<1x384x128xbf16>
    %28 = vector.shape_cast %27 : vector<1x384x128xbf16> to vector<384x128xbf16>
    %cst_11 = arith.constant dense<0.000000e+00> : vector<160x128xf32>
    %29 = tpu.matmul %26, %28, %cst_11 {dimension_numbers = #tpu.dot_dimension_numbers<[1], [0], [0], [1], [0, 0, 1, 1], [], []>} : vector<160x384xbf16>, vector<384x128xbf16>, vector<160x128xf32> -> vector<160x128xf32>
    %30 = arith.addf %16, %29 : vector<160x128xf32>
    %c0_12 = arith.constant 0 : index
    %31 = arith.index_cast %1 : i32 to index
    %c2 = arith.constant 2 : index
    %c0_13 = arith.constant 0 : index
    %32 = vector.load %arg2[%c0_12, %31, %c2, %c0_13] : memref<1x20x18x128xbf16, #tpu.memory_space<vmem>>, vector<1x12x16x128xbf16>
    %33 = vector.shape_cast %32 : vector<1x12x16x128xbf16> to vector<12x16x128xbf16>
    %34 = vector.extract_strided_slice %33 {offsets = [0, 0, 0], sizes = [10, 16, 128], strides = [1, 1, 1]} : vector<12x16x128xbf16> to vector<10x16x128xbf16>
    %35 = vector.shape_cast %34 : vector<10x16x128xbf16> to vector<160x128xbf16>
    %36 = vector.extract_strided_slice %33 {offsets = [1, 0, 0], sizes = [10, 16, 128], strides = [1, 1, 1]} : vector<12x16x128xbf16> to vector<10x16x128xbf16>
    %37 = vector.shape_cast %36 : vector<10x16x128xbf16> to vector<160x128xbf16>
    %38 = vector.extract_strided_slice %33 {offsets = [2, 0, 0], sizes = [10, 16, 128], strides = [1, 1, 1]} : vector<12x16x128xbf16> to vector<10x16x128xbf16>
    %39 = vector.shape_cast %38 : vector<10x16x128xbf16> to vector<160x128xbf16>
    %40 = tpu.concatenate %35, %37, %39 in 1 : vector<160x128xbf16>, vector<160x128xbf16>, vector<160x128xbf16> -> vector<160x384xbf16>
    %c2_14 = arith.constant 2 : index
    %c0_15 = arith.constant 0 : index
    %c0_16 = arith.constant 0 : index
    %41 = vector.load %arg3[%c2_14, %c0_15, %c0_16] : memref<3x384x128xbf16, #tpu.memory_space<vmem>>, vector<1x384x128xbf16>
    %42 = vector.shape_cast %41 : vector<1x384x128xbf16> to vector<384x128xbf16>
    %cst_17 = arith.constant dense<0.000000e+00> : vector<160x128xf32>
    %43 = tpu.matmul %40, %42, %cst_17 {dimension_numbers = #tpu.dot_dimension_numbers<[1], [0], [0], [1], [0, 0, 1, 1], [], []>} : vector<160x384xbf16>, vector<384x128xbf16>, vector<160x128xf32> -> vector<160x128xf32>
    %44 = arith.addf %30, %43 : vector<160x128xf32>
    %c0_18 = arith.constant 0 : index
    %c0_19 = arith.constant 0 : index
    %45 = vector.load %arg4[%c0_18, %c0_19] : memref<1x128xf32, #tpu.memory_space<vmem>>, vector<1x128xf32>
    %46 = vector.broadcast %45 : vector<1x128xf32> to vector<160x128xf32>
    %47 = arith.mulf %44, %46 : vector<160x128xf32>
    %c0_20 = arith.constant 0 : index
    %c0_21 = arith.constant 0 : index
    %48 = vector.load %arg5[%c0_20, %c0_21] : memref<1x128xf32, #tpu.memory_space<vmem>>, vector<1x128xf32>
    %49 = vector.broadcast %48 : vector<1x128xf32> to vector<160x128xf32>
    %50 = arith.addf %47, %49 : vector<160x128xf32>
    %51 = arith.negf %50 : vector<160x128xf32>
    %52 = math.exp %51 : vector<160x128xf32>
    %cst_22 = arith.constant 1.000000e+00 : f32
    %53 = vector.broadcast %cst_22 : f32 to vector<160x128xf32>
    %54 = arith.addf %53, %52 : vector<160x128xf32>
    %55 = arith.divf %53, %54 : vector<160x128xf32>
    %56 = arith.mulf %50, %55 : vector<160x128xf32>
    %57 = arith.truncf %56 : vector<160x128xf32> to vector<160x128xbf16>
    %58 = vector.shape_cast %57 : vector<160x128xbf16> to vector<10x16x128xbf16>
    %c0_23 = arith.constant 0 : index
    %c1_24 = arith.constant 1 : index
    %c0_25 = arith.constant 0 : index
    %59 = vector.load %arg10[%c0_23, %c1_24, %c0_25] : memref<10x18x128xbf16, #tpu.memory_space<vmem>>, vector<10x16x128xbf16>
    tpu.vector_store %arg10[%c0_23, %c1_24, %c0_25], %58 {strides = array<i32>} : memref<10x18x128xbf16, #tpu.memory_space<vmem>>, vector<10x16x128xbf16>,
    %cst_26 = arith.constant 0.000000e+00 : bf16
    %60 = vector.broadcast %cst_26 : bf16 to vector<10x128xbf16>
    %c0_27 = arith.constant 0 : index
    %c0_28 = arith.constant 0 : index
    %c0_29 = arith.constant 0 : index
    %61 = vector.load %arg10[%c0_27, %c0_28, %c0_29] : memref<10x18x128xbf16, #tpu.memory_space<vmem>>, vector<10x1x128xbf16>
    %62 = vector.shape_cast %61 : vector<10x1x128xbf16> to vector<10x128xbf16>
    %63 = vector.shape_cast %60 : vector<10x128xbf16> to vector<10x1x128xbf16>
    tpu.vector_store %arg10[%c0_27, %c0_28, %c0_29], %63 {strides = array<i32>} : memref<10x18x128xbf16, #tpu.memory_space<vmem>>, vector<10x1x128xbf16>,
    %c0_30 = arith.constant 0 : index
    %c17 = arith.constant 17 : index
    %c0_31 = arith.constant 0 : index
    %64 = vector.load %arg10[%c0_30, %c17, %c0_31] : memref<10x18x128xbf16, #tpu.memory_space<vmem>>, vector<10x1x128xbf16>
    %65 = vector.shape_cast %64 : vector<10x1x128xbf16> to vector<10x128xbf16>
    %66 = vector.shape_cast %60 : vector<10x128xbf16> to vector<10x1x128xbf16>
    tpu.vector_store %arg10[%c0_30, %c17, %c0_31], %66 {strides = array<i32>} : memref<10x18x128xbf16, #tpu.memory_space<vmem>>, vector<10x1x128xbf16>,
    %cst_32 = arith.constant 0.000000e+00 : bf16
    %67 = vector.broadcast %cst_32 : bf16 to vector<18x128xbf16>
    %c0_i32 = arith.constant 0 : i32
    %68 = arith.cmpi eq, %arg1, %c0_i32 : i32
    %69 = arith.extui %68 : i1 to i32
    %c0_i32_33 = arith.constant 0 : i32
    %70 = arith.cmpi ne, %69, %c0_i32_33 : i32
    scf.if %70 {
      %c0_69 = arith.constant 0 : index
      %c0_70 = arith.constant 0 : index
      %c0_71 = arith.constant 0 : index
      %133 = vector.load %arg10[%c0_69, %c0_70, %c0_71] : memref<10x18x128xbf16, #tpu.memory_space<vmem>>, vector<1x18x128xbf16>
      %134 = vector.shape_cast %133 : vector<1x18x128xbf16> to vector<18x128xbf16>
      %135 = vector.shape_cast %67 : vector<18x128xbf16> to vector<1x18x128xbf16>
      tpu.vector_store %arg10[%c0_69, %c0_70, %c0_71], %135 {strides = array<i32>} : memref<10x18x128xbf16, #tpu.memory_space<vmem>>, vector<1x18x128xbf16>,
    } else {
    }
    %c1_i32 = arith.constant 1 : i32
    %71 = arith.cmpi eq, %arg1, %c1_i32 : i32
    %72 = arith.extui %71 : i1 to i32
    %c0_i32_34 = arith.constant 0 : i32
    %73 = arith.cmpi ne, %72, %c0_i32_34 : i32
    scf.if %73 {
      %c9 = arith.constant 9 : index
      %c0_69 = arith.constant 0 : index
      %c0_70 = arith.constant 0 : index
      %133 = vector.load %arg10[%c9, %c0_69, %c0_70] : memref<10x18x128xbf16, #tpu.memory_space<vmem>>, vector<1x18x128xbf16>
      %134 = vector.shape_cast %133 : vector<1x18x128xbf16> to vector<18x128xbf16>
      %135 = vector.shape_cast %67 : vector<18x128xbf16> to vector<1x18x128xbf16>
      tpu.vector_store %arg10[%c9, %c0_69, %c0_70], %135 {strides = array<i32>} : memref<10x18x128xbf16, #tpu.memory_space<vmem>>, vector<1x18x128xbf16>,
    } else {
    }
    %cst_35 = arith.constant 0.000000e+00 : f32
    %74 = vector.broadcast %cst_35 : f32 to vector<128x128xf32>
    %c0_36 = arith.constant 0 : index
    %c0_37 = arith.constant 0 : index
    %c0_38 = arith.constant 0 : index
    %75 = vector.load %arg10[%c0_36, %c0_37, %c0_38] : memref<10x18x128xbf16, #tpu.memory_space<vmem>>, vector<10x16x128xbf16>
    %76 = vector.extract_strided_slice %75 {offsets = [0, 0, 0], sizes = [8, 16, 128], strides = [1, 1, 1]} : vector<10x16x128xbf16> to vector<8x16x128xbf16>
    %77 = vector.shape_cast %76 : vector<8x16x128xbf16> to vector<128x128xbf16>
    %78 = vector.extract_strided_slice %75 {offsets = [1, 0, 0], sizes = [8, 16, 128], strides = [1, 1, 1]} : vector<10x16x128xbf16> to vector<8x16x128xbf16>
    %79 = vector.shape_cast %78 : vector<8x16x128xbf16> to vector<128x128xbf16>
    %80 = vector.extract_strided_slice %75 {offsets = [2, 0, 0], sizes = [8, 16, 128], strides = [1, 1, 1]} : vector<10x16x128xbf16> to vector<8x16x128xbf16>
    %81 = vector.shape_cast %80 : vector<8x16x128xbf16> to vector<128x128xbf16>
    %82 = tpu.concatenate %77, %79, %81 in 1 : vector<128x128xbf16>, vector<128x128xbf16>, vector<128x128xbf16> -> vector<128x384xbf16>
    %c0_39 = arith.constant 0 : index
    %c0_40 = arith.constant 0 : index
    %c0_41 = arith.constant 0 : index
    %83 = vector.load %arg6[%c0_39, %c0_40, %c0_41] : memref<3x384x128xbf16, #tpu.memory_space<vmem>>, vector<1x384x128xbf16>
    %84 = vector.shape_cast %83 : vector<1x384x128xbf16> to vector<384x128xbf16>
    %cst_42 = arith.constant dense<0.000000e+00> : vector<128x128xf32>
    %85 = tpu.matmul %82, %84, %cst_42 {dimension_numbers = #tpu.dot_dimension_numbers<[1], [0], [0], [1], [0, 0, 1, 1], [], []>} : vector<128x384xbf16>, vector<384x128xbf16>, vector<128x128xf32> -> vector<128x128xf32>
    %86 = arith.addf %74, %85 : vector<128x128xf32>
    %c0_43 = arith.constant 0 : index
    %c1_44 = arith.constant 1 : index
    %c0_45 = arith.constant 0 : index
    %87 = vector.load %arg10[%c0_43, %c1_44, %c0_45] : memref<10x18x128xbf16, #tpu.memory_space<vmem>>, vector<10x16x128xbf16>
    %88 = vector.extract_strided_slice %87 {offsets = [0, 0, 0], sizes = [8, 16, 128], strides = [1, 1, 1]} : vector<10x16x128xbf16> to vector<8x16x128xbf16>
    %89 = vector.shape_cast %88 : vector<8x16x128xbf16> to vector<128x128xbf16>
    %90 = vector.extract_strided_slice %87 {offsets = [1, 0, 0], sizes = [8, 16, 128], strides = [1, 1, 1]} : vector<10x16x128xbf16> to vector<8x16x128xbf16>
    %91 = vector.shape_cast %90 : vector<8x16x128xbf16> to vector<128x128xbf16>
    %92 = vector.extract_strided_slice %87 {offsets = [2, 0, 0], sizes = [8, 16, 128], strides = [1, 1, 1]} : vector<10x16x128xbf16> to vector<8x16x128xbf16>
    %93 = vector.shape_cast %92 : vector<8x16x128xbf16> to vector<128x128xbf16>
    %94 = tpu.concatenate %89, %91, %93 in 1 : vector<128x128xbf16>, vector<128x128xbf16>, vector<128x128xbf16> -> vector<128x384xbf16>
    %c1_46 = arith.constant 1 : index
    %c0_47 = arith.constant 0 : index
    %c0_48 = arith.constant 0 : index
    %95 = vector.load %arg6[%c1_46, %c0_47, %c0_48] : memref<3x384x128xbf16, #tpu.memory_space<vmem>>, vector<1x384x128xbf16>
    %96 = vector.shape_cast %95 : vector<1x384x128xbf16> to vector<384x128xbf16>
    %cst_49 = arith.constant dense<0.000000e+00> : vector<128x128xf32>
    %97 = tpu.matmul %94, %96, %cst_49 {dimension_numbers = #tpu.dot_dimension_numbers<[1], [0], [0], [1], [0, 0, 1, 1], [], []>} : vector<128x384xbf16>, vector<384x128xbf16>, vector<128x128xf32> -> vector<128x128xf32>
    %98 = arith.addf %86, %97 : vector<128x128xf32>
    %c0_50 = arith.constant 0 : index
    %c2_51 = arith.constant 2 : index
    %c0_52 = arith.constant 0 : index
    %99 = vector.load %arg10[%c0_50, %c2_51, %c0_52] : memref<10x18x128xbf16, #tpu.memory_space<vmem>>, vector<10x16x128xbf16>
    %100 = vector.extract_strided_slice %99 {offsets = [0, 0, 0], sizes = [8, 16, 128], strides = [1, 1, 1]} : vector<10x16x128xbf16> to vector<8x16x128xbf16>
    %101 = vector.shape_cast %100 : vector<8x16x128xbf16> to vector<128x128xbf16>
    %102 = vector.extract_strided_slice %99 {offsets = [1, 0, 0], sizes = [8, 16, 128], strides = [1, 1, 1]} : vector<10x16x128xbf16> to vector<8x16x128xbf16>
    %103 = vector.shape_cast %102 : vector<8x16x128xbf16> to vector<128x128xbf16>
    %104 = vector.extract_strided_slice %99 {offsets = [2, 0, 0], sizes = [8, 16, 128], strides = [1, 1, 1]} : vector<10x16x128xbf16> to vector<8x16x128xbf16>
    %105 = vector.shape_cast %104 : vector<8x16x128xbf16> to vector<128x128xbf16>
    %106 = tpu.concatenate %101, %103, %105 in 1 : vector<128x128xbf16>, vector<128x128xbf16>, vector<128x128xbf16> -> vector<128x384xbf16>
    %c2_53 = arith.constant 2 : index
    %c0_54 = arith.constant 0 : index
    %c0_55 = arith.constant 0 : index
    %107 = vector.load %arg6[%c2_53, %c0_54, %c0_55] : memref<3x384x128xbf16, #tpu.memory_space<vmem>>, vector<1x384x128xbf16>
    %108 = vector.shape_cast %107 : vector<1x384x128xbf16> to vector<384x128xbf16>
    %cst_56 = arith.constant dense<0.000000e+00> : vector<128x128xf32>
    %109 = tpu.matmul %106, %108, %cst_56 {dimension_numbers = #tpu.dot_dimension_numbers<[1], [0], [0], [1], [0, 0, 1, 1], [], []>} : vector<128x384xbf16>, vector<384x128xbf16>, vector<128x128xf32> -> vector<128x128xf32>
    %110 = arith.addf %98, %109 : vector<128x128xf32>
    %c0_57 = arith.constant 0 : index
    %c0_58 = arith.constant 0 : index
    %111 = vector.load %arg7[%c0_57, %c0_58] : memref<1x128xf32, #tpu.memory_space<vmem>>, vector<1x128xf32>
    %112 = vector.broadcast %111 : vector<1x128xf32> to vector<128x128xf32>
    %113 = arith.mulf %110, %112 : vector<128x128xf32>
    %c0_59 = arith.constant 0 : index
    %c0_60 = arith.constant 0 : index
    %114 = vector.load %arg8[%c0_59, %c0_60] : memref<1x128xf32, #tpu.memory_space<vmem>>, vector<1x128xf32>
    %115 = vector.broadcast %114 : vector<1x128xf32> to vector<128x128xf32>
    %116 = arith.addf %113, %115 : vector<128x128xf32>
    %117 = arith.negf %116 : vector<128x128xf32>
    %118 = math.exp %117 : vector<128x128xf32>
    %cst_61 = arith.constant 1.000000e+00 : f32
    %119 = vector.broadcast %cst_61 : f32 to vector<128x128xf32>
    %120 = arith.addf %119, %118 : vector<128x128xf32>
    %121 = arith.divf %119, %120 : vector<128x128xf32>
    %122 = arith.mulf %116, %121 : vector<128x128xf32>
    %123 = vector.shape_cast %122 : vector<128x128xf32> to vector<8x16x128xf32>
    %c2_i32 = arith.constant 2 : i32
    %124 = arith.addi %1, %c2_i32 : i32
    %c0_62 = arith.constant 0 : index
    %125 = arith.index_cast %124 : i32 to index
    %c1_63 = arith.constant 1 : index
    %c0_64 = arith.constant 0 : index
    %126 = vector.load %arg2[%c0_62, %125, %c1_63, %c0_64] : memref<1x20x18x128xbf16, #tpu.memory_space<vmem>>, vector<1x8x16x128xbf16>
    %127 = vector.shape_cast %126 : vector<1x8x16x128xbf16> to vector<8x16x128xbf16>
    %128 = arith.extf %127 : vector<8x16x128xbf16> to vector<8x16x128xf32>
    %129 = arith.addf %123, %128 : vector<8x16x128xf32>
    %c0_65 = arith.constant 0 : index
    %c0_66 = arith.constant 0 : index
    %c0_67 = arith.constant 0 : index
    %c0_68 = arith.constant 0 : index
    %130 = vector.load %arg9[%c0_65, %c0_66, %c0_67, %c0_68] : memref<1x8x16x128xf32, #tpu.memory_space<vmem>>, vector<1x8x16x128xf32>
    %131 = vector.shape_cast %130 : vector<1x8x16x128xf32> to vector<8x16x128xf32>
    %132 = vector.shape_cast %129 : vector<8x16x128xf32> to vector<1x8x16x128xf32>
    tpu.vector_store %arg9[%c0_65, %c0_66, %c0_67, %c0_68], %132 {strides = array<i32>} : memref<1x8x16x128xf32, #tpu.memory_space<vmem>>, vector<1x8x16x128xf32>,
    return
  }
  func.func @transform_0(%arg0: i32, %arg1: i32) -> (i32, i32, i32, i32) {
    %c0_i32 = arith.constant 0 : i32
    %c0_i32_0 = arith.constant 0 : i32
    %c0_i32_1 = arith.constant 0 : i32
    %c0_i32_2 = arith.constant 0 : i32
    return %arg0, %c0_i32, %c0_i32_0, %c0_i32_1 : i32, i32, i32, i32
  }
  func.func @transform_1(%arg0: i32, %arg1: i32) -> (i32, i32, i32) {
    %c0_i32 = arith.constant 0 : i32
    %c0_i32_0 = arith.constant 0 : i32
    %c0_i32_1 = arith.constant 0 : i32
    %c0_i32_2 = arith.constant 0 : i32
    return %c0_i32, %c0_i32_0, %c0_i32_1 : i32, i32, i32
  }
  func.func @transform_2(%arg0: i32, %arg1: i32) -> (i32, i32) {
    %c0_i32 = arith.constant 0 : i32
    %c0_i32_0 = arith.constant 0 : i32
    %c0_i32_1 = arith.constant 0 : i32
    return %c0_i32, %c0_i32_0 : i32, i32
  }
  func.func @transform_3(%arg0: i32, %arg1: i32) -> (i32, i32) {
    %c0_i32 = arith.constant 0 : i32
    %c0_i32_0 = arith.constant 0 : i32
    %c0_i32_1 = arith.constant 0 : i32
    return %c0_i32, %c0_i32_0 : i32, i32
  }
  func.func @transform_4(%arg0: i32, %arg1: i32) -> (i32, i32, i32) {
    %c0_i32 = arith.constant 0 : i32
    %c0_i32_0 = arith.constant 0 : i32
    %c0_i32_1 = arith.constant 0 : i32
    %c0_i32_2 = arith.constant 0 : i32
    return %c0_i32, %c0_i32_0, %c0_i32_1 : i32, i32, i32
  }
  func.func @transform_5(%arg0: i32, %arg1: i32) -> (i32, i32) {
    %c0_i32 = arith.constant 0 : i32
    %c0_i32_0 = arith.constant 0 : i32
    %c0_i32_1 = arith.constant 0 : i32
    return %c0_i32, %c0_i32_0 : i32, i32
  }
  func.func @transform_6(%arg0: i32, %arg1: i32) -> (i32, i32) {
    %c0_i32 = arith.constant 0 : i32
    %c0_i32_0 = arith.constant 0 : i32
    %c0_i32_1 = arith.constant 0 : i32
    return %c0_i32, %c0_i32_0 : i32, i32
  }
  func.func @transform_7(%arg0: i32, %arg1: i32) -> (i32, i32, i32, i32) {
    %c0_i32 = arith.constant 0 : i32
    %c0_i32_0 = arith.constant 0 : i32
    %c0_i32_1 = arith.constant 0 : i32
    return %arg0, %arg1, %c0_i32, %c0_i32_0 : i32, i32, i32, i32
  }
}

</mosaic_0001>

<bundles_post_ra>
// kernel: tpu_custom_call.1
= control target key start
LH: loop header
LB: loop body
LE: loop exit
PB: predicated region body
PF: predicated region fallthrough
CT: control target
= control target key end

     0   :  { %s8894_s0 = inlined_call_operand.vmem [shape: bf16[2,20,18,128], index: 0, kind: input, shape index: {}]   ;;  %s8895_s1 = inlined_call_operand.vmem [shape: bf16[3,384,128], index: 1, kind: input, shape index: {}]   ;;  %s8896_s2 = inlined_call_operand.vmem [shape: f32[1,128], index: 2, kind: input, shape index: {}]   ;;  %s8897_s3 = inlined_call_operand.vmem [shape: f32[1,128], index: 3, kind: input, shape index: {}]   ;;  %s8898_s4 = inlined_call_operand.hbm [shape: bf16[3,384,128], index: 4, kind: input, shape index: {}]   ;;  %s8899_s5 = inlined_call_operand.vmem [shape: f32[1,128], index: 5, kind: input, shape index: {}]   ;;  %s8900_s6 = inlined_call_operand.vmem [shape: f32[1,128], index: 6, kind: input, shape index: {}]   ;;  %s8901_s7 = inlined_call_operand.hbm [shape: f32[2,16,16,128], index: 7, kind: output, shape index: {}]  }
   0x1   :  { %8910 = sst [smem:[#allocation12_spill]] %s8898_s4 }
   0x2   :  { %12 = vsyncpa [#allocation4], 0 }
   0x3   :  { %13 = vsyncpa [#allocation5], 0 }
   0x4   :  { %15 = vsyncpa [#allocation5 + $0x1], 0  ;;  %s6892_s24 = smov 0   ;;  %s6894_s25 = smov 0  }
   0x5   :  { %s6896_s26 = smov 0   ;;  %s6898_s27 = smov 0  }
   0x6   :  { %s6900_s28 = smov 0   ;;  %s6902_s29 = smov 0  }
   0x7   :  { %s6904_s30 = smov 0   ;;  %s6906_s8 = smov 0  }
   0x8 LB: > { %8911 = sst [smem:[#allocation9_spill]] %s6838_s30  ;;  %s4934_s9 = sadd.s32 4294967295, %s6842_s8   ;;  %s6842_s8 = sphi %s6906_s8, %s21_s8   ;;  %s6838_s30 = sphi %s6904_s30, %s8939_s30   ;;  %s6834_s29 = sphi %s6902_s29, %s8944_s29   ;;  %s6830_s28 = sphi %s6900_s28, %s8937_s28   ;;  %s6826_s27 = sphi %s6898_s27, %s8943_s27   ;;  %s6822_s26 = sphi %s6896_s26, %s8942_s26   ;;  %s6818_s25 = sphi %s6894_s25, %s8941_s25   ;;  %s6814_s24 = sphi %s6892_s24, %s8940_s24  }
   0x9   : > { %s4935_s10 = sadd.s32 4294967294, %s6842_s8   ;;  %s30_s11 = sadd.s32 1, %s6834_s29 }
   0xa   : > { %s33_s12 = sadd.s32 1, %s6838_s30  ;;  %p31_p0 = scmp.ge.s32.totalorder %s30_s11, 2 }
   0xb   : > { %s194_s13 = sadd.s32 1, %s6822_s26  ;;  %p204_p1 = scmp.ne.s32.totalorder %s6822_s26, %s6818_s25 }
   0xc   : > { %p205_p2 = scmp.eq.s32.totalorder %s4934_s9, 3  ;;  %s8946_s11 = smov (%p31_p0, %s30_s11), 0 }
   0xd   : > { %8912 = sst [smem:[#allocation10_spill]] %s8946_s11  ;;  %s8948_s12 = smov (!%p31_p0, %s33_s12), %s6838_s30 }
   0xe   : > { %s190_s14 = ssub.s32 %s6834_s29, %s8946_s11  ;;  %p6944_p3 = por %p205_p2, %p204_p1 }
   0xf   : > { %p35_p4 = scmp.ge.s32.totalorder %s8948_s12, 2  ;;  %p210_p5 = scmp.ne.s32.totalorder %s6818_s25, %s6814_s24 }
  0x10   : > { %s8913_s15 = scalar_select %p6944_p3, 1, 0 }
  0x11   : > { %p211_p6 = scmp.eq.s32.totalorder %s4935_s10, 3  ;;  %p4936_p7 = scmp.ge.s32.totalorder %s6842_s8, 1 }
  0x12   : > { %s8950_s12 = smov (%p35_p4, %s8948_s12), 0  ;;  %p218_p9 = scmp.lt.s32.totalorder %s6842_s8, 5 }
  0x13   : > { %8914 = sst [smem:[#allocation11_spill]] %s8950_s12  ;;  %p6953_p8 = por %p211_p6, %p210_p5 }
  0x14   : > { %s189_s17 = ssub.s32 %s6838_s30, %s8950_s12  ;;  %p6960_p10 = pnand %p4936_p7, %p218_p9 }
  0x15   : > { %s8915_s16 = scalar_select %p6953_p8, 1, 0 }
  0x16   : > { %s191_s18 = sor.u32 %s190_s14, %s189_s17  ;;  %p6964_p12 = scmp.eq.s32.totalorder %s4934_s9, 0 }
  0x17   : > { %s8916_s19 = scalar_select %p6960_p10, 1, 0 }
  0x18   : > { %p192_p11 = scmp.eq.s32.totalorder %s191_s18, 0  ;;  %p6324_p13 = pneg %p6960_p10 }
  0x19   : > { %s8917_s20 = scalar_select %p6964_p12, 1, 0 }
  0x1a   : > { %s6971_s21 = scalar_select %p192_p11, %s6822_s26, %s194_s13  }
  0x1b   : > { %s6844_s22 = smov [#allocation3]   ;;  %p6975_p0 = pnand %p6964_p12, %p6324_p13 }
  0x1c   : > { %s239_s23 = sshll.u32 %s6844_s22, 4  ;;  %s8919_s4 = sld [smem:[#allocation12_spill]]  ;;  %s240_s23 = int_to_ptr.vmem [resolvable:$true] %s239_s23 }
  0x1d   : > { %p6718_p2 = pneg %p6975_p0 }
  0x22   : > { %s6716_s9 = scalar_lea.hbm %s8919_s4, 9216 }
  0x23   : > { %p6717_p1 = scmp.ne.s32.totalorder %s8919_s4, %s6716_s9  ;;  %p6723_p6 = scmp.lt.u32.totalorder %s6716_s9, %s8919_s4 }
  0x25   : > { %p6719_p4 = pnand %p6718_p2, %p6717_p1 }
  0x27   : > { %p6720_p5 = pneg %p6719_p4 }
  0x29   : > { %p6725_p7 = pnand %p6723_p6, %p6720_p5 }
  0x2b   : > { %6728 = shalt.err (!%p6725_p7)
}
  0x2c   : > { %s6729_s11 = scalar_lea.vmem %s240_s23, 9216  ;;  %p6737_p8 = scmp.lt.s32.totalorder %s240_s23, %s240_s23 }
  0x2d   : > { %p6730_p9 = scmp.ne.s32.totalorder %s240_s23, %s6729_s11  ;;  %p6738_p3 = scmp.lt.s32.totalorder %s6729_s11, %s6729_s11 }
  0x2f   : > { %p6732_p11 = pnand %p6730_p9, %p6718_p2  ;;  %p6739_p12 = por %p6738_p3, %p6737_p8 }
  0x31   : > { %p6733_p13 = pneg %p6732_p11 }
  0x33   : > { %p6740_p10 = pnand %p6739_p12, %p6733_p13 }
  0x35   : > { %6743 = shalt.err (!%p6740_p10)
}
  0x36   : > { %s6845_s12 = smov 64   ;;  %s6846_s14 = smov 4  }
  0x37   : > { %6327 = dma.hbm_to_vmem [thread:$0]  (!%p6975_p0), %s8919_s4, 9216, %s240_s23, [#allocation4], %s6845_s12, %s6845_s12, %s6846_s14  }
  0x38   : > { %p8920_p1 = scmp.ne.s32.totalorder %s8916_s19, 0 }
  0x39   : > { %p8921_p4 = scmp.ne.s32.totalorder (!%p8920_p1), %s8917_s20, 0 }
  0x3a   : > { %269 = sbr.rel (%p8920_p1) target bundleno = 1046 (0x416), region = 48 }
  0x41   : > { %6805 = dma.done.wait (%p8921_p4), [#allocation4], 9216  }
  0x42   : > { %6807 = vsyncadd (%p8921_p4), [#allocation4], 4294958080  ;;  %s8908_s11 = sand.u32 1, %s6818_s25   ;;  %v6406_v0 = vld [vmem:[%s8895_s1 + $0x100] sm:$0xff]   ;;  %v6410_v4 = vld [vmem:[%s8895_s1 + $0x108] sm:$0xff]   ;;  %p301_p3 = scmp.lt.s32.totalorder %s6830_s28, 1 }
  0x43   : > { %s7004_s9 = sshll.u32 %s8908_s11, 7  ;;  %v6407_v1 = vld [vmem:[%s8895_s1 + $0xc0] sm:$0xff]   ;;  %5411 = vmatprep.subr.bf16.mxu0 %v6406_v0  ;;  %v6411_v5 = vld [vmem:[%s8895_s1 + $0xc8] sm:$0xff]   ;;  %v6414_v8 = vld [vmem:[%s8895_s1 + $0x110] sm:$0xff]   ;;  %s5369_s23 = smul.u32 96, %s6826_s27  ;;  %vm1628_vm3 = vcmask 1042432  }
  0x44   : > { %v6408_v2 = vld [vmem:[%s8895_s1 + $0x40] sm:$0xff]   ;;  %5412 = vmatpush3.bf16.msra.mxu0 %v6407_v1  ;;  %v6412_v6 = vld [vmem:[%s8895_s1 + $0x48] sm:$0xff]   ;;  %v6415_v9 = vld [vmem:[%s8895_s1 + $0xd0] sm:$0xff]   ;;  %s302_s20 = scalar_select %p301_p3, %s6830_s28, 1  ;;  %vm468_vm0 = vsmask.f32 3328 }
  0x45   : > { %v6409_v3 = vld [vmem:[%s8895_s1] sm:$0xff]   ;;  %5505 = vmatprep.subr.bf16.mxu1 %v6408_v2  ;;  %5413 = vmatprep.subr.bf16.mxu0 %v6410_v4  ;;  %v6413_v7 = vld [vmem:[%s8895_s1 + $0x8] sm:$0xff]   ;;  %v6416_v10 = vld [vmem:[%s8895_s1 + $0x50] sm:$0xff]   ;;  %vm469_vm1 = vsmask.f32 7440  ;;  %vm1629_vm4 = vcmask 1046532  }
  0x46   : > { %5506 = vmatpush3.bf16.msra.mxu1 %v6409_v3  ;;  %v6417_v11 = vld [vmem:[%s8895_s1 + $0x10] sm:$0xff]   ;;  %v6418_v12 = vld [vmem:[%s8895_s1 + $0x118] sm:$0xff]   ;;  %v6422_v16 = vld [vmem:[%s8895_s1 + $0x120] sm:$0xff]   ;;  %s6317_s12 = smul.u32 240, %s302_s20  ;;  %vm2460_vm6 = vsmask.f32 256 }
  0x47   : > { %5507 = vmatprep.subr.bf16.mxu1 %v6412_v6  ;;  %v6419_v13 = vld [vmem:[%s8895_s1 + $0xd8] sm:$0xff]   ;;  %v6423_v17 = vld [vmem:[%s8895_s1 + $0xe0] sm:$0xff]   ;;  %v6426_v20 = vld [vmem:[%s8895_s1 + $0x128] sm:$0xff]   ;;  %vm2663_vm7 = vcmask 1043456   ;;  %vm2664_vm8 = vsmask.f32 7938 }
  0x48   : > { %5414 = vmatpush3.bf16.msra.mxu0 %v6411_v5  ;;  %v6420_v14 = vld [vmem:[%s8895_s1 + $0x58] sm:$0xff]   ;;  %v6424_v18 = vld [vmem:[%s8895_s1 + $0x60] sm:$0xff]   ;;  %v6427_v21 = vld [vmem:[%s8895_s1 + $0xe8] sm:$0xff]   ;;  %s305_s11 = scalar_lea.vmem %s8894_s0, %s6317_s12  ;;  %vm2670_vm9 = vcmask 1040384   ;;  %vm2461_vm10 = vsmask.f32 4368 }
  0x49   : > { %5415 = vmatprep.subr.bf16.mxu0 %v6414_v8  ;;  %v6421_v15 = vld [vmem:[%s8895_s1 + $0x18] sm:$0xff]   ;;  %v6425_v19 = vld [vmem:[%s8895_s1 + $0x20] sm:$0xff]   ;;  %v6428_v22 = vld [vmem:[%s8895_s1 + $0x68] sm:$0xff]   ;;  %s7099_s22 = scalar_lea.vmem %s305_s11, %s5369_s23  ;;  %s8168_s11 = scalar_lea.vmem [#allocation6], %s7004_s9 }
  0x4a   : > { %5508 = vmatpush3.bf16.msra.mxu1 %v6413_v7  ;;  %v6429_v23 = vld [vmem:[%s8895_s1 + $0x28] sm:$0xff]   ;;  %v6430_v24 = vld [vmem:[%s8895_s1 + $0x130] sm:$0xff]   ;;  %v6434_v28 = vld [vmem:[%s8895_s1 + $0x138] sm:$0xff]   ;;  %p5204_p8 = scmp.ne.s32.totalorder %s6826_s27, 0 }
  0x4b   : > { %5509 = vmatprep.subr.bf16.mxu1 %v6416_v10  ;;  %v6431_v25 = vld [vmem:[%s8895_s1 + $0xf0] sm:$0xff]   ;;  %v6435_v29 = vld [vmem:[%s8895_s1 + $0xf8] sm:$0xff]   ;;  %v314_v31 = vld [vmem:[%s7099_s22 + $0xc] sm:$0xf] }
  0x4c   : > { %5416 = vmatpush3.bf16.msra.mxu0 %v6415_v9  ;;  %v6432_v26 = vld [vmem:[%s8895_s1 + $0x70] sm:$0xff]   ;;  %v6436_v30 = vld [vmem:[%s8895_s1 + $0x78] sm:$0xff]   ;;  %v496_v34 = vshrl.u32 %v314_v31, 16  ;;  %v499_v35 = vshll.u32 %v314_v31, 16  ;;  %v312_v40 = vld [vmem:[%s7099_s22] sm:$0xf] }
  0x4d   : > { %5417 = vmatprep.subr.bf16.mxu0 %v6418_v12  ;;  %v6433_v27 = vld [vmem:[%s8895_s1 + $0x30] sm:$0xff]   ;;  %v6437_v39 = vld [vmem:[%s8895_s1 + $0x38] sm:$0xff]   ;;  %v7125_v46 = vld [vmem:[%s7099_s22 + $0x4] sm:$0xf]  ;;  %v472_v49 = vshrl.u32 %v312_v40, 16  ;;  %v475_v50 = vshll.u32 %v312_v40, 16 }
  0x4e   : > { %5510 = vmatpush3.bf16.msra.mxu1 %v6417_v11  ;;  %v7109_v32 = vld [vmem:[%s7099_s22 + $0x10] sm:$0xf]  ;;  %v7112_v33 = vld [vmem:[%s7099_s22 + $0x14] sm:$0x1]  ;;  %v498_v42 = vrot.slane %v496_v34, 4  ;;  %v501_v43 = vrot.slane %v499_v35, 5  ;;  %vm7136_vm2 = vmor %vm468_vm0, %vm469_vm1  ;;  %v4946_v3 = vcombine.low %v312_v40, %v7125_v46 }
  0x4f   : > { %5511 = vmatprep.subr.bf16.mxu1 %v6420_v14  ;;  %v505_v36 = vshll.u32 %v7109_v32, 16  ;;  %v509_v37 = vshrl.u32 %v7109_v32, 16  ;;  %v515_v38 = vshll.u32 %v7112_v33, 16  ;;  %v7122_v41 = vcombine.low %v314_v31, %v7109_v32  ;;  %v7128_v48 = vld [vmem:[%s7099_s22 + $0x8] sm:$0x1]  ;;  %v6438_v60 = vld [vmem:[%s8895_s1 + $0x140] sm:$0xff]   ;;  %vm7439_vm5 = vmor %vm1628_vm3, %vm1629_vm4 }
  0x50   : > { %5418 = vmatpush3.bf16.msra.mxu0 %v6419_v13  ;;  %v481_v51 = vshll.u32 %v7125_v46, 16  ;;  %v502_v52 = vor.u32 %v501_v43, %v498_v42  ;;  %v485_v54 = vshrl.u32 %v7125_v46, 16  ;;  %v491_v55 = vshll.u32 %v7128_v48, 16  ;;  %v316_v1 = vld [vmem:[%s7099_s22 + $0x18] sm:$0xf]  ;;  %v6450_v31 = vld [vmem:[%s8895_s1 + $0x80] sm:$0xff]   ;;  %vm7953_vm11 = vmand %vm2663_vm7, %vm2664_vm8 }
  0x51   : > { %5419 = vmatprep.subr.bf16.mxu0 %v6422_v16  ;;  %v507_v44 = vrot.slane %v505_v36, 5  ;;  %v511_v45 = vrot.slane %v509_v37, 4  ;;  %v517_v47 = vrot.slane %v515_v38, 5  ;;  %1402 = vmatprep.mubr.bf16.mxu1 %v7122_v41  ;;  %v474_v57 = vrot.slane %v472_v49, 4  ;;  %v7146_v4 = vld [vmem:[%s7099_s22 + $0x1c] sm:$0xf]  ;;  %vm7963_vm12 = vmand %vm2670_vm9, %vm2460_vm6 }
  0x52   : > { %5512 = vmatpush3.bf16.msra.mxu1 %v6421_v15  ;;  %v477_v58 = vrot.slane %v475_v50, 5  ;;  %v483_v59 = vrot.slane %v481_v51, 5  ;;  %v503_v61 = vrot.slane %v502_v52, 4  ;;  %v487_v63 = vrot.slane %v485_v54, 4  ;;  %v7149_v5 = vld [vmem:[%s7099_s22 + $0x20] sm:$0x1]  ;;  %vm7970_vm13 = vmor %vm2460_vm6, %vm2461_vm10 }
  0x53   : > { %5513 = vmatprep.subr.bf16.mxu1 %v6424_v18  ;;  %v512_v53 = vor.u32 %v511_v45, %v507_v44  ;;  %v493_v0 = vrot.slane %v491_v55, 5  ;;  %v520_v6 = vshrl.u32 %v316_v1, 16  ;;  %v523_v7 = vshll.u32 %v316_v1, 16  ;;  %v318_v16 = vld [vmem:[%s7099_s22 + $0x24] sm:$0xf]  ;;  %v6442_v36 = vld [vmem:[%s8895_s1 + $0x148] sm:$0xff]   ;;  %vm7996_vm14 = vmand %vm2670_vm9, %vm2664_vm8 }
  0x54   : > { %5420 = vmatpush3.bf16.msra.mxu0 %v6423_v17  ;;  %v478_v2 = vor.u32 %v477_v58, %v474_v57  ;;  %v508_v8 = vsel %vm7136_vm2, %v503_v61, %v507_v44  ;;  %v488_v10 = vor.u32 %v487_v63, %v483_v59  ;;  %v529_v11 = vshll.u32 %v7146_v4, 16  ;;  %v7187_v45 = vld [vmem:[%s7099_s22 + $0x34] sm:$0xf]  ;;  %v7198_v52 = vld [vmem:[%s7099_s22 + $0x38] sm:$0x1] }
  0x55   : > { %5421 = vmatprep.subr.bf16.mxu0 %v6426_v20  ;;  %v513_v62 = vrot.slane %v512_v53, 4  ;;  %v522_v14 = vrot.slane %v520_v6, 4  ;;  %v525_v15 = vrot.slane %v523_v7, 5  ;;  %v539_v20 = vshll.u32 %v7149_v5, 16  ;;  %v6455_v58 = vld [vmem:[%s8895_s1 + $0x90] sm:$0xff]  }
  0x56   : > { %5514 = vmatpush3.bf16.msra.mxu1 %v6425_v19  ;;  %v479_v13 = vrot.slane %v478_v2, 4  ;;  %v489_v17 = vrot.slane %v488_v10, 4  ;;  %v531_v18 = vrot.slane %v529_v11, 5  ;;  %v533_v19 = vshrl.u32 %v7146_v4, 16  ;;  %v7219_v10 = vld [vmem:[%s7099_s22 + $0x40] sm:$0xf] }
  0x57   : > { %5515 = vmatprep.subr.bf16.mxu1 %v6428_v22  ;;  %v518_v9 = vsel %vm7136_vm2, %v513_v62, %v517_v47  ;;  %v6453_v47 = vld [vmem:[%s8895_s1 + $0x88] sm:$0xff]   ;;  %v577_v62 = vshll.u32 %v7187_v45, 16  ;;  %v581_v63 = vshrl.u32 %v7187_v45, 16 }
  0x58   : > { %5422 = vmatpush3.bf16.msra.mxu0 %v6427_v21  ;;  %v7156_v12 = vcombine.low %v508_v8, %v518_v9  ;;  %v7162_v21 = vld [vmem:[%s7099_s22 + $0x28] sm:$0xf]  ;;  %v484_v22 = vsel %vm7136_vm2, %v479_v13, %v483_v59  ;;  %v6444_v59 = vld [vmem:[%s8895_s1 + $0x150] sm:$0xff]  }
  0x59   : > { %5423 = vmatprep.subr.bf16.mxu0 %v6430_v24  ;;  %v7168_v24 = vcombine.low %v316_v1, %v7146_v4  ;;  %v553_v38 = vshll.u32 %v7162_v21, 16  ;;  %v557_v43 = vshrl.u32 %v7162_v21, 16  ;;  %v7195_v51 = vcombine.low %v318_v16, %v7162_v21 }
  0x5a   : > { %5516 = vmatpush3.bf16.msra.mxu1 %v6429_v23  ;;  %1032 = vmatprep.mubr.bf16.mxu0 %v7156_v12  ;;  %v526_v23 = vor.u32 %v525_v15, %v522_v14  ;;  %v579_v9 = vrot.slane %v577_v62, 5  ;;  %v583_v14 = vrot.slane %v581_v63, 4 }
  0x5b   : > { %5517 = vmatprep.subr.bf16.mxu1 %v6432_v26  ;;  %v544_v26 = vshrl.u32 %v318_v16, 16  ;;  %v555_v50 = vrot.slane %v553_v38, 5  ;;  %v559_v55 = vrot.slane %v557_v43, 4  ;;  %v6459_v43 = vld [vmem:[%s8895_s1 + $0xa0] sm:$0xff]  }
  0x5c   : > { %5424 = vmatpush3.bf16.msra.mxu0 %v6431_v25  ;;  %v7171_v25 = vld [vmem:[%s7099_s22 + $0x2c] sm:$0x1]  ;;  %v527_v35 = vrot.slane %v526_v23, 4 }
  0x5d   : > { %5425 = vmatprep.subr.bf16.mxu0 %v6434_v28  ;;  %v535_v28 = vrot.slane %v533_v19, 4  ;;  %v546_v37 = vrot.slane %v544_v26, 4  ;;  %v563_v44 = vshll.u32 %v7171_v25, 16  ;;  %v560_v2 = vor.u32 %v559_v55, %v555_v50  ;;  %v7239_v26 = vld [vmem:[%s7099_s22 + $0x48] sm:$0xf] }
  0x5e   : > { %5518 = vmatpush3.bf16.msra.mxu1 %v6433_v27  ;;  %v494_v27 = vsel %vm7136_vm2, %v489_v17, %v493_v0  ;;  %v532_v49 = vsel %vm7136_vm2, %v527_v35, %v531_v18  ;;  %v7227_v17 = vld [vmem:[%s7099_s22 + $0x44] sm:$0x1] }
  0x5f   : > { %5519 = vmatprep.subr.bf16.mxu1 %v6436_v30  ;;  %v547_v30 = vshll.u32 %v318_v16, 16  ;;  %v4958_v34 = vcombine.low %v484_v22, %v494_v27  ;;  %v536_v40 = vor.u32 %v535_v28, %v531_v18  ;;  %v565_v57 = vrot.slane %v563_v44, 5  ;;  %v6446_v16 = vld [vmem:[%s8895_s1 + $0x158] sm:$0xff]  }
  0x60   : > { %5426 = vmatpush3.bf16.msra.mxu0 %v6435_v29  ;;  %v541_v29 = vrot.slane %v539_v20, 5  ;;  %v561_v13 = vrot.slane %v560_v2, 4  ;;  %v6457_v18 = vld [vmem:[%s8895_s1 + $0x98] sm:$0xff]   ;;  %v584_v28 = vor.u32 %v583_v14, %v579_v9 }
  0x61   : > { %5933 = vmatprep.subr.bf16.mxu0 %v6438_v60  ;;  %v549_v42 = vrot.slane %v547_v30, 5  ;;  %v537_v53 = vrot.slane %v536_v40, 4  ;;  %v605_v30 = vshrl.u32 %v7219_v10, 16 }
  0x62   : > { %5520 = vmatpush3.bf16.msra.mxu1 %v6437_v39  ;;  %v320_v39 = vld [vmem:[%s7099_s22 + $0x30] sm:$0xf]  ;;  %v566_v27 = vsel %vm7136_vm2, %v561_v13, %v565_v57  ;;  %v585_v38 = vrot.slane %v584_v28, 4  ;;  %v619_v57 = vshll.u32 %v7239_v26, 16 }
  0x63   : > { %5969 = vmatprep.subr.bf16.mxu1 %v6450_v31  ;;  %1033 = vmatmul.mubr.bf16.vlgmr.msra.gmra.mrb[0].mxu0 %v4958_v34  ;;  %v550_v54 = vor.u32 %v549_v42, %v546_v37  ;;  %v568_v61 = vshrl.u32 %v320_v39, 16  ;;  %v542_v0 = vsel %vm7136_vm2, %v537_v53, %v541_v29  ;;  %v7234_v20 = vcombine.low %v320_v39, %v7187_v45  ;;  %v7267_v53 = vld [vmem:[%s7099_s22 + $0x54] sm:$0xf] }
  0x64   : > { %5934 = vmatpush3.bf16.msra.mxu0 %v6438_v60  ;;  %v571_v60 = vshll.u32 %v320_v39, 16  ;;  %v7216_v6 = vcombine.low %v532_v49, %v542_v0  ;;  %v601_v29 = vshll.u32 %v7219_v10, 16  ;;  %v607_v40 = vrot.slane %v605_v30, 4 }
  0x65   : > { %1403 = vmatmul.mubr.bf16.vlgmr.msra.gmra.mrb[0].mxu1 %v4946_v3  ;;  %5935 = vmatprep.subr.bf16.mxu0 %v6442_v36  ;;  %v551_v1 = vrot.slane %v550_v54, 4  ;;  %v7214_v3 = vld [vmem:[%s7099_s22 + $0x3c] sm:$0xf]  ;;  %v570_v7 = vrot.slane %v568_v61, 4  ;;  %v611_v42 = vshll.u32 %v7227_v17, 16  ;;  %v616_v49 = vshrl.u32 %v7239_v26, 16 }
  0x66   : > { %1410 = vmatprep.mubr.bf16.mxu1 %v7168_v24  ;;  %5970 = vmatpush3.bf16.msra.mxu1 %v6450_v31  ;;  %v573_v8 = vrot.slane %v571_v60, 5  ;;  %v592_v22 = vshrl.u32 %v7214_v3, 16  ;;  %v595_v23 = vshll.u32 %v7214_v3, 16  ;;  %v7246_v31 = vld [vmem:[%s7099_s22 + $0x4c] sm:$0xf]  ;;  %v603_v39 = vrot.slane %v601_v29, 5 }
  0x67   : > { %5971 = vmatprep.subr.bf16.mxu1 %v6453_v47  ;;  %v556_v11 = vsel %vm7136_vm2, %v551_v1, %v555_v50  ;;  %1040 = vmatprep.mubr.bf16.mxu0 %v7216_v6  ;;  %v6448_v50 = vld [vmem:[%s8895_s1 + $0x160] sm:$0xff]   ;;  %v618_v61 = vrot.slane %v616_v49, 4  ;;  %v625_v60 = vshll.u32 %v7246_v31, 16  ;;  %v621_v0 = vrot.slane %v619_v57, 5  ;;  %v6463_v29 = vld [vmem:[%s8895_s1 + $0xb0] sm:$0xff]  }
  0x68   : > { %5936 = vmatpush3.bf16.msra.mxu0 %v6442_v36  ;;  %v574_v19 = vor.u32 %v573_v8, %v570_v7  ;;  %v7249_v34 = vcombine.low %v556_v11, %v566_v27  ;;  %v594_v36 = vrot.slane %v592_v22, 4  ;;  %v597_v37 = vrot.slane %v595_v23, 5  ;;  %v7281_v7 = vld [vmem:[%s7099_s22 + $0x58] sm:$0xf]  ;;  %v6452_v8 = vld [vmem:[%s8895_s1 + $0x168] sm:$0xff]  }
  0x69   : > { %5937 = vmatprep.subr.bf16.mxu0 %v6444_v59  ;;  %v608_v55 = vor.u32 %v607_v40, %v603_v39  ;;  %v629_v1 = vshrl.u32 %v7246_v31, 16  ;;  %v7277_v2 = vrot.slane %v625_v60, 5  ;;  %v7291_v11 = vcombine.low %v7214_v3, %v7219_v10  ;;  %v7304_v23 = vld [vmem:[%s7099_s22 + $0x64] sm:$0xf]  ;;  %v6464_v60 = vld [vmem:[%s8895_s1 + $0xb8] sm:$0xff]  }
  0x6a   : > { %5972 = vmatpush3.bf16.msra.mxu1 %v6453_v47  ;;  %v575_v35 = vrot.slane %v574_v19, 4  ;;  %v598_v44 = vor.u32 %v597_v37, %v594_v36  ;;  %v7260_v47 = vld [vmem:[%s7099_s22 + $0x50] sm:$0x1]  ;;  %v640_v14 = vshrl.u32 %v7267_v53, 16  ;;  %v622_v19 = vor.u32 %v621_v0, %v618_v61 }
  0x6b   : > { %5973 = vmatprep.subr.bf16.mxu1 %v6455_v58  ;;  %1041 = vmatmul.mubr.bf16.gmra.mrb[4].mxu0 %v7156_v12  ;;  %v609_v63 = vrot.slane %v608_v55, 4  ;;  %v631_v13 = vrot.slane %v629_v1, 4  ;;  %v643_v22 = vshll.u32 %v7267_v53, 16  ;;  %v649_v27 = vshll.u32 %v7281_v7, 16  ;;  %v6460_v55 = vld [vmem:[%s8895_s1 + $0x178] sm:$0xff]  }
  0x6c   : > { %5938 = vmatpush3.bf16.msra.mxu0 %v6444_v59  ;;  %1048 = vmatprep.mubr.bf16.mxu0 %v7249_v34  ;;  %v580_v12 = vsel %vm7136_vm2, %v575_v35, %v579_v9  ;;  %v613_v59 = vrot.slane %v611_v42, 5  ;;  %v6461_v9 = vld [vmem:[%s8895_s1 + $0xa8] sm:$0xff]   ;;  %v653_v28 = vshrl.u32 %v7281_v7, 16  ;;  %v6456_v35 = vld [vmem:[%s8895_s1 + $0x170] sm:$0xff]   ;;  %v623_v40 = vrot.slane %v622_v19, 4 }
  0x6d   : > { %1411 = vmatmul.mubr.bf16.gmra.mrb[4].mxu1 %v7122_v41  ;;  %v587_v41 = vshll.u32 %v7198_v52, 16  ;;  %5939 = vmatprep.subr.bf16.mxu0 %v6446_v16  ;;  %v632_v3 = vor.u32 %v631_v13, %v7277_v2  ;;  %v645_v42 = vrot.slane %v643_v22, 5  ;;  %v7326_v49 = vrot.slane %v649_v27, 5 }
  0x6e   : > { %1418 = vmatprep.mubr.bf16.mxu1 %v7195_v51  ;;  %5974 = vmatpush3.bf16.msra.mxu1 %v6455_v58  ;;  %v599_v58 = vrot.slane %v598_v44, 4 }
  0x6f   : > { %v589_v15 = vrot.slane %v587_v41, 5  ;;  %5975 = vmatprep.subr.bf16.mxu1 %v6457_v18  ;;  %v635_v41 = vshll.u32 %v7260_v47, 16  ;;  %v633_v44 = vrot.slane %v632_v3, 4  ;;  %v7369_v3 = vld [vmem:[%s8895_s1 + $0x200] sm:$0xff]  }
  0x70   : > { %5940 = vmatpush3.bf16.msra.mxu0 %v6446_v16  ;;  %v604_v16 = vsel %vm7136_vm2, %v599_v58, %v603_v39  ;;  %v642_v39 = vrot.slane %v640_v14, 4  ;;  %v7334_v58 = vld [vmem:[%s7099_s22 + $0x68] sm:$0x1] }
  0x71   : > { %v590_v54 = vsel %vm7136_vm2, %v585_v38, %v589_v15  ;;  %5941 = vmatprep.subr.bf16.mxu0 %v6448_v50  ;;  %v7295_v15 = vld [vmem:[%s7099_s22 + $0x60] sm:$0xf]  ;;  %v637_v37 = vrot.slane %v635_v41, 5  ;;  %v7322_v38 = vld [vmem:[%s7099_s22 + $0x5c] sm:$0x1] }
  0x72   : > { %5976 = vmatpush3.bf16.msra.mxu1 %v6457_v18  ;;  %v7274_v62 = vcombine.low %v580_v12, %v590_v54  ;;  %v614_v18 = vsel %vm7136_vm2, %v609_v63, %v613_v59  ;;  %v664_v30 = vshrl.u32 %v7295_v15, 16  ;;  %v673_v12 = vshll.u32 %v7304_v23, 16  ;;  %v7346_v41 = vld [vmem:[%s7099_s22 + $0x6c] sm:$0xf] }
  0x73   : > { %5977 = vmatprep.subr.bf16.mxu1 %v6459_v43  ;;  %1049 = vmatmul.mubr.bf16.gmra.mrb[8].mxu0 %v7216_v6  ;;  %v7318_v36 = vcombine.low %v604_v16, %v614_v18  ;;  %v677_v54 = vshrl.u32 %v7304_v23, 16  ;;  %v659_v57 = vshll.u32 %v7322_v38, 16  ;;  %v7341_v63 = vcombine.low %v7239_v26, %v7246_v31  ;;  %v6465_v16 = vld [vmem:[%s8895_s1 + $0x1c0] sm:$0xff]  }
  0x74   : > { %1056 = vmatprep.mubr.bf16.mxu0 %v7274_v62  ;;  %5942 = vmatpush3.bf16.msra.mxu0 %v6448_v50  ;;  %v655_v50 = vrot.slane %v653_v28, 4  ;;  %v666_v59 = vrot.slane %v664_v30, 4  ;;  %v7343_v0 = vrot.slane %v673_v12, 5  ;;  %v638_v26 = vsel %vm7136_vm2, %v633_v44, %v637_v37  ;;  %v7377_v37 = vld [vmem:[%s7099_s22 + $0x74] sm:$0x1] }
  0x75   : > { %1419 = vmatmul.mubr.bf16.gmra.mrb[8].mxu1 %v7168_v24  ;;  %5943 = vmatprep.subr.bf16.mxu0 %v6452_v8  ;;  %v679_v1 = vrot.slane %v677_v54, 4  ;;  %v646_v13 = vor.u32 %v645_v42, %v642_v39  ;;  %v683_v18 = vshll.u32 %v7334_v58, 16  ;;  %v688_v19 = vshrl.u32 %v7346_v41, 16 }
  0x76   : > { %1426 = vmatprep.mubr.bf16.mxu1 %v7234_v20  ;;  %5978 = vmatpush3.bf16.msra.mxu1 %v6459_v43  ;;  %v667_v43 = vshll.u32 %v7295_v15, 16  ;;  %v656_v14 = vor.u32 %v655_v50, %v7326_v49  ;;  %v691_v22 = vshll.u32 %v7346_v41, 16  ;;  %v1636_v30 = vrot.slane %v7128_v48, 5 }
  0x77   : > { %5979 = vmatprep.subr.bf16.mxu1 %v6461_v9  ;;  %v680_v27 = vor.u32 %v679_v1, %v7343_v0  ;;  %v685_v44 = vrot.slane %v683_v18, 5  ;;  %v690_v50 = vrot.slane %v688_v19, 4  ;;  %v332_v1 = vld [vmem:[%s7099_s22 + $0x78] sm:$0xf] }
  0x78   : > { %5944 = vmatpush3.bf16.msra.mxu0 %v6452_v8  ;;  %v669_v61 = vrot.slane %v667_v43, 5  ;;  %v628_v8 = vsel %vm7136_vm2, %v623_v40, %v7277_v2  ;;  %v647_v40 = vrot.slane %v646_v13, 4  ;;  %v657_v42 = vrot.slane %v656_v14, 4 }
  0x79   : > { %5945 = vmatprep.subr.bf16.mxu0 %v6456_v35  ;;  %v7379_v39 = vcombine.low %v628_v8, %v638_v26  ;;  %v7383_v43 = vcombine.low %v7267_v53, %v7281_v7  ;;  %v693_v54 = vrot.slane %v691_v22, 5  ;;  %v7391_v53 = vld [vmem:[%s7099_s22 + $0x7c] sm:$0xf]  ;;  %v712_v26 = vshrl.u32 %v332_v1, 16 }
  0x7a   : > { %5980 = vmatpush3.bf16.msra.mxu1 %v6461_v9  ;;  %v7353_v9 = vld [vmem:[%s7099_s22 + $0x70] sm:$0xf]  ;;  %v670_v2 = vor.u32 %v669_v61, %v666_v59  ;;  %v715_v13 = vshll.u32 %v332_v1, 16  ;;  %v725_v18 = vshrl.u32 %v7391_v53, 16  ;;  %v7406_v22 = vcombine.low %v7295_v15, %v7304_v23 }
  0x7b   : > { %5981 = vmatprep.subr.bf16.mxu1 %v6463_v29  ;;  %1057 = vmatmul.mubr.bf16.gmra.mrb[12].mxu0 %v7249_v34  ;;  %v697_v28 = vshll.u32 %v7353_v9, 16  ;;  %v714_v15 = vrot.slane %v712_v26, 4 }
  0x7c   : > { %1064 = vmatprep.mubr.bf16.mxu0 %v7318_v36  ;;  %5946 = vmatpush3.bf16.msra.mxu0 %v6456_v35  ;;  %v661_v35 = vrot.slane %v659_v57, 5  ;;  %v671_v12 = vrot.slane %v670_v2, 4  ;;  %v681_v57 = vrot.slane %v680_v27, 4  ;;  %v721_v2 = vshll.u32 %v7391_v53, 16 }
  0x7d   : > { %1427 = vmatmul.mubr.bf16.gmra.mrb[12].mxu1 %v7195_v51  ;;  %5947 = vmatprep.subr.bf16.mxu0 %v6460_v55  ;;  %v699_v59 = vrot.slane %v697_v28, 5 }
  0x7e   : > { %1434 = vmatprep.mubr.bf16.mxu1 %v7291_v11  ;;  %5982 = vmatpush3.bf16.msra.mxu1 %v6463_v29  ;;  %v701_v29 = vshrl.u32 %v7353_v9, 16  ;;  %v662_v8 = vsel %vm7136_vm2, %v657_v42, %v661_v35  ;;  %v686_v35 = vsel %vm7136_vm2, %v681_v57, %v685_v44  ;;  %v717_v42 = vrot.slane %v715_v13, 5 }
  0x7f   : > { %5983 = vmatprep.subr.bf16.mxu1 %v6464_v60  ;;  %v1647_v13 = vrot.slane %v7146_v4, 5 }
  0x80   : > { %5948 = vmatpush3.bf16.msra.mxu0 %v6460_v55  ;;  %v703_v61 = vrot.slane %v701_v29, 4  ;;  %v652_v55 = vsel %vm7136_vm2, %v647_v40, %v7326_v49  ;;  %v7410_v49 = vld [vmem:[%s7099_s22 + $0x80] sm:$0x1]  ;;  %v676_v29 = vsel %vm7136_vm2, %v671_v12, %v7343_v0  ;;  %v1633_v0 = vrot.slane %v7125_v46, 5 }
  0x81   : > { %5599 = vmatprep.subr.bf16.mxu0 %v6465_v16  ;;  %v7400_v14 = vcombine.low %v652_v55, %v662_v8  ;;  %v694_v16 = vor.u32 %v693_v54, %v690_v50  ;;  %v1640_v50 = vrot.slane %v7109_v32, 5  ;;  %v723_v54 = vrot.slane %v721_v2, 5 }
  0x82   : > { %5984 = vmatpush3.bf16.msra.mxu1 %v6464_v60  ;;  %v707_v60 = vshll.u32 %v7377_v37, 16  ;;  %v704_v19 = vor.u32 %v703_v61, %v699_v59  ;;  %v727_v61 = vrot.slane %v725_v18, 4  ;;  %v7421_v55 = vcombine.low %v676_v29, %v686_v35 }
  0x83   : > { %6005 = vmatprep.subr.bf16.mxu1 %v7369_v3  ;;  %1065 = vmatmul.mubr.bf16.gmra.mrb[16].mxu0 %v7274_v62  ;;  %v695_v27 = vrot.slane %v694_v16, 4  ;;  %v7427_v12 = vcombine.low %v7346_v41, %v7353_v9  ;;  %v718_v44 = vor.u32 %v717_v42, %v714_v15  ;;  %v1642_v57 = vrot.slane %v1640_v50, 4  ;;  %v1596_v15 = vld [vmem:[%s7099_s22] sm:$0xe] }
  0x84   : > { %1072 = vmatprep.mubr.bf16.mxu0 %v7379_v39  ;;  %v709_v28 = vrot.slane %v707_v60, 5  ;;  %v705_v40 = vrot.slane %v704_v19, 4  ;;  %v731_v60 = vshll.u32 %v7410_v49, 16  ;;  %v1643_v8 = vrot.slane %v7112_v33, 5 }
  0x85   : > { %1435 = vmatmul.mubr.bf16.gmra.mrb[16].mxu1 %v7234_v20  ;;  %v728_v32 = vor.u32 %v727_v61, %v723_v54  ;;  %v1635_v26 = vrot.slane %v1633_v0, 4  ;;  %v700_v46 = vsel %vm7136_vm2, %v695_v27, %v699_v59  ;;  %v719_v4 = vrot.slane %v718_v44, 4 }
  0x86   : > { %1442 = vmatprep.mubr.bf16.mxu1 %v7341_v63  ;;  %v710_v41 = vsel %vm7136_vm2, %v705_v40, %v709_v28  ;;  %v733_v16 = vrot.slane %v731_v60, 5  ;;  %v1644_v18 = vsel %vm7439_vm5, %v1642_v57, %v1643_v8  ;;  %v1649_v19 = vrot.slane %v1647_v13, 4  ;;  %v1597_v40 = vld [vmem:[%s7099_s22 + $0xc] sm:$0xe]  ;;  %v1598_v60 = vld [vmem:[%s7099_s22 + $0x18] sm:$0xe] }
  0x87   : > { %v729_v2 = vrot.slane %v728_v32, 4  ;;  %v7450_v59 = vsel %vm7439_vm5, %v1635_v26, %v1636_v30  ;;  %v7452_v27 = vcombine.low %v700_v46, %v710_v41  ;;  %v1650_v28 = vrot.slane %v7149_v5, 5  ;;  %v1599_v57 = vld [vmem:[%s7099_s22 + $0x24] sm:$0xe]  ;;  %v1600_v8 = vld [vmem:[%s7099_s22 + $0x30] sm:$0xe] }
  0x88   : > { %v7456_v29 = vcombine.low %v332_v1, %v7391_v53  ;;  %v1654_v35 = vrot.slane %v7162_v21, 5  ;;  %v724_v48 = vsel %vm7136_vm2, %v719_v4, %v723_v54  ;;  %v1661_v1 = vrot.slane %v7187_v45, 5  ;;  %v1601_v46 = vld [vmem:[%s7099_s22 + $0x3c] sm:$0xe] }
  0x89   : > { %v734_v30 = vsel %vm7136_vm2, %v729_v2, %v733_v16  ;;  %v1651_v5 = vsel %vm7439_vm5, %v1649_v19, %v1650_v28  ;;  %v1657_v21 = vrot.slane %v7171_v25, 5  ;;  %v5067_v42 = vrot.slane %v1597_v40, 9  ;;  %v1602_v19 = vld [vmem:[%s7099_s22 + $0x48] sm:$0xe] }
  0x8a   : > { %v5066_v61 = vrot.slane %v1596_v15, 9  ;;  %v1656_v54 = vrot.slane %v1654_v35, 4  ;;  %v5068_v44 = vrot.slane %v1598_v60, 9  ;;  %v7475_v32 = vcombine.low %v724_v48, %v734_v30  ;;  %v1604_v60 = vld [vmem:[%s7099_s22 + $0x60] sm:$0xe] }
  0x8b   : > { %1073 = vmatmul.mubr.bf16.gmra.mrb[20].mxu0 %v7318_v36  ;;  %v1641_v45 = vsel %vm7439_vm5, %v5067_v42, %v1640_v50  ;;  %v5069_v26 = vrot.slane %v1599_v57, 9  ;;  %v1663_v2 = vrot.slane %v1661_v1, 4  ;;  %v5070_v48 = vrot.slane %v1600_v8, 9  ;;  %v1605_v57 = vld [vmem:[%s7099_s22 + $0x6c] sm:$0xe] }
  0x8c   : > { %1080 = vmatprep.mubr.bf16.mxu0 %v7400_v14  ;;  %v7482_v25 = vsel %vm7439_vm5, %v5066_v61, %v1633_v0  ;;  %v7485_v41 = vcombine.low %v1641_v45, %v1644_v18  ;;  %v1648_v16 = vsel %vm7439_vm5, %v5068_v44, %v1647_v13  ;;  %v1658_v0 = vsel %vm7439_vm5, %v1656_v54, %v1657_v21  ;;  %v1603_v13 = vld [vmem:[%s7099_s22 + $0x54] sm:$0xe] }
  0x8d   : > { %1443 = vmatmul.mubr.bf16.gmra.mrb[20].mxu1 %v7291_v11  ;;  %v5078_v4 = vcombine.low %v7482_v25, %v7450_v59  ;;  %v7492_v28 = vcombine.low %v1648_v16, %v1651_v5  ;;  %v1655_v50 = vsel %vm7439_vm5, %v5069_v26, %v1654_v35  ;;  %v1664_v30 = vrot.slane %v7198_v52, 5 }
  0x8e   : > { %1450 = vmatprep.mubr.bf16.mxu1 %v7383_v43  ;;  %v7498_v18 = vcombine.low %v1655_v50, %v1658_v0  ;;  %v5071_v40 = vrot.slane %v1601_v46, 9  ;;  %v1668_v15 = vrot.slane %v7219_v10, 5  ;;  %v1662_v5 = vsel %vm7439_vm5, %v5070_v48, %v1661_v1  ;;  %v1606_v50 = vld [vmem:[%s7099_s22 + $0x78] sm:$0xe] }
  0x8f   : > { %v1671_v42 = vrot.slane %v7227_v17, 5  ;;  %v5072_v61 = vrot.slane %v1602_v19, 9  ;;  %v1675_v35 = vrot.slane %v7246_v31, 5  ;;  %v1665_v21 = vsel %vm7439_vm5, %v1663_v2, %v1664_v30 }
  0x90   : > { %v1669_v52 = vsel %vm7439_vm5, %v5071_v40, %v1668_v15  ;;  %v1670_v10 = vrot.slane %v1668_v15, 4  ;;  %v1678_v54 = vrot.slane %v7260_v47, 5  ;;  %v7515_v1 = vcombine.low %v1662_v5, %v1665_v21 }
  0x91   : > { %v1676_v17 = vsel %vm7439_vm5, %v5072_v61, %v1675_v35  ;;  %v1677_v31 = vrot.slane %v1675_v35, 4  ;;  %v5073_v44 = vrot.slane %v1603_v13, 9  ;;  %v1682_v45 = vrot.slane %v7281_v7, 5 }
  0x92   : > { %v1672_v8 = vsel %vm7439_vm5, %v1670_v10, %v1671_v42  ;;  %v1685_v47 = vrot.slane %v7322_v38, 5  ;;  %v5074_v26 = vrot.slane %v1604_v60, 9  ;;  %v1689_v2 = vrot.slane %v7304_v23, 5 }
  0x93   : > { %1081 = vmatmul.mubr.bf16.gmra.mrb[24].mxu0 %v7379_v39  ;;  %v7526_v46 = vcombine.low %v1669_v52, %v1672_v8  ;;  %v1679_v16 = vsel %vm7439_vm5, %v1677_v31, %v1678_v54  ;;  %v1692_v19 = vrot.slane %v7334_v58, 5  ;;  %v1683_v7 = vsel %vm7439_vm5, %v5073_v44, %v1682_v45  ;;  %v6481_v31 = vld [vmem:[%s8895_s1 + $0x220] sm:$0xff]   ;;  %v6474_v8 = vld [vmem:[%s8895_s1 + $0x198] sm:$0xff]  }
  0x94   : > { %1088 = vmatprep.mubr.bf16.mxu0 %v7421_v55  ;;  %v7533_v0 = vcombine.low %v1676_v17, %v1679_v16  ;;  %v1684_v48 = vrot.slane %v1682_v45, 4  ;;  %v5075_v38 = vrot.slane %v1605_v57, 9  ;;  %v1691_v30 = vrot.slane %v1689_v2, 4  ;;  %v6467_v17 = vld [vmem:[%s8895_s1 + $0x1c8] sm:$0xff]   ;;  %v334_v44 = vld [vmem:[%s7099_s22 + $0x84] sm:$0xf] }
  0x95   : > { %1451 = vmatmul.mubr.bf16.gmra.mrb[24].mxu1 %v7341_v63  ;;  %v1696_v40 = vrot.slane %v7353_v9, 5  ;;  %v1699_v15 = vrot.slane %v7377_v37, 5  ;;  %v5076_v58 = vrot.slane %v1606_v50, 9  ;;  %v1705_v13 = vrot.slane %v7391_v53, 5  ;;  %v6472_v9 = vld [vmem:[%s8895_s1 + $0x208] sm:$0xff]  }
  0x96   : > { %1458 = vmatprep.mubr.bf16.mxu1 %v7406_v22  ;;  %v1686_v23 = vsel %vm7439_vm5, %v1684_v48, %v1685_v47  ;;  %v1708_v5 = vrot.slane %v7410_v49, 5  ;;  %v1693_v61 = vsel %vm7439_vm5, %v1691_v30, %v1692_v19  ;;  %v7604_v57 = vld [vmem:[%s7099_s22 + $0x88] sm:$0xf]  ;;  %v736_v45 = vshrl.u32 %v334_v44, 16  ;;  %v467_v48 = vld [vmem:[%s7099_s22 + $0x8c] sm:$0x1] }
  0x97   : > { %v7545_v42 = vcombine.low %v1683_v7, %v1686_v23  ;;  %v1697_v35 = vsel %vm7439_vm5, %v5075_v38, %v1696_v40  ;;  %v1698_v60 = vrot.slane %v1696_v40, 4  ;;  %v1706_v53 = vsel %vm7439_vm5, %v5076_v58, %v1705_v13  ;;  %v6489_v38 = vld [vmem:[%s8895_s1 + $0x238] sm:$0xff]  }
  0x98   : > { %v1707_v49 = vrot.slane %v1705_v13, 4  ;;  %v739_v47 = vshll.u32 %v334_v44, 16  ;;  %v749_v16 = vshrl.u32 %v7604_v57, 16  ;;  %v738_v19 = vrot.slane %v736_v45, 4 }
  0x99   : > { %v1700_v21 = vsel %vm7439_vm5, %v1698_v60, %v1699_v15  ;;  %v755_v15 = vshll.u32 %v467_v48, 16  ;;  %v1717_v25 = vrot.slane %v467_v48, 5 }
  0x9a   : > { %v7563_v52 = vcombine.low %v1697_v35, %v1700_v21  ;;  %v1709_v10 = vsel %vm7439_vm5, %v1707_v49, %v1708_v5  ;;  %v741_v50 = vrot.slane %v739_v47, 5  ;;  %v751_v7 = vrot.slane %v749_v16, 4  ;;  %v6488_v35 = vld [vmem:[%s8895_s1 + $0x1b8] sm:$0xff]  }
  0x9b   : > { %1089 = vmatmul.mubr.bf16.gmra.mrb[28].mxu0 %v7400_v14  ;;  %v7569_v54 = vcombine.low %v1706_v53, %v1709_v10  ;;  %v757_v13 = vrot.slane %v755_v15, 5  ;;  %v4957_v5 = vcombine.low %v334_v44, %v7604_v57 }
  0x9c   : > { %1096 = vmatprep.mubr.bf16.mxu0 %v7452_v27  ;;  %v742_v30 = vor.u32 %v741_v50, %v738_v19 }
  0x9d   : > { %1459 = vmatmul.mubr.bf16.gmra.mrb[28].mxu1 %v7383_v43 }
  0x9e   : > { %1466 = vmatprep.mubr.bf16.mxu1 %v7427_v12  ;;  %v743_v23 = vrot.slane %v742_v30, 4 }
  0xa3   : > { %1097 = vmatmul.mubr.bf16.gmra.mrb[32].mxu0 %v7421_v55 }
  0xa4   : > { %1104 = vmatprep.mubr.bf16.mxu0 %v7475_v32 }
  0xa5   : > { %1467 = vmatmul.mubr.bf16.gmra.mrb[32].mxu1 %v7406_v22 }
  0xa6   : > { %1474 = vmatprep.mubr.bf16.mxu1 %v7456_v29 }
  0xab   : > { %1105 = vmatmul.mubr.bf16.gmra.mrb[36].mxu0 %v7452_v27 }
  0xac   : > { %5949 = vmatprep.mubr.bf16.mxu0 %v7216_v6  ;;  %v6475_v6 = vld [vmem:[%s8895_s1 + $0x210] sm:$0xff]  }
  0xad   : > { %1475 = vmatmul.mubr.bf16.gmra.mrb[36].mxu1 %v7427_v12 }
  0xae   : > { %5985 = vmatprep.mubr.bf16.mxu1 %v7168_v24  ;;  %v1690_v24 = vsel %vm7439_vm5, %v5074_v26, %v1689_v2  ;;  %v745_v26 = vshll.u32 %v7604_v57, 16  ;;  %v6477_v2 = vld [vmem:[%s8895_s1 + $0x1a0] sm:$0xff]  }
  0xaf   : > { %v7555_v37 = vcombine.low %v1690_v24, %v1693_v61  ;;  %v6480_v24 = vld [vmem:[%s8895_s1 + $0x1a8] sm:$0xff]  }
  0xb3   : > { %5950 = vmatmul.mubr.bf16.vlgmr.msra.gmra.mrb[40].mxu0 %v7249_v34  ;;  %v6469_v34 = vld [vmem:[%s8895_s1 + $0x1d0] sm:$0xff]  }
  0xb4   : > { %5953 = vmatprep.mubr.bf16.mxu0 %v7274_v62  ;;  %v6471_v62 = vld [vmem:[%s8895_s1 + $0x190] sm:$0xff]  }
  0xb5   : > { %5986 = vmatmul.mubr.bf16.vlgmr.msra.gmra.mrb[40].mxu1 %v7195_v51  ;;  %v6466_v51 = vld [vmem:[%s8895_s1 + $0x180] sm:$0xff]  }
  0xb6   : > { %5989 = vmatprep.mubr.bf16.mxu1 %v7234_v20  ;;  %6006 = vmatpush3.bf16.msra.mxu1 %v7369_v3  ;;  %v6478_v20 = vld [vmem:[%s8895_s1 + $0x218] sm:$0xff]   ;;  %v6468_v3 = vld [vmem:[%s8895_s1 + $0x188] sm:$0xff]  }
  0xb7   : > { %6007 = vmatprep.subr.bf16.mxu1 %v6472_v9  ;;  %5600 = vmatpush3.bf16.msra.mxu0 %v6466_v51 }
  0xb8   : > { %5601 = vmatprep.subr.bf16.mxu0 %v6467_v17 }
  0xba   : > { %6008 = vmatpush3.bf16.msra.mxu1 %v6472_v9 }
  0xbb   : > { %6009 = vmatprep.subr.bf16.mxu1 %v6475_v6  ;;  %5602 = vmatpush3.bf16.msra.mxu0 %v6468_v3 }
  0xbc   : > { %5603 = vmatprep.subr.bf16.mxu0 %v6469_v34  ;;  %5954 = vmatmul.mubr.bf16.gmra.mrb[44].mxu0 %v7318_v36  ;;  %v6476_v36 = vld [vmem:[%s8895_s1 + $0x1e0] sm:$0xff]  }
  0xbd   : > { %5990 = vmatmul.mubr.bf16.gmra.mrb[44].mxu1 %v7291_v11  ;;  %v6473_v11 = vld [vmem:[%s8895_s1 + $0x1d8] sm:$0xff]   ;;  %5957 = vmatprep.mubr.bf16.mxu0 %v7379_v39  ;;  %v6486_v39 = vld [vmem:[%s8895_s1 + $0x230] sm:$0xff]  }
  0xbe   : > { %5993 = vmatprep.mubr.bf16.mxu1 %v7341_v63  ;;  %6010 = vmatpush3.bf16.msra.mxu1 %v6475_v6  ;;  %v6483_v63 = vld [vmem:[%s8895_s1 + $0x228] sm:$0xff]  }
  0xbf   : > { %6011 = vmatprep.subr.bf16.mxu1 %v6478_v20  ;;  %5604 = vmatpush3.bf16.msra.mxu0 %v6471_v62 }
  0xc0   : > { %5605 = vmatprep.subr.bf16.mxu0 %v6473_v11 }
  0xc2   : > { %6012 = vmatpush3.bf16.msra.mxu1 %v6478_v20 }
  0xc3   : > { %6013 = vmatprep.subr.bf16.mxu1 %v6481_v31  ;;  %5606 = vmatpush3.bf16.msra.mxu0 %v6474_v8 }
  0xc4   : > { %5607 = vmatprep.subr.bf16.mxu0 %v6476_v36  ;;  %5958 = vmatmul.mubr.bf16.gmra.mrb[48].mxu0 %v7400_v14  ;;  %v6482_v14 = vld [vmem:[%s8895_s1 + $0x1f0] sm:$0xff]  }
  0xc5   : > { %5994 = vmatmul.mubr.bf16.gmra.mrb[48].mxu1 %v7383_v43  ;;  %v747_v43 = vrot.slane %v745_v26, 5  ;;  %5961 = vmatprep.mubr.bf16.mxu0 %v7421_v55  ;;  %v6484_v55 = vld [vmem:[%s8895_s1 + $0x1b0] sm:$0xff]  }
  0xc6   : > { %5997 = vmatprep.mubr.bf16.mxu1 %v7406_v22  ;;  %6014 = vmatpush3.bf16.msra.mxu1 %v6481_v31  ;;  %v6479_v22 = vld [vmem:[%s8895_s1 + $0x1e8] sm:$0xff]  }
  0xc7   : > { %6015 = vmatprep.subr.bf16.mxu1 %v6483_v63  ;;  %5608 = vmatpush3.bf16.msra.mxu0 %v6477_v2  ;;  %v752_v40 = vor.u32 %v751_v7, %v747_v43 }
  0xc8   : > { %5609 = vmatprep.subr.bf16.mxu0 %v6479_v22 }
  0xc9   : > { %v753_v58 = vrot.slane %v752_v40, 4 }
  0xca   : > { %6016 = vmatpush3.bf16.msra.mxu1 %v6483_v63 }
  0xcb   : > { %6017 = vmatprep.subr.bf16.mxu1 %v6486_v39  ;;  %5610 = vmatpush3.bf16.msra.mxu0 %v6480_v24  ;;  %v758_v61 = vsel %vm7136_vm2, %v753_v58, %v757_v13 }
  0xcc   : > { %5611 = vmatprep.subr.bf16.mxu0 %v6482_v14  ;;  %5962 = vmatmul.mubr.bf16.gmra.mrb[52].mxu0 %v7452_v27  ;;  %v1714_v27 = vrot.slane %v7604_v57, 5 }
  0xcd   : > { %5998 = vmatmul.mubr.bf16.gmra.mrb[52].mxu1 %v7427_v12  ;;  %v6487_v12 = vld [vmem:[%s8895_s1 + $0x1f8] sm:$0xff]   ;;  %5965 = vmatprep.mubr.bf16.mxu0 %v7475_v32  ;;  %v1607_v32 = vld [vmem:[%s7099_s22 + $0x84] sm:$0xe] }
  0xce   : > { %6001 = vmatprep.mubr.bf16.mxu1 %v7456_v29  ;;  %6018 = vmatpush3.bf16.msra.mxu1 %v6486_v39  ;;  %v748_v29 = vsel %vm7136_vm2, %v743_v23, %v747_v43  ;;  %v5077_v9 = vrot.slane %v1607_v32, 9  ;;  %v1716_v59 = vrot.slane %v1714_v27, 4 }
  0xcf   : > { %6019 = vmatprep.subr.bf16.mxu1 %v6489_v38  ;;  %5612 = vmatpush3.bf16.msra.mxu0 %v6484_v55  ;;  %v4969_v60 = vcombine.low %v748_v29, %v758_v61 }
  0xd0   : > { %5613 = vmatprep.subr.bf16.mxu0 %v6487_v12 }
  0xd2   : > { %6020 = vmatpush3.bf16.msra.mxu1 %v6489_v38 }
  0xd3   : > { %5614 = vmatpush3.bf16.msra.mxu0 %v6488_v35 }
  0xd4   : > { %5966 = vmatmul.mubr.bf16.gmra.mrb[56].mxu0 %v4969_v60 }
  0xd5   : > { %6002 = vmatmul.mubr.bf16.gmra.mrb[56].mxu1 %v4957_v5  ;;  %1992 = vmatprep.mubr.bf16.mxu0 %v7485_v41 }
  0xd6   : > { %6021 = vmatprep.mubr.bf16.mxu1 %v7492_v28 }
  0xdc   : > { %1993 = vmatmul.mubr.bf16.vlgmr.msra.gmra.mrb[60].mxu0 %v5078_v4  ;;  %v1718_v4 = vsel %vm7439_vm5, %v1716_v59, %v1717_v25 }
  0xdd   : > { %6022 = vmatmul.mubr.bf16.vlgmr.msra.gmra.mrb[40].mxu1 %v7498_v18  ;;  %2000 = vmatprep.mubr.bf16.mxu0 %v7492_v28 }
  0xde   : > { %6025 = vmatprep.mubr.bf16.mxu1 %v7515_v1 }
  0xe4   : > { %2001 = vmatmul.mubr.bf16.gmra.mrb[64].mxu0 %v7485_v41  ;;  %v1715_v41 = vsel %vm7439_vm5, %v5077_v9, %v1714_v27 }
  0xe5   : > { %6026 = vmatmul.mubr.bf16.gmra.mrb[44].mxu1 %v7526_v46  ;;  %2008 = vmatprep.mubr.bf16.mxu0 %v7498_v18  ;;  %v5089_v53 = vcombine.low %v1715_v41, %v1718_v4 }
  0xe6   : > { %6029 = vmatprep.mubr.bf16.mxu1 %v7533_v0 }
  0xec   : > { %2009 = vmatmul.mubr.bf16.gmra.mrb[68].mxu0 %v7492_v28 }
  0xed   : > { %6030 = vmatmul.mubr.bf16.gmra.mrb[48].mxu1 %v7545_v42  ;;  %2016 = vmatprep.mubr.bf16.mxu0 %v7515_v1 }
  0xee   : > { %6033 = vmatprep.mubr.bf16.mxu1 %v7555_v37 }
  0xf4   : > { %2017 = vmatmul.mubr.bf16.gmra.mrb[72].mxu0 %v7498_v18 }
  0xf5   : > { %6034 = vmatmul.mubr.bf16.gmra.mrb[52].mxu1 %v7563_v52  ;;  %2024 = vmatprep.mubr.bf16.mxu0 %v7526_v46 }
  0xf6   : > { %6037 = vmatprep.mubr.bf16.mxu1 %v7569_v54 }
  0xfc   : > { %2025 = vmatmul.mubr.bf16.gmra.mrb[76].mxu0 %v7515_v1 }
  0xfd   : > { %6038 = vmatmul.mubr.bf16.gmra.mrb[56].mxu1 %v5089_v53  ;;  %2032 = vmatprep.mubr.bf16.mxu0 %v7533_v0 }
 0x104   : > { %2033 = vmatmul.mubr.bf16.gmra.mrb[80].mxu0 %v7526_v46 }
 0x105   : > { %2040 = vmatprep.mubr.bf16.mxu0 %v7545_v42 }
 0x10c   : > { %2041 = vmatmul.mubr.bf16.gmra.mrb[84].mxu0 %v7533_v0 }
 0x10d   : > { %2048 = vmatprep.mubr.bf16.mxu0 %v7555_v37 }
 0x114   : > { %2049 = vmatmul.mubr.bf16.gmra.mrb[88].mxu0 %v7545_v42 }
 0x115   : > { %2056 = vmatprep.mubr.bf16.mxu0 %v7563_v52 }
 0x11c   : > { %2057 = vmatmul.mubr.bf16.gmra.mrb[92].mxu0 %v7555_v37 }
 0x11d   : > { %2064 = vmatprep.mubr.bf16.mxu0 %v7569_v54 }
 0x124   : > { %2065 = vmatmul.mubr.bf16.gmra.mrb[96].mxu0 %v7563_v52 }
 0x136   : > { %v5427_v0 = vpop.f32.mrb[0].mxu0 }
 0x137   : > { %v5428_v10 = vpop.f32.mrb[1].mxu0 }
 0x138   : > { %v5521_v28 = vpop.f32.mrb[0].mxu1  ;;  %v7701_v6 = vadd.f32 %v5428_v10, %v5427_v0  ;;  %v5430_v42 = vpop.f32.mrb[2].mxu0 }
 0x139   : > { %v5522_v18 = vpop.f32.mrb[1].mxu1  ;;  %v5431_v17 = vpop.f32.mrb[3].mxu0 }
 0x13a   : > { %v7697_v1 = vadd.f32 %v5522_v18, %v5521_v28  ;;  %v5524_v46 = vpop.f32.mrb[2].mxu1  ;;  %v7703_v20 = vadd.f32 %v5431_v17, %v5430_v42 }
 0x13b   : > { %v5525_v49 = vpop.f32.mrb[3].mxu1 }
 0x13c   : > { %v7699_v21 = vadd.f32 %v5525_v49, %v5524_v46 }
 0x13e   : > { %v5433_v31 = vpop.f32.mrb[4].mxu0 }
 0x13f   : > { %v5434_v62 = vpop.f32.mrb[5].mxu0 }
 0x140   : > { %v5527_v51 = vpop.f32.mrb[4].mxu1  ;;  %v7709_v11 = vadd.f32 %v5434_v62, %v5433_v31  ;;  %v5436_v44 = vpop.f32.mrb[6].mxu0 }
 0x141   : > { %v5528_v37 = vpop.f32.mrb[5].mxu1  ;;  %v5437_v63 = vpop.f32.mrb[7].mxu0 }
 0x142   : > { %v7705_v54 = vadd.f32 %v5528_v37, %v5527_v51  ;;  %v5530_v52 = vpop.f32.mrb[6].mxu1  ;;  %v7711_v45 = vadd.f32 %v5437_v63, %v5436_v44 }
 0x143   : > { %v5531_v3 = vpop.f32.mrb[7].mxu1 }
 0x144   : > { %v7707_v34 = vadd.f32 %v5531_v3, %v5530_v52 }
 0x146   : > { %v5439_v39 = vpop.f32.mrb[8].mxu0 }
 0x147   : > { %v5440_v2 = vpop.f32.mrb[9].mxu0 }
 0x148   : > { %v5533_v57 = vpop.f32.mrb[8].mxu1  ;;  %v7717_v19 = vadd.f32 %v5440_v2, %v5439_v39  ;;  %v5442_v50 = vpop.f32.mrb[10].mxu0 }
 0x149   : > { %v5534_v8 = vpop.f32.mrb[9].mxu1  ;;  %v5443_v7 = vpop.f32.mrb[11].mxu0 }
 0x14a   : > { %v7713_v47 = vadd.f32 %v5534_v8, %v5533_v57  ;;  %v5536_v26 = vpop.f32.mrb[10].mxu1  ;;  %v7719_v48 = vadd.f32 %v5443_v7, %v5442_v50 }
 0x14b   : > { %v5537_v16 = vpop.f32.mrb[11].mxu1 }
 0x14c   : > { %v7715_v36 = vadd.f32 %v5537_v16, %v5536_v26 }
 0x14e   : > { %v5445_v15 = vpop.f32.mrb[12].mxu0 }
 0x14f   : > { %v5446_v14 = vpop.f32.mrb[13].mxu0 }
 0x150   : > { %v5539_v43 = vpop.f32.mrb[12].mxu1  ;;  %v7725_v55 = vadd.f32 %v5446_v14, %v5445_v15  ;;  %v5448_v23 = vpop.f32.mrb[14].mxu0 }
 0x151   : > { %v5540_v22 = vpop.f32.mrb[13].mxu1  ;;  %v5449_v13 = vpop.f32.mrb[15].mxu0 }
 0x152   : > { %v7721_v38 = vadd.f32 %v5540_v22, %v5539_v43  ;;  %v5542_v24 = vpop.f32.mrb[14].mxu1  ;;  %v7727_v12 = vadd.f32 %v5449_v13, %v5448_v23 }
 0x153   : > { %v5543_v30 = vpop.f32.mrb[15].mxu1 }
 0x154   : > { %v7723_v40 = vadd.f32 %v5543_v30, %v5542_v24 }
 0x156   : > { %v5451_v27 = vpop.f32.mrb[16].mxu0 }
 0x157   : > { %v5452_v32 = vpop.f32.mrb[17].mxu0 }
 0x158   : > { %v5545_v58 = vpop.f32.mrb[16].mxu1  ;;  %v7733_v9 = vadd.f32 %v5452_v32, %v5451_v27  ;;  %v5454_v59 = vpop.f32.mrb[18].mxu0 }
 0x159   : > { %v5546_v5 = vpop.f32.mrb[17].mxu1  ;;  %v5455_v41 = vpop.f32.mrb[19].mxu0 }
 0x15a   : > { %v7729_v29 = vadd.f32 %v5546_v5, %v5545_v58  ;;  %v5548_v61 = vpop.f32.mrb[18].mxu1  ;;  %v7735_v53 = vadd.f32 %v5455_v41, %v5454_v59 }
 0x15b   : > { %v5549_v35 = vpop.f32.mrb[19].mxu1 }
 0x15c   : > { %v7731_v60 = vadd.f32 %v5549_v35, %v5548_v61 }
 0x15e   : > { %v5457_v0 = vpop.f32.mrb[20].mxu0 }
 0x15f   : > { %v5458_v10 = vpop.f32.mrb[21].mxu0 }
 0x160   : > { %v5551_v25 = vpop.f32.mrb[20].mxu1  ;;  %v7741_v42 = vadd.f32 %v5458_v10, %v5457_v0  ;;  %v5460_v51 = vpop.f32.mrb[22].mxu0 }
 0x161   : > { %v5552_v4 = vpop.f32.mrb[21].mxu1  ;;  %v5461_v37 = vpop.f32.mrb[23].mxu0 }
 0x162   : > { %v7737_v28 = vadd.f32 %v5552_v4, %v5551_v25  ;;  %v5554_v18 = vpop.f32.mrb[22].mxu1  ;;  %v7743_v3 = vadd.f32 %v5461_v37, %v5460_v51 }
 0x163   : > { %v5555_v46 = vpop.f32.mrb[23].mxu1 }
 0x164   : > { %v7739_v49 = vadd.f32 %v5555_v46, %v5554_v18 }
 0x166   : > { %v5463_v63 = vpop.f32.mrb[24].mxu0 }
 0x167   : > { %v5464_v8 = vpop.f32.mrb[25].mxu0 }
 0x168   : > { %v5557_v17 = vpop.f32.mrb[24].mxu1  ;;  %v7749_v26 = vadd.f32 %v5464_v8, %v5463_v63  ;;  %v5466_v16 = vpop.f32.mrb[26].mxu0 }
 0x169   : > { %v5558_v52 = vpop.f32.mrb[25].mxu1  ;;  %v5467_v2 = vpop.f32.mrb[27].mxu0 }
 0x16a   : > { %v7745_v31 = vadd.f32 %v5558_v52, %v5557_v17  ;;  %v5560_v62 = vpop.f32.mrb[26].mxu1  ;;  %v7751_v43 = vadd.f32 %v5467_v2, %v5466_v16 }
 0x16b   : > { %v5561_v44 = vpop.f32.mrb[27].mxu1 }
 0x16c   : > { %v7747_v57 = vadd.f32 %v5561_v44, %v5560_v62 }
 0x16e   : > { %v5469_v15 = vpop.f32.mrb[28].mxu0 }
 0x16f   : > { %v5470_v14 = vpop.f32.mrb[29].mxu0 }
 0x170   : > { %v5563_v39 = vpop.f32.mrb[28].mxu1  ;;  %v7757_v23 = vadd.f32 %v5470_v14, %v5469_v15  ;;  %v5472_v58 = vpop.f32.mrb[30].mxu0 }
 0x171   : > { %v5564_v50 = vpop.f32.mrb[29].mxu1  ;;  %v5473_v5 = vpop.f32.mrb[31].mxu0 }
 0x172   : > { %v7753_v7 = vadd.f32 %v5564_v50, %v5563_v39  ;;  %v5566_v22 = vpop.f32.mrb[30].mxu1  ;;  %v7759_v35 = vadd.f32 %v5473_v5, %v5472_v58 }
 0x173   : > { %v5567_v24 = vpop.f32.mrb[31].mxu1 }
 0x174   : > { %v7755_v30 = vadd.f32 %v5567_v24, %v5566_v22 }
 0x176   : > { %v5475_v41 = vpop.f32.mrb[32].mxu0 }
 0x177   : > { %v5476_v4 = vpop.f32.mrb[33].mxu0 }
 0x178   : > { %v5569_v13 = vpop.f32.mrb[32].mxu1  ;;  %v7765_v18 = vadd.f32 %v5476_v4, %v5475_v41  ;;  %v5478_v46 = vpop.f32.mrb[34].mxu0 }
 0x179   : > { %v5570_v61 = vpop.f32.mrb[33].mxu1  ;;  %v5479_v10 = vpop.f32.mrb[35].mxu0 }
 0x17a   : > { %v7761_v27 = vadd.f32 %v5570_v61, %v5569_v13  ;;  %v5572_v32 = vpop.f32.mrb[34].mxu1  ;;  %v7767_v17 = vadd.f32 %v5479_v10, %v5478_v46 }
 0x17b   : > { %v5573_v59 = vpop.f32.mrb[35].mxu1 }
 0x17c   : > { %v7763_v25 = vadd.f32 %v5573_v59, %v5572_v32 }
 0x17e   : > { %v5481_v63 = vpop.f32.mrb[36].mxu0 }
 0x17f   : > { %v5482_v8 = vpop.f32.mrb[37].mxu0 }
 0x180   : > { %v5575_v0 = vpop.f32.mrb[36].mxu1  ;;  %v5483_v16 = vadd.f32 %v5482_v8, %v5481_v63  ;;  %v5484_v39 = vpop.f32.mrb[38].mxu0 }
 0x181   : > { %v5576_v51 = vpop.f32.mrb[37].mxu1  ;;  %v5485_v2 = vpop.f32.mrb[39].mxu0 }
 0x182   : > { %v7769_v37 = vadd.f32 %v5576_v51, %v5575_v0  ;;  %v5578_v52 = vpop.f32.mrb[38].mxu1  ;;  %v5486_v50 = vadd.f32 %v5485_v2, %v5484_v39 }
 0x183   : > { %v5579_v62 = vpop.f32.mrb[39].mxu1 }
 0x184   : > { %v7771_v44 = vadd.f32 %v5579_v62, %v5578_v52 }
 0x186   : > { %v5951_v22 = vpop.f32.mrb[40].mxu0 }
 0x187   : > { %v1156_v24 = vadd.f32 %v5951_v22, %v7709_v11  ;;  %v1147_v15 = vpop.f32.mrb[41].mxu0 }
 0x188   : > { %v1148_v14 = vadd.f32 %v7701_v6, %v1147_v15  ;;  %v5952_v58 = vpop.f32.mrb[42].mxu0 }
 0x189   : > { %v7776_v13 = vadd.f32 %v7705_v54, %v1156_v24  ;;  %v1159_v5 = vadd.f32 %v5952_v58, %v7711_v45  ;;  %v1150_v61 = vpop.f32.mrb[43].mxu0 }
 0x18a   : > { %v7780_v32 = vadd.f32 %v7697_v1, %v1148_v14  ;;  %v1151_v59 = vadd.f32 %v7703_v20, %v1150_v61 }
 0x18b   : > { %v7784_v41 = vadd.f32 %v7707_v34, %v1159_v5 }
 0x18c   : > { %v7787_v11 = vadd.f32 %v7699_v21, %v1151_v59 }
 0x18f   : > { %v5955_v4 = vpop.f32.mrb[44].mxu0 }
 0x190   : > { %v1172_v6 = vadd.f32 %v5955_v4, %v7725_v55  ;;  %v1163_v46 = vpop.f32.mrb[45].mxu0 }
 0x191   : > { %v1164_v54 = vadd.f32 %v7717_v19, %v1163_v46  ;;  %v5956_v0 = vpop.f32.mrb[46].mxu0 }
 0x192   : > { %v7792_v45 = vadd.f32 %v7721_v38, %v1172_v6  ;;  %v1175_v1 = vadd.f32 %v5956_v0, %v7727_v12  ;;  %v1166_v10 = vpop.f32.mrb[47].mxu0 }
 0x193   : > { %v7796_v20 = vadd.f32 %v7713_v47, %v1164_v54  ;;  %v1167_v34 = vadd.f32 %v7719_v48, %v1166_v10 }
 0x194   : > { %v7800_v21 = vadd.f32 %v7723_v40, %v1175_v1 }
 0x195   : > { %v7803_v55 = vadd.f32 %v7715_v36, %v1167_v34 }
 0x197   : > { %v5959_v51 = vpop.f32.mrb[48].mxu0 }
 0x198   : > { %v1188_v19 = vadd.f32 %v5959_v51, %v7741_v42  ;;  %v1179_v52 = vpop.f32.mrb[49].mxu0  ;;  %v7865_v51 = vld [vmem:[%s8897_s3] ss:$0 sm:$0xff] }
 0x199   : > { %v1180_v38 = vadd.f32 %v7733_v9, %v1179_v52  ;;  %v5960_v62 = vpop.f32.mrb[50].mxu0 }
 0x19a   : > { %v7808_v12 = vadd.f32 %v7737_v28, %v1188_v19  ;;  %v1191_v47 = vadd.f32 %v5960_v62, %v7743_v3  ;;  %v1182_v63 = vpop.f32.mrb[51].mxu0 }
 0x19b   : > { %v7812_v48 = vadd.f32 %v7729_v29, %v1180_v38  ;;  %v1183_v40 = vadd.f32 %v7735_v53, %v1182_v63 }
 0x19c   : > { %v7816_v36 = vadd.f32 %v7739_v49, %v1191_v47 }
 0x19d   : > { %v7819_v42 = vadd.f32 %v7731_v60, %v1183_v40 }
 0x19f   : > { %v5963_v8 = vpop.f32.mrb[52].mxu0 }
 0x1a0   : > { %v1204_v9 = vadd.f32 %v5963_v8, %v7757_v23  ;;  %v1195_v39 = vpop.f32.mrb[53].mxu0 }
 0x1a1   : > { %v1196_v28 = vadd.f32 %v7749_v26, %v1195_v39  ;;  %v5964_v2 = vpop.f32.mrb[54].mxu0 }
 0x1a2   : > { %v7824_v3 = vadd.f32 %v7753_v7, %v1204_v9  ;;  %v1207_v29 = vadd.f32 %v5964_v2, %v7759_v35  ;;  %v1198_v22 = vpop.f32.mrb[55].mxu0 }
 0x1a3   : > { %v7828_v53 = vadd.f32 %v7745_v31, %v1196_v28  ;;  %v1199_v49 = vadd.f32 %v7751_v43, %v1198_v22 }
 0x1a4   : > { %v7832_v60 = vadd.f32 %v7755_v30, %v1207_v29 }
 0x1a5   : > { %v7835_v23 = vadd.f32 %v7747_v57, %v1199_v49 }
 0x1a7   : > { %v5967_v24 = vpop.f32.mrb[56].mxu0 }
 0x1a8   : > { %v1220_v26 = vadd.f32 %v5967_v24, %v5483_v16  ;;  %v1211_v15 = vpop.f32.mrb[57].mxu0 }
 0x1a9   : > { %v1212_v7 = vadd.f32 %v7765_v18, %v1211_v15  ;;  %v5968_v14 = vpop.f32.mrb[58].mxu0 }
 0x1aa   : > { %v7839_v35 = vadd.f32 %v7769_v37, %v1220_v26  ;;  %v1223_v31 = vadd.f32 %v5968_v14, %v5486_v50  ;;  %v1214_v5 = vpop.f32.mrb[59].mxu0 }
 0x1ab   : > { %v7842_v43 = vadd.f32 %v7761_v27, %v1212_v7  ;;  %v1215_v30 = vadd.f32 %v7767_v17, %v1214_v5 }
 0x1ac   : > { %v7846_v59 = vadd.f32 %v7771_v44, %v1223_v31  ;;  %v7859_v44 = vld [vmem:[%s8896_s2] ss:$0 sm:$0xff] }
 0x1ad   : > { %v7849_v18 = vadd.f32 %v7763_v25, %v1215_v30 }
 0x1af   : > { %v5615_v4 = vpop.f32.mrb[60].mxu0 }
 0x1b0   : > { %v6023_v58 = vpop.f32.mrb[40].mxu1  ;;  %v5616_v6 = vpop.f32.mrb[61].mxu0 }
 0x1b1   : > { %v2107_v61 = vpop.f32.mrb[41].mxu1  ;;  %v5617_v37 = vadd.f32 %v5616_v6, %v5615_v4  ;;  %v5618_v46 = vpop.f32.mrb[62].mxu0 }
 0x1b2   : > { %v6024_v57 = vpop.f32.mrb[42].mxu1  ;;  %v5619_v54 = vpop.f32.mrb[63].mxu0 }
 0x1b3   : > { %v2110_v16 = vpop.f32.mrb[43].mxu1  ;;  %v5620_v27 = vadd.f32 %v5619_v54, %v5618_v46  ;;  %v6143_v1 = vadd.f32 %v5617_v37, %v7780_v32 }
 0x1b5   : > { %v6144_v10 = vadd.f32 %v6143_v1, %v2107_v61  ;;  %v6151_v34 = vadd.f32 %v5620_v27, %v7787_v11 }
 0x1b7   : > { %v2213_v19 = vmul.f32 %v6144_v10, %v7859_v44  ;;  %v6152_v52 = vadd.f32 %v6151_v34, %v2110_v16  ;;  %v5621_v32 = vpop.f32.mrb[64].mxu0 }
 0x1b8   : > { %v7851_v50 = vpop.f32.mrb[44].mxu1  ;;  %v5622_v38 = vpop.f32.mrb[65].mxu0 }
 0x1b9   : > { %v2123_v0 = vpop.f32.mrb[45].mxu1  ;;  %v7869_v62 = vadd.f32 %v7865_v51, %v2213_v19  ;;  %v2214_v47 = vmul.f32 %v6152_v52, %v7859_v44  ;;  %v5623_v63 = vadd.f32 %v5622_v38, %v5621_v32  ;;  %v5624_v40 = vpop.f32.mrb[66].mxu0 }
 0x1ba   : > { %v7854_v17 = vpop.f32.mrb[46].mxu1  ;;  %v5625_v11 = vpop.f32.mrb[67].mxu0 }
 0x1bb   : > { %v2126_v25 = vpop.f32.mrb[47].mxu1  ;;  %v5164_v39 = vmul.f32 -1.442695, %v7869_v62  ;;  %v7878_v28 = vadd.f32 %v7865_v51, %v2214_v47  ;;  %v6139_v2 = vadd.f32 %v5623_v63, %v7776_v13  ;;  %v5626_v29 = vadd.f32 %v5625_v11, %v5624_v40 }
 0x1bd   : > { %6490 = vpow2.f32 %v5164_v39  ;;  %v5165_v24 = vmul.f32 -1.442695, %v7878_v28  ;;  %v6140_v26 = vadd.f32 %v6139_v2, %v6023_v58  ;;  %v6147_v15 = vadd.f32 %v5626_v29, %v7784_v41 }
 0x1bf   : > { %6492 = vpow2.f32 %v5165_v24  ;;  %v2215_v7 = vmul.f32 %v6140_v26, %v7859_v44  ;;  %v6148_v14 = vadd.f32 %v6147_v15, %v6024_v57  ;;  %v5627_v31 = vpop.f32.mrb[68].mxu0 }
 0x1c0   : > { %v7872_v8 = vpop.f32.mrb[48].mxu1  ;;  %v5628_v5 = vpop.f32.mrb[69].mxu0 }
 0x1c1   : > { %v7874_v9 = vpop.f32.mrb[49].mxu1  ;;  %v7889_v61 = vadd.f32 %v7865_v51, %v2215_v7  ;;  %v2216_v13 = vmul.f32 %v6148_v14, %v7859_v44  ;;  %v5629_v30 = vadd.f32 %v5628_v5, %v5627_v31  ;;  %v5630_v16 = vpop.f32.mrb[70].mxu0 }
 0x1c2   : > { %v7881_v22 = vpop.f32.mrb[50].mxu1  ;;  %v5631_v6 = vpop.f32.mrb[71].mxu0 }
 0x1c3   : > { %v7883_v49 = vpop.f32.mrb[51].mxu1  ;;  %v5166_v41 = vmul.f32 -1.442695, %v7889_v61  ;;  %v7898_v58 = vadd.f32 %v7865_v51, %v2216_v13  ;;  %v6159_v57 = vadd.f32 %v5629_v30, %v7796_v20  ;;  %v5632_v46 = vadd.f32 %v5631_v6, %v5630_v16 }
 0x1c5   : > { %6494 = vpow2.f32 %v5166_v41  ;;  %v5167_v1 = vmul.f32 -1.442695, %v7898_v58  ;;  %v6160_v10 = vadd.f32 %v6159_v57, %v2123_v0  ;;  %v6167_v34 = vadd.f32 %v5632_v46, %v7803_v55 }
 0x1c7   : > { %v6491_v19 = vpop.eup %6490  ;;  %6496 = vpow2.f32 %v5167_v1  ;;  %v2217_v52 = vmul.f32 %v6160_v10, %v7859_v44  ;;  %v6168_v32 = vadd.f32 %v6167_v34, %v2126_v25  ;;  %v5633_v38 = vpop.f32.mrb[72].mxu0 }
 0x1c8   : > { %v7892_v4 = vpop.f32.mrb[52].mxu1  ;;  %v2320_v47 = vadd.f32 1.0, %v6491_v19  ;;  %v5634_v63 = vpop.f32.mrb[73].mxu0 }
 0x1c9   : > { %v7894_v37 = vpop.f32.mrb[53].mxu1  ;;  %v6493_v20 = vpop.eup %6492  ;;  %v7909_v40 = vadd.f32 %v7865_v51, %v2217_v52  ;;  %v2218_v11 = vmul.f32 %v6168_v32, %v7859_v44  ;;  %v5635_v39 = vadd.f32 %v5634_v63, %v5633_v38 }
 0x1ca   : > { %v7901_v54 = vpop.f32.mrb[54].mxu1  ;;  %v5636_v2 = vpop.f32.mrb[74].mxu0  ;;  %6498 = vrcp.f32 %v2320_v47  ;;  %v2321_v55 = vadd.f32 1.0, %v6493_v20 }
 0x1cb   : > { %v7903_v27 = vpop.f32.mrb[55].mxu1  ;;  %v5637_v0 = vpop.f32.mrb[75].mxu0  ;;  %v5168_v25 = vmul.f32 -1.442695, %v7909_v40  ;;  %v7918_v26 = vadd.f32 %v7865_v51, %v2218_v11  ;;  %v6155_v15 = vadd.f32 %v5635_v39, %v7792_v45 }
 0x1cc   : > { %v5638_v7 = vadd.f32 %v5637_v0, %v5636_v2  ;;  %6500 = vrcp.f32 %v2321_v55 }
 0x1cd   : > { %6502 = vpow2.f32 %v5168_v25  ;;  %v5169_v5 = vmul.f32 -1.442695, %v7918_v26  ;;  %v6156_v13 = vadd.f32 %v6155_v15, %v7851_v50 }
 0x1ce   : > { %v6163_v30 = vadd.f32 %v5638_v7, %v7800_v21 }
 0x1cf   : > { %v6495_v16 = vpop.eup %6494  ;;  %6504 = vpow2.f32 %v5169_v5  ;;  %v2219_v6 = vmul.f32 %v6156_v13, %v7859_v44  ;;  %v5639_v45 = vpop.f32.mrb[76].mxu0 }
 0x1d0   : > { %v7912_v29 = vpop.f32.mrb[56].mxu1  ;;  %v6164_v41 = vadd.f32 %v6163_v30, %v7854_v17  ;;  %v2322_v57 = vadd.f32 1.0, %v6495_v16  ;;  %v5640_v46 = vpop.f32.mrb[77].mxu0 }
 0x1d1   : > { %v7914_v24 = vpop.f32.mrb[57].mxu1  ;;  %v6497_v1 = vpop.eup %6496  ;;  %v7931_v10 = vadd.f32 %v7865_v51, %v2219_v6  ;;  %v5641_v19 = vadd.f32 %v5640_v46, %v5639_v45 }
 0x1d2   : > { %v7921_v14 = vpop.f32.mrb[58].mxu1  ;;  %v2220_v34 = vmul.f32 %v6164_v41, %v7859_v44  ;;  %v5642_v52 = vpop.f32.mrb[78].mxu0  ;;  %6506 = vrcp.f32 %v2322_v57  ;;  %v2323_v50 = vadd.f32 1.0, %v6497_v1 }
 0x1d3   : > { %v7923_v31 = vpop.f32.mrb[59].mxu1  ;;  %v5643_v21 = vpop.f32.mrb[79].mxu0  ;;  %v5170_v32 = vmul.f32 -1.442695, %v7931_v10  ;;  %v6175_v17 = vadd.f32 %v5641_v19, %v7812_v48 }
 0x1d4   : > { %v7936_v38 = vadd.f32 %v7865_v51, %v2220_v34  ;;  %v5644_v47 = vadd.f32 %v5643_v21, %v5642_v52  ;;  %v6499_v63 = vpop.eup %6498  ;;  %6508 = vrcp.f32 %v2323_v50  ;;  %v2666_v21 = vld [vmem:[#allocation2] sm:$0xf] }
 0x1d5   : > { %v2380_v20 = vmul.f32 %v6499_v63, %v7869_v62  ;;  %6510 = vpow2.f32 %v5170_v32  ;;  %v6176_v39 = vadd.f32 %v6175_v17, %v7874_v9 }
 0x1d6   : > { %v5171_v11 = vmul.f32 -1.442695, %v7936_v38  ;;  %v6501_v2 = vpop.eup %6500  ;;  %v6183_v55 = vadd.f32 %v5644_v47, %v7819_v42 }
 0x1d7   : > { %v6503_v0 = vpop.eup %6502  ;;  %v5370_v25 = vpack.c.bf16 %v2380_v20, %v2380_v20  ;;  %v2381_v48 = vmul.f32 %v6501_v2, %v7878_v28  ;;  %v2221_v15 = vmul.f32 %v6176_v39, %v7859_v44  ;;  %v5645_v7 = vpop.f32.mrb[80].mxu0 }
 0x1d8   : > { %6512 = vpow2.f32 %v5171_v11  ;;  %v2324_v62 = vadd.f32 1.0, %v6503_v0  ;;  %v6184_v5 = vadd.f32 %v6183_v55, %v7883_v49  ;;  %v5646_v9 = vpop.f32.mrb[81].mxu0  ;;  %v6847_v0 = vmov (!%p5204_p8), 0  }
 0x1d9   : > { %v6505_v13 = vpop.eup %6504  ;;  %v2464_v30 = vshrl.u32 %v5370_v25, 16  ;;  %v2467_v16 = vshll.u32 %v5370_v25, 16  ;;  %v5371_v6 = vpack.c.bf16 %v2381_v48, %v2381_v48  ;;  %v7947_v42 = vadd.f32 %v7865_v51, %v2221_v15  ;;  %v5648_v41 = vpop.f32.mrb[82].mxu0 }
 0x1da   : > { %6514 = vrcp.f32 %v2324_v62  ;;  %v2325_v28 = vadd.f32 1.0, %v6505_v13  ;;  %v2222_v45 = vmul.f32 %v6184_v5, %v7859_v44  ;;  %v5647_v57 = vadd.f32 %v5646_v9, %v5645_v7  ;;  %v5649_v46 = vpop.f32.mrb[83].mxu0 }
 0x1db   : > { %v2466_v1 = vrot.slane %v2464_v30, 7  ;;  %v2472_v34 = vshrl.u32 %v5371_v6, 16  ;;  %v2475_v19 = vshll.u32 %v5371_v6, 16  ;;  %v5172_v49 = vmul.f32 -1.442695, %v7947_v42 }
 0x1dc   : > { %v6507_v52 = vpop.eup %6506  ;;  %6516 = vrcp.f32 %v2325_v28  ;;  %v7958_v32 = vadd.f32 %v7865_v51, %v2222_v45  ;;  %v6171_v17 = vadd.f32 %v5647_v57, %v7808_v12  ;;  %v5650_v47 = vadd.f32 %v5649_v46, %v5648_v41  ;;  %v2672_v12 = vld [vmem:[#allocation2 + $0x8] sm:$0x1] }
 0x1dd   : > { %v2469_v63 = vor.u32 %v2467_v16, %v2466_v1  ;;  %v2470_v20 = vrot.slane %v2466_v1, 4  ;;  %v2474_v39 = vrot.slane %v2472_v34, 7  ;;  %v2382_v2 = vmul.f32 %v6507_v52, %v7889_v61 }
 0x1de   : > { %v6509_v55 = vpop.eup %6508  ;;  %6518 = vpow2.f32 %v5172_v49  ;;  %v5173_v25 = vmul.f32 -1.442695, %v7958_v32  ;;  %v6172_v48 = vadd.f32 %v6171_v17, %v7872_v8  ;;  %v6179_v15 = vadd.f32 %v5650_v47, %v7816_v36 }
 0x1df   : > { %v6511_v7 = vpop.eup %6510  ;;  %v2667_v62 = vsel %vm7953_vm11, %v2469_v63, %v2666_v21  ;;  %v2477_v61 = vor.u32 %v2475_v19, %v2474_v39  ;;  %v2479_v5 = vrot.slane %v2474_v39, 4  ;;  %v5372_v9 = vpack.c.bf16 %v2382_v2, %v2382_v2  ;;  %v5651_v13 = vpop.f32.mrb[84].mxu0  ;;  %v2675_v63 = vld [vmem:[#allocation2 + $0xc] sm:$0xf] }
 0x1e0   : > { %2668 = vst [vmem:[#allocation2] sm:$0xf] %v2667_v62  ;;  %v2383_v30 = vmul.f32 %v6509_v55, %v7898_v58  ;;  %v2326_v16 = vadd.f32 1.0, %v6511_v7  ;;  %6520 = vpow2.f32 %v5173_v25  ;;  %v2223_v6 = vmul.f32 %v6172_v48, %v7859_v44  ;;  %v5652_v41 = vpop.f32.mrb[85].mxu0 }
 0x1e1   : > { %v2478_v36 = vsel %vm7970_vm13, %v2470_v20, %v2477_v61  ;;  %v2673_v8 = vsel %vm7963_vm12, %v2479_v5, %v2672_v12  ;;  %v2481_v45 = vshrl.u32 %v5372_v9, 16  ;;  %v2484_v57 = vshll.u32 %v5372_v9, 16  ;;  %v5654_v46 = vpop.f32.mrb[86].mxu0 }
 0x1e2   : > { %v6513_v28 = vpop.eup %6512  ;;  %2669 = vst [vmem:[#allocation2 + $0x4] sm:$0xf] %v2478_v36  ;;  %2674 = vst [vmem:[#allocation2 + $0x8] sm:$0x1] %v2673_v8  ;;  %v5373_v1 = vpack.c.bf16 %v2383_v30, %v2383_v30  ;;  %6522 = vrcp.f32 %v2326_v16  ;;  %v7986_v34 = vadd.f32 %v7865_v51, %v2223_v6  ;;  %v5655_v19 = vpop.f32.mrb[87].mxu0  ;;  %v6180_v52 = vadd.f32 %v6179_v15, %v7881_v22 }
 0x1e3   : > { %v2327_v58 = vadd.f32 1.0, %v6513_v28  ;;  %v2483_v49 = vrot.slane %v2481_v45, 7  ;;  %v5653_v21 = vadd.f32 %v5652_v41, %v5651_v13  ;;  %v5656_v17 = vadd.f32 %v5655_v19, %v5654_v46  ;;  %2804 = vst [vmem:[#allocation2 + $0x4] sm:$0xf] (!%p5204_p8), %v6847_v0 }
 0x1e4   : > { %v6515_v47 = vpop.eup %6514  ;;  %v2489_v20 = vshrl.u32 %v5373_v1, 16  ;;  %v2492_v39 = vshll.u32 %v5373_v1, 16  ;;  %v5174_v2 = vmul.f32 -1.442695, %v7986_v34  ;;  %v2224_v48 = vmul.f32 %v6180_v52, %v7859_v44 }
 0x1e5   : > { %6524 = vrcp.f32 %v2327_v58  ;;  %v2486_v55 = vor.u32 %v2484_v57, %v2483_v49  ;;  %v2487_v12 = vrot.slane %v2483_v49, 4  ;;  %v2384_v25 = vmul.f32 %v6515_v47, %v7909_v40  ;;  %v2679_v40 = vld [vmem:[#allocation2 + $0x14] sm:$0x1] }
 0x1e6   : > { %v6517_v7 = vpop.eup %6516  ;;  %v2491_v62 = vrot.slane %v2489_v20, 7  ;;  %6526 = vpow2.f32 %v5174_v2  ;;  %v6191_v22 = vadd.f32 %v5653_v21, %v7828_v53  ;;  %v6199_v15 = vadd.f32 %v5656_v17, %v7835_v23  ;;  %v2682_v2 = vld [vmem:[#allocation2 + $0x18] sm:$0xf] }
 0x1e7   : > { %v2738_v61 = vld [vmem:[#allocation2] sm:$0x1]  ;;  %v2676_v9 = vsel %vm7953_vm11, %v2486_v55, %v2675_v63  ;;  %v5374_v13 = vpack.c.bf16 %v2384_v25, %v2384_v25  ;;  %v2385_v30 = vmul.f32 %v6517_v7, %v7918_v26  ;;  %v8004_v16 = vadd.f32 %v7865_v51, %v2224_v48  ;;  %v5657_v53 = vpop.f32.mrb[88].mxu0 }
 0x1e8   : > { %v6519_v6 = vpop.eup %6518  ;;  %v2739_v23 = vsel %vm7963_vm12, 0, %v2738_v61  ;;  %2677 = vst [vmem:[#allocation2 + $0xc] sm:$0xf] %v2676_v9  ;;  %v2494_v41 = vor.u32 %v2492_v39, %v2491_v62  ;;  %v2496_v28 = vrot.slane %v2491_v62, 4  ;;  %v6192_v36 = vadd.f32 %v6191_v22, %v7894_v37  ;;  %v5658_v8 = vpop.f32.mrb[89].mxu0 }
 0x1e9   : > { %2740 = vst [vmem:[#allocation2] sm:$0x1] %v2739_v23  ;;  %v2769_v45 = vld [vmem:[#allocation2 + $0x8] sm:$0x1]  ;;  %v2498_v57 = vshrl.u32 %v5374_v13, 16  ;;  %v2501_v46 = vshll.u32 %v5374_v13, 16  ;;  %v5375_v1 = vpack.c.bf16 %v2385_v30, %v2385_v30  ;;  %v5659_v30 = vadd.f32 %v5658_v8, %v5657_v53 }
 0x1ea   : > { %v2328_v26 = vadd.f32 1.0, %v6519_v6  ;;  %v5660_v58 = vpop.f32.mrb[90].mxu0  ;;  %v6521_v19 = vpop.eup %6520  ;;  %v2770_v49 = vsel %vm7996_vm14, 0, %v2769_v45  ;;  %v2495_v52 = vsel %vm7970_vm13, %v2487_v12, %v2494_v41  ;;  %v2680_v21 = vsel %vm7963_vm12, %v2496_v28, %v2679_v40  ;;  %v2686_v9 = vld [vmem:[#allocation2 + $0x20] sm:$0x1] }
 0x1eb   : > { %v5175_v37 = vmul.f32 -1.442695, %v8004_v16  ;;  %v5661_v17 = vpop.f32.mrb[91].mxu0  ;;  %2771 = vst [vmem:[#allocation2 + $0x8] sm:$0x1] %v2770_v49  ;;  %v2500_v47 = vrot.slane %v2498_v57, 7  ;;  %v2225_v25 = vmul.f32 %v6192_v36, %v7859_v44  ;;  %v6200_v12 = vadd.f32 %v6199_v15, %v7903_v27 }
 0x1ec   : > { %2678 = vst [vmem:[#allocation2 + $0x10] sm:$0xf] %v2495_v52  ;;  %2681 = vst [vmem:[#allocation2 + $0x14] sm:$0x1] %v2680_v21  ;;  %v2506_v63 = vshrl.u32 %v5375_v1, 16  ;;  %v2509_v20 = vshll.u32 %v5375_v1, 16  ;;  %6528 = vrcp.f32 %v2328_v26  ;;  %v6523_v39 = vpop.eup %6522 }
 0x1ed   : > { %v2329_v55 = vadd.f32 1.0, %v6521_v19  ;;  %6530 = vpow2.f32 %v5175_v37  ;;  %v2503_v48 = vor.u32 %v2501_v46, %v2500_v47  ;;  %v2504_v7 = vrot.slane %v2500_v47, 4  ;;  %2803 = vst [vmem:[#allocation2] sm:$0xf] (!%p5204_p8), %v6847_v0  ;;  %2805 = vst [vmem:[#allocation2 + $0x8] sm:$0x1] (!%p5204_p8), %v6847_v0 }
 0x1ee   : > { %v2508_v62 = vrot.slane %v2506_v63, 7  ;;  %v2386_v22 = vmul.f32 %v6523_v39, %v7931_v10  ;;  %v8020_v40 = vadd.f32 %v7865_v51, %v2225_v25  ;;  %v2226_v13 = vmul.f32 %v6200_v12, %v7859_v44 }
 0x1ef   : > { %v6525_v61 = vpop.eup %6524  ;;  %6532 = vrcp.f32 %v2329_v55  ;;  %v2741_v6 = vld [vmem:[#allocation2 + $0xc] sm:$0x1]  ;;  %v2683_v23 = vsel %vm7953_vm11, %v2503_v48, %v2682_v2  ;;  %v5663_v28 = vpop.f32.mrb[92].mxu0  ;;  %v6187_v39 = vadd.f32 %v5659_v30, %v7824_v3  ;;  %v5662_v2 = vadd.f32 %v5661_v17, %v5660_v58  ;;  %v2689_v55 = vld [vmem:[#allocation2 + $0x24] sm:$0xf] }
 0x1f0   : > { %v2511_v41 = vor.u32 %v2509_v20, %v2508_v62  ;;  %v2513_v27 = vrot.slane %v2508_v62, 4  ;;  %v5376_v15 = vpack.c.bf16 %v2386_v22, %v2386_v22  ;;  %v6527_v36 = vpop.eup %6526  ;;  %v2742_v10 = vsel %vm7963_vm12, 0, %v2741_v6  ;;  %2684 = vst [vmem:[#allocation2 + $0x18] sm:$0xf] %v2683_v23  ;;  %v5664_v53 = vpop.f32.mrb[93].mxu0 }
 0x1f1   : > { %v2387_v45 = vmul.f32 %v6525_v61, %v7936_v38  ;;  %v5176_v57 = vmul.f32 -1.442695, %v8020_v40  ;;  %v8030_v46 = vadd.f32 %v7865_v51, %v2226_v13  ;;  %2743 = vst [vmem:[#allocation2 + $0xc] sm:$0x1] %v2742_v10  ;;  %v5666_v49 = vpop.f32.mrb[94].mxu0  ;;  %v2330_v21 = vadd.f32 1.0, %v6527_v36 }
 0x1f2   : > { %v2512_v8 = vsel %vm7970_vm13, %v2504_v7, %v2511_v41  ;;  %v2687_v1 = vsel %vm7963_vm12, %v2513_v27, %v2686_v9  ;;  %v2515_v26 = vshrl.u32 %v5376_v15, 16  ;;  %v2518_v19 = vshll.u32 %v5376_v15, 16  ;;  %v5667_v47 = vpop.f32.mrb[95].mxu0  ;;  %v2693_v30 = vld [vmem:[#allocation2 + $0x2c] sm:$0x1] }
 0x1f3   : > { %v2772_v52 = vld [vmem:[#allocation2 + $0x14] sm:$0x1]  ;;  %2685 = vst [vmem:[#allocation2 + $0x1c] sm:$0xf] %v2512_v8  ;;  %2688 = vst [vmem:[#allocation2 + $0x20] sm:$0x1] %v2687_v1  ;;  %v5377_v38 = vpack.c.bf16 %v2387_v45, %v2387_v45  ;;  %6534 = vpow2.f32 %v5176_v57  ;;  %v5665_v48 = vadd.f32 %v5664_v53, %v5663_v28  ;;  %v6188_v61 = vadd.f32 %v6187_v39, %v7892_v4 }
 0x1f4   : > { %v5177_v37 = vmul.f32 -1.442695, %v8030_v46  ;;  %v2773_v63 = vsel %vm7996_vm14, 0, %v2772_v52  ;;  %v2517_v20 = vrot.slane %v2515_v26, 7  ;;  %6536 = vrcp.f32 %v2330_v21 }
 0x1f5   : > { %2774 = vst [vmem:[#allocation2 + $0x14] sm:$0x1] %v2773_v63  ;;  %v2523_v25 = vshrl.u32 %v5377_v38, 16  ;;  %v2526_v12 = vshll.u32 %v5377_v38, 16  ;;  %v6195_v23 = vadd.f32 %v5662_v2, %v7832_v60  ;;  %v6207_v3 = vadd.f32 %v5665_v48, %v7842_v43 }
 0x1f6   : > { %v6529_v7 = vpop.eup %6528  ;;  %v2520_v62 = vor.u32 %v2518_v19, %v2517_v20  ;;  %v2521_v22 = vrot.slane %v2517_v20, 4  ;;  %6538 = vpow2.f32 %v5177_v37  ;;  %v2227_v27 = vmul.f32 %v6188_v61, %v7859_v44 }
 0x1f7   : > { %v6531_v9 = vpop.eup %6530  ;;  %v2525_v13 = vrot.slane %v2523_v25, 7  ;;  %v2388_v6 = vmul.f32 %v6529_v7, %v7947_v42  ;;  %v2744_v58 = vld [vmem:[#allocation2 + $0x18] sm:$0x1]  ;;  %v5668_v15 = vadd.f32 %v5667_v47, %v5666_v49  ;;  %v5669_v28 = vpop.f32.mrb[96].mxu0  ;;  %v6196_v8 = vadd.f32 %v6195_v23, %v7901_v54 }
 0x1f8   : > { %v2690_v17 = vsel %vm7953_vm11, %v2520_v62, %v2689_v55  ;;  %v2331_v41 = vadd.f32 1.0, %v6531_v9  ;;  %v2745_v4 = vsel %vm7963_vm12, 0, %v2744_v58  ;;  %v5670_v45 = vpop.f32.mrb[97].mxu0  ;;  %v8051_v53 = vadd.f32 %v7865_v51, %v2227_v27  ;;  %v2696_v55 = vld [vmem:[#allocation2 + $0x30] sm:$0xf] }
 0x1f9   : > { %v6533_v36 = vpop.eup %6532  ;;  %2691 = vst [vmem:[#allocation2 + $0x24] sm:$0xf] %v2690_v17  ;;  %v2528_v42 = vor.u32 %v2526_v12, %v2525_v13  ;;  %v2530_v10 = vrot.slane %v2525_v13, 4  ;;  %v5378_v60 = vpack.c.bf16 %v2388_v6, %v2388_v6  ;;  %2746 = vst [vmem:[#allocation2 + $0x18] sm:$0x1] %v2745_v4  ;;  %v5672_v1 = vpop.f32.mrb[98].mxu0  ;;  %v2228_v54 = vmul.f32 %v6196_v8, %v7859_v44 }
 0x1fa   : > { %v2775_v43 = vld [vmem:[#allocation2 + $0x20] sm:$0x1]  ;;  %v2389_v57 = vmul.f32 %v6533_v36, %v7958_v32  ;;  %6540 = vrcp.f32 %v2331_v41  ;;  %v5673_v38 = vpop.f32.mrb[99].mxu0  ;;  %v5178_v37 = vmul.f32 -1.442695, %v8051_v53  ;;  %v6208_v20 = vadd.f32 %v6207_v3, %v7914_v24 }
 0x1fb   : > { %v2776_v26 = vsel %vm7996_vm14, 0, %v2775_v43  ;;  %v2529_v19 = vsel %vm7970_vm13, %v2521_v22, %v2528_v42  ;;  %v2694_v49 = vsel %vm7963_vm12, %v2530_v10, %v2693_v30  ;;  %v2532_v52 = vshrl.u32 %v5378_v60, 16  ;;  %v2700_v17 = vld [vmem:[#allocation2 + $0x38] sm:$0x1] }
 0x1fc   : > { %2777 = vst [vmem:[#allocation2 + $0x20] sm:$0x1] %v2776_v26  ;;  %2692 = vst [vmem:[#allocation2 + $0x28] sm:$0xf] %v2529_v19  ;;  %v2535_v32 = vshll.u32 %v5378_v60, 16  ;;  %v5379_v21 = vpack.c.bf16 %v2389_v57, %v2389_v57  ;;  %v6215_v39 = vadd.f32 %v5668_v15, %v7849_v18  ;;  %v5671_v2 = vadd.f32 %v5670_v45, %v5669_v28 }
 0x1fd   : > { %2695 = vst [vmem:[#allocation2 + $0x2c] sm:$0x1] %v2694_v49  ;;  %v6535_v47 = vpop.eup %6534  ;;  %v2534_v63 = vrot.slane %v2532_v52, 7  ;;  %6542 = vpow2.f32 %v5178_v37  ;;  %v8065_v61 = vadd.f32 %v7865_v51, %v2228_v54  ;;  %v2229_v9 = vmul.f32 %v6208_v20, %v7859_v44 }
 0x1fe   : > { %v2540_v25 = vshrl.u32 %v5379_v21, 16  ;;  %v2543_v12 = vshll.u32 %v5379_v21, 16  ;;  %v2332_v48 = vadd.f32 1.0, %v6535_v47  ;;  %v6537_v7 = vpop.eup %6536  ;;  %v6216_v18 = vadd.f32 %v6215_v39, %v7923_v31 }
 0x1ff   : > { %v2537_v62 = vor.u32 %v2535_v32, %v2534_v63  ;;  %v2538_v22 = vrot.slane %v2534_v63, 4  ;;  %v2390_v24 = vmul.f32 %v6537_v7, %v7986_v34  ;;  %v5179_v41 = vmul.f32 -1.442695, %v8065_v61 }
 0x200   : > { %v6539_v13 = vpop.eup %6538  ;;  %v2747_v6 = vld [vmem:[#allocation2 + $0x24] sm:$0x1]  ;;  %v2542_v23 = vrot.slane %v2540_v25, 7  ;;  %6544 = vrcp.f32 %v2332_v48  ;;  %v8076_v34 = vadd.f32 %v7865_v51, %v2229_v9  ;;  %v2230_v31 = vmul.f32 %v6216_v18, %v7859_v44 }
 0x201   : > { %v2748_v3 = vsel %vm7963_vm12, 0, %v2747_v6  ;;  %v2697_v58 = vsel %vm7953_vm11, %v2537_v62, %v2696_v55  ;;  %v2333_v30 = vadd.f32 1.0, %v6539_v13  ;;  %v5380_v28 = vpack.c.bf16 %v2390_v24, %v2390_v24  ;;  %v2707_v48 = vld [vmem:[#allocation2 + $0x44] sm:$0x1] }
 0x202   : > { %2749 = vst [vmem:[#allocation2 + $0x24] sm:$0x1] %v2748_v3  ;;  %2698 = vst [vmem:[#allocation2 + $0x30] sm:$0xf] %v2697_v58  ;;  %v2545_v27 = vor.u32 %v2543_v12, %v2542_v23  ;;  %v2547_v15 = vrot.slane %v2542_v23, 4  ;;  %v6203_v4 = vadd.f32 %v5671_v2, %v7839_v35  ;;  %v5674_v42 = vadd.f32 %v5673_v38, %v5672_v1 }
 0x203   : > { %6546 = vrcp.f32 %v2333_v30  ;;  %v2549_v57 = vshrl.u32 %v5380_v28, 16  ;;  %v2552_v8 = vshll.u32 %v5380_v28, 16  ;;  %v5180_v35 = vmul.f32 -1.442695, %v8076_v34  ;;  %v2703_v38 = vld [vmem:[#allocation2 + $0x3c] sm:$0xf] }
 0x204   : > { %v2778_v36 = vld [vmem:[#allocation2 + $0x2c] sm:$0x1]  ;;  %v6541_v10 = vpop.eup %6540  ;;  %v2546_v45 = vsel %vm7970_vm13, %v2538_v22, %v2545_v27  ;;  %v2701_v43 = vsel %vm7963_vm12, %v2547_v15, %v2700_v17  ;;  %6548 = vpow2.f32 %v5179_v41  ;;  %v8089_v19 = vadd.f32 %v7865_v51, %v2230_v31 }
 0x205   : > { %v2779_v60 = vsel %vm7996_vm14, 0, %v2778_v36  ;;  %2699 = vst [vmem:[#allocation2 + $0x34] sm:$0xf] %v2546_v45  ;;  %2702 = vst [vmem:[#allocation2 + $0x38] sm:$0x1] %v2701_v43  ;;  %v2391_v26 = vmul.f32 %v6541_v10, %v8004_v16  ;;  %v2551_v1 = vrot.slane %v2549_v57, 7  ;;  %v6204_v49 = vadd.f32 %v6203_v4, %v7912_v29 }
 0x206   : > { %2780 = vst [vmem:[#allocation2 + $0x2c] sm:$0x1] %v2779_v60  ;;  %v6211_v52 = vadd.f32 %v5674_v42, %v7846_v59  ;;  %6550 = vpow2.f32 %v5180_v35  ;;  %v5181_v54 = vmul.f32 -1.442695, %v8089_v19  ;;  %v2714_v35 = vld [vmem:[#allocation2 + $0x50] sm:$0x1] }
 0x207   : > { %v5381_v32 = vpack.c.bf16 %v2391_v26, %v2391_v26  ;;  %v6543_v21 = vpop.eup %6542  ;;  %v2554_v37 = vor.u32 %v2552_v8, %v2551_v1  ;;  %v2231_v16 = vmul.f32 %v6204_v49, %v7859_v44  ;;  %v2555_v22 = vrot.slane %v2551_v1, 4 }
 0x208   : > { %v2334_v39 = vadd.f32 1.0, %v6543_v21  ;;  %v6212_v2 = vadd.f32 %v6211_v52, %v7921_v14  ;;  %6552 = vpow2.f32 %v5181_v54 }
 0x209   : > { %v2750_v47 = vld [vmem:[#allocation2 + $0x30] sm:$0x1]  ;;  %v2557_v63 = vshrl.u32 %v5381_v32, 16  ;;  %v2560_v20 = vshll.u32 %v5381_v32, 16  ;;  %v2704_v59 = vsel %vm7953_vm11, %v2554_v37, %v2703_v38  ;;  %v8101_v25 = vadd.f32 %v7865_v51, %v2231_v16 }
 0x20a   : > { %v6545_v55 = vpop.eup %6544  ;;  %v2751_v29 = vsel %vm7963_vm12, 0, %v2750_v47  ;;  %2705 = vst [vmem:[#allocation2 + $0x3c] sm:$0xf] %v2704_v59  ;;  %6554 = vrcp.f32 %v2334_v39  ;;  %v2232_v14 = vmul.f32 %v6212_v2, %v7859_v44 }
 0x20b   : > { %2752 = vst [vmem:[#allocation2 + $0x30] sm:$0x1] %v2751_v29  ;;  %v2559_v12 = vrot.slane %v2557_v63, 7  ;;  %v2392_v7 = vmul.f32 %v6545_v55, %v8020_v40  ;;  %v5182_v9 = vmul.f32 -1.442695, %v8101_v25 }
 0x20c   : > { %v2781_v62 = vld [vmem:[#allocation2 + $0x38] sm:$0x1]  ;;  %v8110_v40 = vadd.f32 %v7865_v51, %v2232_v14  ;;  %v2710_v51 = vld [vmem:[#allocation2 + $0x48] sm:$0xf] }
 0x20d   : > { %v6547_v13 = vpop.eup %6546  ;;  %v2782_v6 = vsel %vm7996_vm14, 0, %v2781_v62  ;;  %v2562_v23 = vor.u32 %v2560_v20, %v2559_v12  ;;  %v2564_v24 = vrot.slane %v2559_v12, 4  ;;  %v5382_v18 = vpack.c.bf16 %v2392_v7, %v2392_v7  ;;  %v2717_v12 = vld [vmem:[#allocation2 + $0x54] sm:$0xf] }
 0x20e   : > { %2783 = vst [vmem:[#allocation2 + $0x38] sm:$0x1] %v2782_v6  ;;  %v2393_v3 = vmul.f32 %v6547_v13, %v8030_v46  ;;  %6556 = vpow2.f32 %v5182_v9  ;;  %v6549_v58 = vpop.eup %6548  ;;  %v5183_v15 = vmul.f32 -1.442695, %v8110_v40 }
 0x20f   : > { %v2563_v44 = vsel %vm7970_vm13, %v2555_v22, %v2562_v23  ;;  %v2708_v17 = vsel %vm7963_vm12, %v2564_v24, %v2707_v48  ;;  %v2566_v30 = vshrl.u32 %v5382_v18, 16  ;;  %v2335_v27 = vadd.f32 1.0, %v6549_v58 }
 0x210   : > { %2706 = vst [vmem:[#allocation2 + $0x40] sm:$0xf] %v2563_v44  ;;  %2709 = vst [vmem:[#allocation2 + $0x44] sm:$0x1] %v2708_v17  ;;  %v5383_v41 = vpack.c.bf16 %v2393_v3, %v2393_v3  ;;  %v6551_v28 = vpop.eup %6550  ;;  %v2569_v36 = vshll.u32 %v5382_v18, 16 }
 0x211   : > { %v2568_v46 = vrot.slane %v2566_v30, 7  ;;  %v2753_v31 = vld [vmem:[#allocation2 + $0x3c] sm:$0x1]  ;;  %6558 = vrcp.f32 %v2335_v27  ;;  %v2336_v42 = vadd.f32 1.0, %v6551_v28 }
 0x212   : > { %v2574_v4 = vshrl.u32 %v5383_v41, 16  ;;  %v2754_v10 = vsel %vm7963_vm12, 0, %v2753_v31  ;;  %6560 = vpow2.f32 %v5183_v15  ;;  %v6553_v45 = vpop.eup %6552  ;;  %v2577_v57 = vshll.u32 %v5383_v41, 16 }
 0x213   : > { %v2571_v60 = vor.u32 %v2569_v36, %v2568_v46  ;;  %2755 = vst [vmem:[#allocation2 + $0x3c] sm:$0x1] %v2754_v10  ;;  %6562 = vrcp.f32 %v2336_v42  ;;  %v2337_v1 = vadd.f32 1.0, %v6553_v45  ;;  %v2572_v49 = vrot.slane %v2568_v46, 4 }
 0x214   : > { %v2576_v43 = vrot.slane %v2574_v4, 7  ;;  %v6555_v8 = vpop.eup %6554 }
 0x215   : > { %v2711_v26 = vsel %vm7953_vm11, %v2571_v60, %v2710_v51  ;;  %v2394_v32 = vmul.f32 %v6555_v8, %v8051_v53  ;;  %6564 = vrcp.f32 %v2337_v1  ;;  %v2724_v51 = vld [vmem:[#allocation2 + $0x60] sm:$0xf] }
 0x216   : > { %2712 = vst [vmem:[#allocation2 + $0x48] sm:$0xf] %v2711_v26  ;;  %v2579_v52 = vor.u32 %v2577_v57, %v2576_v43  ;;  %v2581_v38 = vrot.slane %v2576_v43, 4 }
 0x217   : > { %v2784_v21 = vld [vmem:[#allocation2 + $0x44] sm:$0x1]  ;;  %v5384_v63 = vpack.c.bf16 %v2394_v32, %v2394_v32 }
 0x218   : > { %v6557_v37 = vpop.eup %6556  ;;  %v2785_v54 = vsel %vm7996_vm14, 0, %v2784_v21  ;;  %v2580_v16 = vsel %vm7970_vm13, %v2572_v49, %v2579_v52  ;;  %v2715_v47 = vsel %vm7963_vm12, %v2581_v38, %v2714_v35 }
 0x219   : > { %2786 = vst [vmem:[#allocation2 + $0x44] sm:$0x1] %v2785_v54  ;;  %2713 = vst [vmem:[#allocation2 + $0x4c] sm:$0xf] %v2580_v16  ;;  %v2338_v20 = vadd.f32 1.0, %v6557_v37  ;;  %v2583_v39 = vshrl.u32 %v5384_v63, 16 }
 0x21a   : > { %2716 = vst [vmem:[#allocation2 + $0x50] sm:$0x1] %v2715_v47  ;;  %v2586_v55 = vshll.u32 %v5384_v63, 16  ;;  %v2731_v63 = vld [vmem:[#allocation2 + $0x6c] sm:$0xf] }
 0x21b   : > { %6566 = vrcp.f32 %v2338_v20  ;;  %v6559_v53 = vpop.eup %6558  ;;  %v2585_v2 = vrot.slane %v2583_v39, 7 }
 0x21c   : > { %v6561_v29 = vpop.eup %6560  ;;  %v2395_v48 = vmul.f32 %v6559_v53, %v8065_v61 }
 0x21d   : > { %v2756_v59 = vld [vmem:[#allocation2 + $0x48] sm:$0x1]  ;;  %v6563_v7 = vpop.eup %6562  ;;  %v2588_v62 = vor.u32 %v2586_v55, %v2585_v2  ;;  %v2339_v22 = vadd.f32 1.0, %v6561_v29  ;;  %v2589_v41 = vrot.slane %v2585_v2, 4 }
 0x21e   : > { %v2757_v14 = vsel %vm7963_vm12, 0, %v2756_v59  ;;  %v5385_v9 = vpack.c.bf16 %v2395_v48, %v2395_v48  ;;  %v2396_v13 = vmul.f32 %v6563_v7, %v8076_v34  ;;  %v2721_v34 = vld [vmem:[#allocation2 + $0x5c] sm:$0x1]  ;;  %v2735_v7 = vld [vmem:[#allocation2 + $0x74] sm:$0x1] }
 0x21f   : > { %2758 = vst [vmem:[#allocation2 + $0x48] sm:$0x1] %v2757_v14  ;;  %v2718_v23 = vsel %vm7953_vm11, %v2588_v62, %v2717_v12  ;;  %6568 = vrcp.f32 %v2339_v22  ;;  %v6565_v24 = vpop.eup %6564 }
 0x220   : > { %2719 = vst [vmem:[#allocation2 + $0x54] sm:$0xf] %v2718_v23  ;;  %v2591_v61 = vshrl.u32 %v5385_v9, 16  ;;  %v5386_v3 = vpack.c.bf16 %v2396_v13, %v2396_v13  ;;  %v2397_v58 = vmul.f32 %v6565_v24, %v8089_v19  ;;  %v2594_v17 = vshll.u32 %v5385_v9, 16 }
 0x221   : > { %v2787_v6 = vld [vmem:[#allocation2 + $0x50] sm:$0x1] }
 0x222   : > { %v2788_v18 = vsel %vm7996_vm14, 0, %v2787_v6  ;;  %v2593_v44 = vrot.slane %v2591_v61, 7  ;;  %v2600_v30 = vshrl.u32 %v5386_v3, 16  ;;  %v5387_v27 = vpack.c.bf16 %v2397_v58, %v2397_v58 }
 0x223   : > { %2789 = vst [vmem:[#allocation2 + $0x50] sm:$0x1] %v2788_v18  ;;  %v2603_v31 = vshll.u32 %v5386_v3, 16 }
 0x224   : > { %v2596_v28 = vor.u32 %v2594_v17, %v2593_v44  ;;  %v2598_v46 = vrot.slane %v2593_v44, 4  ;;  %v2602_v36 = vrot.slane %v2600_v30, 7  ;;  %v2608_v4 = vshrl.u32 %v5387_v27, 16 }
 0x225   : > { %v6567_v15 = vpop.eup %6566  ;;  %v2611_v57 = vshll.u32 %v5387_v27, 16 }
 0x226   : > { %v2398_v42 = vmul.f32 %v6567_v15, %v8101_v25  ;;  %v2597_v10 = vsel %vm7970_vm13, %v2589_v41, %v2596_v28  ;;  %v2722_v19 = vsel %vm7963_vm12, %v2598_v46, %v2721_v34  ;;  %v2605_v60 = vor.u32 %v2603_v31, %v2602_v36  ;;  %v2728_v25 = vld [vmem:[#allocation2 + $0x68] sm:$0x1] }
 0x227   : > { %v2759_v45 = vld [vmem:[#allocation2 + $0x54] sm:$0x1]  ;;  %2720 = vst [vmem:[#allocation2 + $0x58] sm:$0xf] %v2597_v10  ;;  %2723 = vst [vmem:[#allocation2 + $0x5c] sm:$0x1] %v2722_v19 }
 0x228   : > { %v2610_v43 = vrot.slane %v2608_v4, 7  ;;  %v5388_v8 = vpack.c.bf16 %v2398_v42, %v2398_v42  ;;  %v2760_v26 = vsel %vm7963_vm12, 0, %v2759_v45  ;;  %v2725_v35 = vsel %vm7953_vm11, %v2605_v60, %v2724_v51 }
 0x229   : > { %v6569_v1 = vpop.eup %6568  ;;  %2761 = vst [vmem:[#allocation2 + $0x54] sm:$0x1] %v2760_v26  ;;  %v2606_v49 = vrot.slane %v2602_v36, 4  ;;  %2726 = vst [vmem:[#allocation2 + $0x60] sm:$0xf] %v2725_v35 }
 0x22a   : > { %v2613_v52 = vor.u32 %v2611_v57, %v2610_v43  ;;  %v2615_v38 = vrot.slane %v2610_v43, 4  ;;  %v2617_v32 = vshrl.u32 %v5388_v8, 16  ;;  %v2399_v21 = vmul.f32 %v6569_v1, %v8110_v40 }
 0x22b   : > { %v2620_v47 = vshll.u32 %v5388_v8, 16 }
 0x22c   : > { %v2614_v37 = vsel %vm7970_vm13, %v2606_v49, %v2613_v52  ;;  %v2729_v54 = vsel %vm7963_vm12, %v2615_v38, %v2728_v25  ;;  %v2619_v16 = vrot.slane %v2617_v32, 7  ;;  %v5389_v20 = vpack.c.bf16 %v2399_v21, %v2399_v21 }
 0x22d   : > { %2727 = vst [vmem:[#allocation2 + $0x64] sm:$0xf] %v2614_v37  ;;  %2730 = vst [vmem:[#allocation2 + $0x68] sm:$0x1] %v2729_v54 }
 0x22e   : > { %v2622_v39 = vor.u32 %v2620_v47, %v2619_v16  ;;  %v2790_v53 = vld [vmem:[#allocation2 + $0x5c] sm:$0x1]  ;;  %v2625_v2 = vshrl.u32 %v5389_v20, 16  ;;  %v2628_v12 = vshll.u32 %v5389_v20, 16  ;;  %v2623_v14 = vrot.slane %v2619_v16, 4 }
 0x22f   : > { %v2791_v55 = vsel %vm7996_vm14, 0, %v2790_v53 }
 0x230   : > { %v2732_v40 = vsel %vm7953_vm11, %v2622_v39, %v2731_v63  ;;  %2792 = vst [vmem:[#allocation2 + $0x5c] sm:$0x1] %v2791_v55  ;;  %v2762_v29 = vld [vmem:[#allocation2 + $0x60] sm:$0x1]  ;;  %v2627_v59 = vrot.slane %v2625_v2, 7 }
 0x231   : > { %2733 = vst [vmem:[#allocation2 + $0x6c] sm:$0xf] %v2732_v40  ;;  %v2763_v48 = vsel %vm7963_vm12, 0, %v2762_v29 }
 0x232   : > { %2764 = vst [vmem:[#allocation2 + $0x60] sm:$0x1] %v2763_v48  ;;  %v2630_v62 = vor.u32 %v2628_v12, %v2627_v59  ;;  %v2632_v22 = vrot.slane %v2627_v59, 4 }
 0x234   : > { %v2793_v9 = vld [vmem:[#allocation2 + $0x68] sm:$0x1]  ;;  %v2631_v50 = vsel %vm7970_vm13, %v2623_v14, %v2630_v62  ;;  %v2736_v6 = vsel %vm7963_vm12, %v2632_v22, %v2735_v7 }
 0x235   : > { %v2794_v13 = vsel %vm7996_vm14, 0, %v2793_v9  ;;  %2734 = vst [vmem:[#allocation2 + $0x70] sm:$0xf] %v2631_v50  ;;  %2737 = vst [vmem:[#allocation2 + $0x74] sm:$0x1] %v2736_v6 }
 0x236   : > { %2795 = vst [vmem:[#allocation2 + $0x68] sm:$0x1] %v2794_v13 }
 0x238   : > { %v2765_v23 = vld [vmem:[#allocation2 + $0x6c] sm:$0x1]  ;;  %2802 = sbr.rel (%p5204_p8) target bundleno = 575 (0x23f), region = 56 }
 0x239   : > { %v2766_v24 = vsel %vm7963_vm12, 0, %v2765_v23 }
 0x23a   : > { %2767 = vst [vmem:[#allocation2 + $0x6c] sm:$0x1] %v2766_v24 }
 0x23c   : > { %v2796_v18 = vld [vmem:[#allocation2 + $0x74] sm:$0x1] }
 0x23d   : > { %v2797_v61 = vsel %vm7996_vm14, 0, %v2796_v18 }
 0x23e   : > { %2798 = vst [vmem:[#allocation2 + $0x74] sm:$0x1] %v2797_v61 }
 0x23f PF: > { %p5205_p10 = scmp.ne.s32.totalorder %s6826_s27, 1 }
 0x240   : > { %v6848_v11 = vmov (!%p5205_p10), 0  }
 0x241   : > { %2809 = sbr.rel (%p5205_p10) target bundleno = 584 (0x248), region = 60  ;;  %2811 = vst [vmem:[#allocation2 + $0x6c] sm:$0xf] (!%p5205_p10), %v6848_v11  ;;  %2812 = vst [vmem:[#allocation2 + $0x70] sm:$0xf] (!%p5205_p10), %v6848_v11 }
 0x242   : > { %2813 = vst [vmem:[#allocation2 + $0x74] sm:$0x1] (!%p5205_p10), %v6848_v11 }
 0x248 PF: > { %v6570_v5 = vld [vmem:[#allocation3 + $0x100] sm:$0xff]   ;;  %v6573_v44 = vld [vmem:[#allocation3 + $0x108] sm:$0xff]   ;;  %v6576_v41 = vld [vmem:[#allocation3 + $0x110] sm:$0xff]   ;;  %vm4734_vm15 = vcmask 1046528   ;;  %s5365_s10 = sshll.u32 %s6830_s28, 5  ;;  %s4840_s28 = sshll.u32 %s8168_s11, 4  ;;  %s8835_s28 = int_to_ptr.vmem [resolvable:$true] %s4840_s28 }
 0x249   : > { %v6571_v3 = vld [vmem:[#allocation3 + $0x140] sm:$0xff]   ;;  %5693 = vmatprep.subr.bf16.mxu0 %v6570_v5  ;;  %v6574_v17 = vld [vmem:[#allocation3 + $0x148] sm:$0xff]   ;;  %v6577_v34 = vld [vmem:[#allocation3 + $0x150] sm:$0xff]   ;;  %s8934_s19 = sand.u32 1, %s6818_s25   ;;  %s6744_s20 = scalar_lea.vmem %s8835_s28, 2048 }
 0x24a   : > { %v6572_v58 = vld [vmem:[#allocation3 + $0xc0] sm:$0xff]   ;;  %6041 = vmatprep.subr.bf16.mxu1 %v6571_v3  ;;  %v6575_v30 = vld [vmem:[#allocation3 + $0xc8] sm:$0xff]   ;;  %v6578_v27 = vld [vmem:[#allocation3 + $0xd0] sm:$0xff]   ;;  %s8842_s23 = scalar_lea.sflag [#allocation5], %s8934_s19  ;;  %p6745_p12 = scmp.ne.s32.totalorder %s8835_s28, %s6744_s20 }
 0x24b   : > { %5694 = vmatpush3.bf16.msra.mxu0 %v6572_v58  ;;  %6042 = vmatpush3.bf16.msra.mxu1 %v6571_v3  ;;  %v6579_v15 = vld [vmem:[#allocation3 + $0x118] sm:$0xff]   ;;  %v6582_v36 = vld [vmem:[#allocation3 + $0x120] sm:$0xff]   ;;  %v6585_v4 = vld [vmem:[#allocation3 + $0x128] sm:$0xff]   ;;  %p8935_p0 = scmp.ne.s32.totalorder %s8913_s15, 0  ;;  %s6849_s9 = smov [#allocation6]  }
 0x24c   : > { %5695 = vmatprep.subr.bf16.mxu0 %v6573_v44  ;;  %6043 = vmatprep.subr.bf16.mxu1 %v6574_v17  ;;  %v6580_v28 = vld [vmem:[#allocation3 + $0x158] sm:$0xff]   ;;  %v6583_v31 = vld [vmem:[#allocation3 + $0x160] sm:$0xff]   ;;  %v6586_v42 = vld [vmem:[#allocation3 + $0x168] sm:$0xff]   ;;  %s6748_s14 = sshll.u32 %s6849_s9, 4  ;;  %s6749_s14 = int_to_ptr.vmem [resolvable:$false] %s6748_s14 }
 0x24d   : > { %v6581_v46 = vld [vmem:[#allocation3 + $0xd8] sm:$0xff]   ;;  %v6584_v51 = vld [vmem:[#allocation3 + $0xe0] sm:$0xff]   ;;  %v6587_v10 = vld [vmem:[#allocation3 + $0xe8] sm:$0xff]   ;;  %p6746_p2 = pnand %p6745_p12, %p8935_p0  ;;  %s6750_s17 = scalar_lea.vmem %s6749_s14, 4096 }
 0x24e   : > { %v6588_v19 = vld [vmem:[#allocation3 + $0x130] sm:$0xff]   ;;  %v6591_v43 = vld [vmem:[#allocation3 + $0x138] sm:$0xff]   ;;  %v8178_v38 = vld [vmem:[#allocation2 + $0x18] sm:$0xf]  ;;  %p6751_p6 = scmp.lt.s32.totalorder %s8835_s28, %s6749_s14  ;;  %p6752_p7 = scmp.lt.s32.totalorder %s6750_s17, %s6744_s20 }
 0x24f   : > { %5696 = vmatpush3.bf16.msra.mxu0 %v6575_v30  ;;  %6044 = vmatpush3.bf16.msra.mxu1 %v6574_v17  ;;  %v6589_v60 = vld [vmem:[#allocation3 + $0x170] sm:$0xff]   ;;  %v6592_v57 = vld [vmem:[#allocation3 + $0x178] sm:$0xff]   ;;  %v8181_v21 = vld [vmem:[#allocation2 + $0x1c] sm:$0xf]  ;;  %v3001_v54 = vshrl.u32 %v8178_v38, 16  ;;  %v3004_v29 = vshll.u32 %v8178_v38, 16  ;;  %p6747_p5 = pneg %p6746_p2 }
 0x250   : > { %5697 = vmatprep.subr.bf16.mxu0 %v6576_v41  ;;  %6045 = vmatprep.subr.bf16.mxu1 %v6577_v34  ;;  %v6590_v45 = vld [vmem:[#allocation3 + $0xf0] sm:$0xff]   ;;  %v8172_v26 = vld [vmem:[#allocation2 + $0x10] sm:$0xf]  ;;  %v8174_v35 = vld [vmem:[#allocation2 + $0x14] sm:$0x1]  ;;  %v3010_v59 = vshll.u32 %v8181_v21, 16  ;;  %p6753_p9 = por %p6752_p7, %p6751_p6 }
 0x251   : > { %v2816_v8 = vld [vmem:[#allocation2 + $0xc] sm:$0xf]  ;;  %v2986_v49 = vshll.u32 %v8172_v26, 16  ;;  %v2990_v52 = vshrl.u32 %v8172_v26, 16  ;;  %v2996_v32 = vshll.u32 %v8174_v35, 16  ;;  %v6593_v2 = vld [vmem:[#allocation3 + $0xf8] sm:$0xff]  }
 0x252   : > { %v2977_v25 = vshrl.u32 %v2816_v8, 16  ;;  %v2980_v1 = vshll.u32 %v2816_v8, 16  ;;  %v8183_v37 = vld [vmem:[#allocation2 + $0x20] sm:$0x1]  ;;  %v8187_v16 = vcombine.low %v2816_v8, %v8172_v26  ;;  %v3003_v40 = vrot.slane %v3001_v54, 4  ;;  %v8202_v44 = vld [vmem:[#allocation3 + $0x80] sm:$0xff]   ;;  %p6754_p11 = pnand %p6753_p9, %p6747_p5 }
 0x253   : > { %5698 = vmatpush3.bf16.msra.mxu0 %v6578_v27  ;;  %6046 = vmatpush3.bf16.msra.mxu1 %v6577_v34  ;;  %v2988_v20 = vrot.slane %v2986_v49, 5  ;;  %v2992_v39 = vrot.slane %v2990_v52, 4  ;;  %v8189_v53 = vld [vmem:[#allocation2] sm:$0xf]  ;;  %v2998_v55 = vrot.slane %v2996_v32, 5  ;;  %v3014_v7 = vshrl.u32 %v8181_v21, 16 }
 0x254   : > { %5699 = vmatprep.subr.bf16.mxu0 %v6579_v15  ;;  %6047 = vmatprep.subr.bf16.mxu1 %v6580_v28  ;;  %v2979_v47 = vrot.slane %v2977_v25, 4  ;;  %v2982_v63 = vrot.slane %v2980_v1, 5  ;;  %v3020_v14 = vshll.u32 %v8183_v37, 16  ;;  %v8195_v62 = vld [vmem:[#allocation2 + $0x4] sm:$0xf]  ;;  %v3006_v22 = vrot.slane %v3004_v29, 5 }
 0x255   : > { %v2993_v48 = vor.u32 %v2992_v39, %v2988_v20  ;;  %v3012_v9 = vrot.slane %v3010_v59, 5  ;;  %v2942_v13 = vld [vmem:[#allocation2 + $0x8] sm:$0x1]  ;;  %v2953_v50 = vshrl.u32 %v8189_v53, 16  ;;  %v2956_v6 = vshll.u32 %v8189_v53, 16  ;;  %v6623_v56 = vld [vmem:[#allocation3 + $0x60] sm:$0xff]  }
 0x256   : > { %v2983_v12 = vor.u32 %v2982_v63, %v2979_v47  ;;  %v3016_v18 = vrot.slane %v3014_v7, 4  ;;  %v3022_v61 = vrot.slane %v3020_v14, 5  ;;  %v8199_v0 = vld [vmem:[#allocation2 + $0x24] sm:$0xf]  ;;  %v3007_v11 = vor.u32 %v3006_v22, %v3003_v40  ;;  %v8223_v1 = vld [vmem:[#allocation2 + $0x2c] sm:$0x1] }
 0x257   : > { %5700 = vmatpush3.bf16.msra.mxu0 %v6581_v46  ;;  %6048 = vmatpush3.bf16.msra.mxu1 %v6580_v28  ;;  %v2994_v24 = vrot.slane %v2993_v48, 4  ;;  %v2955_v5 = vrot.slane %v2953_v50, 4  ;;  %v2958_v3 = vrot.slane %v2956_v6, 5  ;;  %v2962_v58 = vshll.u32 %v8195_v62, 16  ;;  %v8225_v49 = vld [vmem:[#allocation2 + $0x30] sm:$0xf] }
 0x258   : > { %5701 = vmatprep.subr.bf16.mxu0 %v6582_v36  ;;  %6049 = vmatprep.subr.bf16.mxu1 %v6583_v31  ;;  %v2984_v23 = vrot.slane %v2983_v12, 4  ;;  %v3017_v41 = vor.u32 %v3016_v18, %v3012_v9  ;;  %v2966_v34 = vshrl.u32 %v8195_v62, 16  ;;  %v3008_v15 = vrot.slane %v3007_v11, 4  ;;  %v8232_v63 = vld [vmem:[#allocation2 + $0x34] sm:$0xf]  ;;  %v6645_v33 = vld [vmem:[#allocation3 + $0x208] sm:$0xff]  }
 0x259   : > { %v2999_v30 = vsel %vm7136_vm2, %v2994_v24, %v2998_v55  ;;  %v2959_v28 = vor.u32 %v2958_v3, %v2955_v5  ;;  %v2964_v46 = vrot.slane %v2962_v58, 5  ;;  %v3028_v47 = vshll.u32 %v8199_v0, 16  ;;  %v8240_v40 = vld [vmem:[#allocation2 + $0x38] sm:$0x1]  ;;  %v8242_v29 = vld [vmem:[#allocation2 + $0x3c] sm:$0xf] }
 0x25a   : > { %v2989_v17 = vsel %vm7136_vm2, %v2984_v23, %v2988_v20  ;;  %v3018_v36 = vrot.slane %v3017_v41, 4  ;;  %v3044_v12 = vshll.u32 %v8223_v1, 16  ;;  %v3049_v48 = vshrl.u32 %v8225_v49, 16  ;;  %v8251_v18 = vld [vmem:[#allocation2 + $0x40] sm:$0xf] }
 0x25b   : > { %5702 = vmatpush3.bf16.msra.mxu0 %v6584_v51  ;;  %6050 = vmatpush3.bf16.msra.mxu1 %v6583_v31  ;;  %v8209_v27 = vcombine.low %v2989_v17, %v2999_v30  ;;  %v2968_v31 = vrot.slane %v2966_v34, 4  ;;  %v2972_v51 = vshll.u32 %v2942_v13, 16  ;;  %v3030_v59 = vrot.slane %v3028_v47, 5  ;;  %v8255_v30 = vld [vmem:[#allocation2 + $0x44] sm:$0x1] }
 0x25c   : > { %5703 = vmatprep.subr.bf16.mxu0 %v6585_v4  ;;  %6051 = vmatprep.subr.bf16.mxu1 %v6586_v42  ;;  %v3985_v4 = vrot.slane %v8195_v62, 5  ;;  %v3052_v7 = vshll.u32 %v8225_v49, 16  ;;  %v3046_v23 = vrot.slane %v3044_v12, 5  ;;  %v3051_v24 = vrot.slane %v3049_v48, 4  ;;  %v8275_v48 = vld [vmem:[#allocation2 + $0x50] sm:$0x1] }
 0x25d   : > { %3457 = vmatprep.mubr.bf16.mxu0 %v8209_v27  ;;  %v2974_v8 = vrot.slane %v2972_v51, 5  ;;  %v3062_v3 = vshrl.u32 %v8232_v63, 16  ;;  %v3068_v17 = vshll.u32 %v8240_v40, 16  ;;  %v3073_v41 = vshrl.u32 %v8242_v29, 16 }
 0x25e   : > { %v3987_v25 = vrot.slane %v3985_v4, 4  ;;  %v3054_v11 = vrot.slane %v3052_v7, 5  ;;  %v3076_v34 = vshll.u32 %v8242_v29, 16 }
 0x25f   : > { %5704 = vmatpush3.bf16.msra.mxu0 %v6587_v10  ;;  %6052 = vmatpush3.bf16.msra.mxu1 %v6586_v42  ;;  %v3013_v42 = vsel %vm7136_vm2, %v3008_v15, %v3012_v9  ;;  %v2960_v10 = vrot.slane %v2959_v28, 4 }
 0x260   : > { %5705 = vmatprep.subr.bf16.mxu0 %v6588_v19  ;;  %6053 = vmatprep.subr.bf16.mxu1 %v6589_v60  ;;  %v3988_v19 = vrot.slane %v2942_v13, 5  ;;  %v3058_v13 = vshll.u32 %v8232_v63, 16  ;;  %v3055_v28 = vor.u32 %v3054_v11, %v3051_v24 }
 0x261   : > { %v2965_v32 = vsel %vm7136_vm2, %v2960_v10, %v2964_v46  ;;  %v3070_v10 = vrot.slane %v3068_v17, 5 }
 0x262   : > { %v8236_v39 = vsel %vm7439_vm5, %v3987_v25, %v3988_v19  ;;  %v3060_v5 = vrot.slane %v3058_v13, 5  ;;  %v3075_v19 = vrot.slane %v3073_v41, 4  ;;  %v3056_v25 = vrot.slane %v3055_v28, 4 }
 0x263   : > { %5706 = vmatpush3.bf16.msra.mxu0 %v6590_v45  ;;  %6054 = vmatpush3.bf16.msra.mxu1 %v6589_v60  ;;  %v8216_v60 = vld [vmem:[#allocation2 + $0x28] sm:$0xf]  ;;  %v3025_v45 = vshrl.u32 %v8199_v0, 16 }
 0x264   : > { %5707 = vmatprep.subr.bf16.mxu0 %v6591_v43  ;;  %6055 = vmatprep.subr.bf16.mxu1 %v6592_v57  ;;  %v3023_v43 = vsel %vm7136_vm2, %v3018_v36, %v3022_v61  ;;  %v3038_v55 = vshrl.u32 %v8216_v60, 16  ;;  %v3082_v36 = vshll.u32 %v8251_v18, 16 }
 0x265   : > { %v8227_v52 = vcombine.low %v3013_v42, %v3023_v43  ;;  %v3027_v54 = vrot.slane %v3025_v45, 4  ;;  %v6595_v42 = vld [vmem:[#allocation3 + $0x88] sm:$0xff]   ;;  %v3078_v45 = vrot.slane %v3076_v34, 5  ;;  %v8265_v43 = vld [vmem:[#allocation2 + $0x4c] sm:$0xf] }
 0x266   : > { %v3040_v9 = vrot.slane %v3038_v55, 4  ;;  %v3092_v55 = vshll.u32 %v8255_v30, 16 }
 0x267   : > { %5708 = vmatpush3.bf16.msra.mxu0 %v6593_v2  ;;  %6056 = vmatpush3.bf16.msra.mxu1 %v6592_v57  ;;  %v2969_v57 = vor.u32 %v2968_v31, %v2964_v46  ;;  %v3034_v2 = vshll.u32 %v8216_v60, 16  ;;  %v3031_v6 = vor.u32 %v3030_v59, %v3027_v54  ;;  %v3064_v46 = vrot.slane %v3062_v3, 4  ;;  %v8261_v31 = vld [vmem:[#allocation2 + $0x48] sm:$0xf]  ;;  %v8287_v3 = vld [vmem:[#allocation2 + $0x58] sm:$0xf] }
 0x268   : > { %6073 = vmatprep.subr.bf16.mxu1 %v8202_v44  ;;  %6057 = vmatprep.mubr.bf16.mxu1 %v8227_v52  ;;  %v3084_v54 = vrot.slane %v3082_v36, 5  ;;  %v3061_v59 = vsel %vm7136_vm2, %v3056_v25, %v3060_v5  ;;  %v3097_v7 = vshrl.u32 %v8261_v31, 16  ;;  %v3116_v36 = vshll.u32 %v8275_v48, 16  ;;  %v6597_v25 = vld [vmem:[#allocation3 + $0x98] sm:$0xff]  }
 0x269   : > { %v2970_v20 = vrot.slane %v2969_v57, 4  ;;  %v3036_v22 = vrot.slane %v3034_v2, 5  ;;  %v3032_v58 = vrot.slane %v3031_v6, 4  ;;  %v6601_v57 = vld [vmem:[#allocation3 + $0x40] sm:$0xff]   ;;  %v3086_v2 = vshrl.u32 %v8251_v18, 16 }
 0x26a   : > { %5773 = vmatprep.subr.bf16.mxu0 %v6601_v57  ;;  %v3106_v6 = vshll.u32 %v8265_v43, 16  ;;  %v3134_v57 = vshrl.u32 %v8287_v3, 16 }
 0x26b   : > { %v2975_v14 = vsel %vm7136_vm2, %v2970_v20, %v2974_v8  ;;  %v3041_v61 = vor.u32 %v3040_v9, %v3036_v22  ;;  %v3037_v51 = vsel %vm7136_vm2, %v3032_v58, %v3036_v22  ;;  %v3079_v20 = vor.u32 %v3078_v45, %v3075_v19  ;;  %v6602_v22 = vld [vmem:[#allocation3] sm:$0xff]  }
 0x26c   : > { %v5216_v50 = vcombine.low %v2965_v32, %v2975_v14  ;;  %v3065_v32 = vor.u32 %v3064_v46, %v3060_v5  ;;  %v3100_v14 = vshll.u32 %v8261_v31, 16  ;;  %v3088_v13 = vrot.slane %v3086_v2, 4 }
 0x26d   : > { %v3042_v15 = vrot.slane %v3041_v61, 4  ;;  %v3080_v9 = vrot.slane %v3079_v20, 4  ;;  %v3099_v61 = vrot.slane %v3097_v7, 4  ;;  %v3110_v5 = vshrl.u32 %v8265_v43, 16 }
 0x26e   : > { %3458 = vmatmul.mubr.bf16.vlgmr.msra.gmra.mrb[100].mxu0 %v5216_v50  ;;  %v3066_v12 = vrot.slane %v3065_v32, 4  ;;  %v3094_v50 = vrot.slane %v3092_v55, 5  ;;  %v3102_v11 = vrot.slane %v3100_v14, 5  ;;  %v3089_v41 = vor.u32 %v3088_v13, %v3084_v54  ;;  %v6608_v55 = vld [vmem:[#allocation3 + $0x48] sm:$0xff]  }
 0x26f   : > { %3465 = vmatprep.mubr.bf16.mxu0 %v8227_v52  ;;  %v3047_v8 = vsel %vm7136_vm2, %v3042_v15, %v3046_v23  ;;  %v8281_v23 = vld [vmem:[#allocation2 + $0x54] sm:$0xf]  ;;  %5774 = vmatpush3.bf16.msra.mxu0 %v6602_v22  ;;  %v3085_v17 = vsel %vm7136_vm2, %v3080_v9, %v3084_v54  ;;  %v3108_v34 = vrot.slane %v3106_v6, 5  ;;  %v8294_v15 = vld [vmem:[#allocation2 + $0x5c] sm:$0x1]  ;;  %v3112_v46 = vrot.slane %v3110_v5, 4 }
 0x270   : > { %v8269_v47 = vcombine.low %v3037_v51, %v3047_v8  ;;  %v3071_v24 = vsel %vm7136_vm2, %v3066_v12, %v3070_v10  ;;  %v3103_v28 = vor.u32 %v3102_v11, %v3099_v61  ;;  %v3121_v51 = vshrl.u32 %v8281_v23, 16  ;;  %v8299_v10 = vld [vmem:[#allocation2 + $0x60] sm:$0xf]  ;;  %v8305_v8 = vld [vmem:[#allocation2 + $0x64] sm:$0xf]  ;;  %5775 = vmatprep.subr.bf16.mxu0 %v6608_v55 }
 0x271   : > { %v8289_v58 = vcombine.low %v3061_v59, %v3071_v24  ;;  %v3124_v19 = vshll.u32 %v8281_v23, 16  ;;  %v3130_v45 = vshll.u32 %v8287_v3, 16  ;;  %v3113_v54 = vor.u32 %v3112_v46, %v3108_v34  ;;  %v8309_v22 = vld [vmem:[#allocation2 + $0x68] sm:$0x1]  ;;  %v6609_v9 = vld [vmem:[#allocation3 + $0x8] sm:$0xff]  }
 0x272   : > { %6058 = vmatmul.mubr.bf16.vlgmr.msra.gmra.mrb[60].mxu1 %v8269_v47  ;;  %v3104_v32 = vrot.slane %v3103_v28, 4  ;;  %v3118_v20 = vrot.slane %v3116_v36, 5  ;;  %v3123_v2 = vrot.slane %v3121_v51, 4  ;;  %v3136_v14 = vrot.slane %v3134_v57, 4  ;;  %v8316_v61 = vld [vmem:[#allocation2 + $0x6c] sm:$0xf] }
 0x273   : > { %6074 = vmatpush3.bf16.msra.mxu1 %v8202_v44  ;;  %v6596_v44 = vld [vmem:[#allocation3 + $0x90] sm:$0xff]   ;;  %6061 = vmatprep.mubr.bf16.mxu1 %v8289_v58  ;;  %v3126_v12 = vrot.slane %v3124_v19, 5  ;;  %v3132_v7 = vrot.slane %v3130_v45, 5  ;;  %v3114_v6 = vrot.slane %v3113_v54, 4  ;;  %v3140_v24 = vshll.u32 %v8294_v15, 16  ;;  %v6598_v45 = vld [vmem:[#allocation3 + $0xa0] sm:$0xff]  }
 0x274   : > { %6075 = vmatprep.subr.bf16.mxu1 %v6595_v42  ;;  %v3145_v5 = vshrl.u32 %v8299_v10, 16  ;;  %5776 = vmatpush3.bf16.msra.mxu0 %v6609_v9  ;;  %v3158_v46 = vshrl.u32 %v8305_v8, 16  ;;  %v8325_v36 = vld [vmem:[#allocation2 + $0x70] sm:$0xf]  ;;  %v3164_v55 = vshll.u32 %v8309_v22, 16 }
 0x275   : > { %v3127_v11 = vor.u32 %v3126_v12, %v3123_v2  ;;  %v3142_v28 = vrot.slane %v3140_v24, 5  ;;  %v3172_v12 = vshll.u32 %v8316_v61, 16  ;;  %v6613_v24 = vld [vmem:[#allocation3 + $0x50] sm:$0xff]  }
 0x276   : > { %3466 = vmatmul.mubr.bf16.gmra.mrb[104].mxu0 %v8209_v27  ;;  %v3090_v27 = vrot.slane %v3089_v41, 4  ;;  %v3148_v41 = vshll.u32 %v8299_v10, 16  ;;  %v3147_v57 = vrot.slane %v3145_v5, 4  ;;  %v3160_v2 = vrot.slane %v3158_v46, 4  ;;  %5777 = vmatprep.subr.bf16.mxu0 %v6613_v24 }
 0x277   : > { %3473 = vmatprep.mubr.bf16.mxu0 %v8269_v47  ;;  %6076 = vmatpush3.bf16.msra.mxu1 %v6595_v42  ;;  %v3109_v42 = vsel %vm7136_vm2, %v3104_v32, %v3108_v34  ;;  %v3154_v34 = vshll.u32 %v8305_v8, 16  ;;  %v8330_v32 = vld [vmem:[#allocation2 + $0x74] sm:$0x1]  ;;  %v3178_v5 = vshll.u32 %v8325_v36, 16  ;;  %v3992_v24 = vrot.slane %v8172_v26, 5 }
 0x278   : > { %v3095_v59 = vsel %vm7136_vm2, %v3090_v27, %v3094_v50  ;;  %6077 = vmatprep.subr.bf16.mxu1 %v6596_v44  ;;  %v3137_v50 = vor.u32 %v3136_v14, %v3132_v7  ;;  %v3128_v27 = vrot.slane %v3127_v11, 4  ;;  %v3150_v54 = vrot.slane %v3148_v41, 5  ;;  %v6599_v41 = vld [vmem:[#allocation3 + $0xa8] sm:$0xff]  }
 0x279   : > { %v8311_v13 = vcombine.low %v3085_v17, %v3095_v59  ;;  %v3119_v17 = vsel %vm7136_vm2, %v3114_v6, %v3118_v20  ;;  %v3156_v20 = vrot.slane %v3154_v34, 5  ;;  %v3169_v59 = vshrl.u32 %v8316_v61, 16 }
 0x27a   : > { %v8327_v51 = vcombine.low %v3109_v42, %v3119_v17  ;;  %v3138_v19 = vrot.slane %v3137_v50, 4  ;;  %v3151_v9 = vor.u32 %v3150_v54, %v3147_v57  ;;  %v3166_v6 = vrot.slane %v3164_v55, 5  ;;  %v6600_v54 = vld [vmem:[#allocation3 + $0xb0] sm:$0xff]  }
 0x27b   : > { %6062 = vmatmul.mubr.bf16.gmra.mrb[64].mxu1 %v8311_v13  ;;  %v3161_v42 = vor.u32 %v3160_v2, %v3156_v20  ;;  %v3171_v11 = vrot.slane %v3169_v59, 4  ;;  %v3174_v50 = vrot.slane %v3172_v12, 5  ;;  %v3188_v34 = vshll.u32 %v8330_v32, 16  ;;  %v6616_v2 = vld [vmem:[#allocation3 + $0x10] sm:$0xff]  }
 0x27c   : > { %6078 = vmatpush3.bf16.msra.mxu1 %v6596_v44  ;;  %6065 = vmatprep.mubr.bf16.mxu1 %v8327_v51  ;;  %v3133_v44 = vsel %vm7136_vm2, %v3128_v27, %v3132_v7  ;;  %v3182_v7 = vshrl.u32 %v8325_v36, 16  ;;  %v3152_v17 = vrot.slane %v3151_v9, 4  ;;  %v3180_v27 = vrot.slane %v3178_v5, 5  ;;  %v6618_v9 = vld [vmem:[#allocation3 + $0x58] sm:$0xff]  }
 0x27d   : > { %6079 = vmatprep.subr.bf16.mxu1 %v6597_v25  ;;  %v3175_v46 = vor.u32 %v3174_v50, %v3171_v11  ;;  %v3190_v59 = vrot.slane %v3188_v34, 5  ;;  %5778 = vmatpush3.bf16.msra.mxu0 %v6616_v2  ;;  %v6620_v50 = vld [vmem:[#allocation3 + $0x18] sm:$0xff]   ;;  %v3995_v5 = vrot.slane %v8174_v35, 5  ;;  %v6626_v35 = vld [vmem:[#allocation3 + $0x20] sm:$0xff]   ;;  %v4034_v26 = vrot.slane %v8287_v3, 5 }
 0x27e   : > { %3474 = vmatmul.mubr.bf16.gmra.mrb[108].mxu0 %v8227_v52  ;;  %v3143_v52 = vsel %vm7136_vm2, %v3138_v19, %v3142_v28  ;;  %v3162_v28 = vrot.slane %v3161_v42, 4  ;;  %v3184_v19 = vrot.slane %v3182_v7, 4  ;;  %v6603_v42 = vld [vmem:[#allocation3 + $0xb8] sm:$0xff]   ;;  %5779 = vmatprep.subr.bf16.mxu0 %v6618_v9  ;;  %v3994_v7 = vrot.slane %v3992_v24, 4 }
 0x27f   : > { %3481 = vmatprep.mubr.bf16.mxu0 %v8289_v58  ;;  %v8341_v14 = vcombine.low %v3133_v44, %v3143_v52  ;;  %v3176_v44 = vrot.slane %v3175_v46, 4  ;;  %v6607_v46 = vld [vmem:[#allocation3 + $0x180] sm:$0xff]   ;;  %v4020_v9 = vrot.slane %v8251_v18, 5 }
 0x280   : > { %6080 = vmatpush3.bf16.msra.mxu1 %v6597_v25  ;;  %v3157_v25 = vsel %vm7136_vm2, %v3152_v17, %v3156_v20  ;;  %v3167_v57 = vsel %vm7136_vm2, %v3162_v28, %v3166_v6  ;;  %v3185_v52 = vor.u32 %v3184_v19, %v3180_v27  ;;  %v8364_v6 = vcombine.low %v8178_v38, %v8181_v21  ;;  %v6606_v38 = vld [vmem:[#allocation3 + $0x1c0] sm:$0xff]  }
 0x281   : > { %6081 = vmatprep.subr.bf16.mxu1 %v6598_v45  ;;  %v8351_v55 = vcombine.low %v3157_v25, %v3167_v57  ;;  %v3181_v20 = vsel %vm7136_vm2, %v3176_v44, %v3180_v27  ;;  %5780 = vmatpush3.bf16.msra.mxu0 %v6620_v50  ;;  %v8374_v17 = vsel %vm7439_vm5, %v3994_v7, %v3995_v5  ;;  %v4002_v28 = vrot.slane %v8183_v37, 5  ;;  %v6628_v25 = vld [vmem:[#allocation3 + $0x68] sm:$0xff]   ;;  %v6638_v7 = vld [vmem:[#allocation3 + $0x78] sm:$0xff]  }
 0x282   : > { %v3186_v12 = vrot.slane %v3185_v52, 4  ;;  %5781 = vmatprep.subr.bf16.mxu0 %v6623_v56  ;;  %v4006_v27 = vrot.slane %v8216_v60, 5  ;;  %v8384_v19 = vcombine.low %v8199_v0, %v8216_v60  ;;  %v6610_v57 = vld [vmem:[#allocation3 + $0x1c8] sm:$0xff]   ;;  %v4013_v44 = vrot.slane %v8232_v63, 5  ;;  %v6619_v56 = vld [vmem:[#allocation3 + $0x1d8] sm:$0xff]  }
 0x283   : > { %6066 = vmatmul.mubr.bf16.gmra.mrb[68].mxu1 %v8341_v14  ;;  %v6630_v0 = vld [vmem:[#allocation3 + $0x28] sm:$0xff]   ;;  %v4022_v50 = vrot.slane %v4020_v9, 4  ;;  %v8417_v5 = vcombine.low %v8242_v29, %v8251_v18  ;;  %v4043_v18 = vrot.slane %v8305_v8, 5 }
 0x284   : > { %6082 = vmatpush3.bf16.msra.mxu1 %v6598_v45  ;;  %6069 = vmatprep.mubr.bf16.mxu1 %v8351_v55  ;;  %v5206_v45 = vcombine.low %v8189_v53, %v8195_v62  ;;  %v4008_v2 = vrot.slane %v4006_v27, 4  ;;  %v6611_v52 = vld [vmem:[#allocation3 + $0x188] sm:$0xff]   ;;  %v6647_v53 = vld [vmem:[#allocation3 + $0x218] sm:$0xff]   ;;  %v6648_v62 = vld [vmem:[#allocation3 + $0x220] sm:$0xff]  }
 0x285   : > { %6083 = vmatprep.subr.bf16.mxu1 %v6599_v41  ;;  %5782 = vmatpush3.bf16.msra.mxu0 %v6626_v35  ;;  %v6640_v35 = vld [vmem:[#allocation3 + $0x38] sm:$0xff]  }
 0x286   : > { %3482 = vmatmul.mubr.bf16.gmra.mrb[112].mxu0 %v8269_v47  ;;  %v3191_v47 = vsel %vm7136_vm2, %v3186_v12, %v3190_v59  ;;  %5783 = vmatprep.subr.bf16.mxu0 %v6628_v25  ;;  %v6615_v12 = vld [vmem:[#allocation3 + $0x1d0] sm:$0xff]   ;;  %v6621_v25 = vld [vmem:[#allocation3 + $0x198] sm:$0xff]  }
 0x287   : > { %3489 = vmatprep.mubr.bf16.mxu0 %v8311_v13  ;;  %v5225_v11 = vcombine.low %v3181_v20, %v3191_v47  ;;  %v4015_v20 = vrot.slane %v4013_v44, 4  ;;  %v6636_v47 = vld [vmem:[#allocation3 + $0x30] sm:$0xff]  }
 0x288   : > { %6084 = vmatpush3.bf16.msra.mxu1 %v6599_v41  ;;  %v3999_v41 = vrot.slane %v8181_v21, 5 }
 0x289   : > { %6085 = vmatprep.subr.bf16.mxu1 %v6600_v54  ;;  %5784 = vmatpush3.bf16.msra.mxu0 %v6630_v0  ;;  %v8436_v0 = vcombine.low %v8281_v23, %v8287_v3 }
 0x28a   : > { %v4001_v34 = vrot.slane %v3999_v41, 4 }
 0x28b   : > { %6070 = vmatmul.mubr.bf16.gmra.mrb[72].mxu1 %v5225_v11  ;;  %v6617_v11 = vld [vmem:[#allocation3 + $0x190] sm:$0xff]  }
 0x28c   : > { %6086 = vmatpush3.bf16.msra.mxu1 %v6600_v54  ;;  %6089 = vmatprep.mubr.bf16.mxu1 %v8364_v6  ;;  %v8388_v37 = vsel %vm7439_vm5, %v4001_v34, %v4002_v28  ;;  %v8393_v54 = vcombine.low %v8225_v49, %v8232_v63  ;;  %v6633_v49 = vld [vmem:[#allocation3 + $0x70] sm:$0xff]   ;;  %v4030_v28 = vrot.slane %v8275_v48, 5 }
 0x28d   : > { %6087 = vmatprep.subr.bf16.mxu1 %v6603_v42  ;;  %5785 = vmatprep.subr.bf16.mxu0 %v6633_v49  ;;  %v3958_v34 = vld [vmem:[#allocation2 + $0xc] sm:$0xe] }
 0x28e   : > { %3490 = vmatmul.mubr.bf16.gmra.mrb[116].mxu0 %v8289_v58  ;;  %v4009_v58 = vrot.slane %v8223_v1, 5  ;;  %v4016_v1 = vrot.slane %v8240_v40, 5  ;;  %v5275_v48 = vrot.slane %v3958_v34, 9 }
 0x28f   : > { %3497 = vmatprep.mubr.bf16.mxu0 %v8327_v51  ;;  %5786 = vmatpush3.bf16.msra.mxu0 %v6636_v47  ;;  %v3961_v47 = vld [vmem:[#allocation2 + $0x30] sm:$0xe] }
 0x290   : > { %6088 = vmatpush3.bf16.msra.mxu1 %v6603_v42  ;;  %v8400_v59 = vsel %vm7439_vm5, %v4008_v2, %v4009_v58  ;;  %v4017_v40 = vsel %vm7439_vm5, %v4015_v20, %v4016_v1  ;;  %v4023_v42 = vrot.slane %v8255_v30, 5  ;;  %v8422_v30 = vcombine.low %v8261_v31, %v8265_v43  ;;  %5787 = vmatprep.subr.bf16.mxu0 %v6638_v7  ;;  %v6625_v58 = vld [vmem:[#allocation3 + $0x1e0] sm:$0xff]   ;;  %v3960_v20 = vld [vmem:[#allocation2 + $0x24] sm:$0xe] }
 0x291   : > { %5853 = vmatprep.subr.bf16.mxu1 %v6606_v38  ;;  %v3959_v2 = vld [vmem:[#allocation2 + $0x18] sm:$0xe]  ;;  %v3993_v1 = vsel %vm7439_vm5, %v5275_v48, %v3992_v24  ;;  %v6629_v24 = vld [vmem:[#allocation3 + $0x1e8] sm:$0xff]  }
 0x292   : > { %v4024_v38 = vsel %vm7439_vm5, %v4022_v50, %v4023_v42  ;;  %v8457_v42 = vcombine.low %v8299_v10, %v8305_v8  ;;  %v3962_v50 = vld [vmem:[#allocation2 + $0x3c] sm:$0xe]  ;;  %v6631_v7 = vld [vmem:[#allocation3 + $0x1a8] sm:$0xff]   ;;  %v4055_v8 = vrot.slane %v8330_v32, 5  ;;  %v6641_v32 = vld [vmem:[#allocation3 + $0x1b8] sm:$0xff]  }
 0x293   : > { %6090 = vmatmul.mubr.bf16.vlgmr.msra.gmra.mrb[60].mxu1 %v8384_v19  ;;  %5788 = vmatpush3.bf16.msra.mxu0 %v6640_v35  ;;  %v4036_v35 = vrot.slane %v4034_v26, 4 }
 0x294   : > { %5854 = vmatpush3.bf16.msra.mxu1 %v6607_v46  ;;  %6093 = vmatprep.mubr.bf16.mxu1 %v8393_v54  ;;  %v3957_v46 = vld [vmem:[#allocation2] sm:$0xe] }
 0x295   : > { %5855 = vmatprep.subr.bf16.mxu1 %v6610_v57  ;;  %v5274_v57 = vrot.slane %v3957_v46, 9  ;;  %v4046_v46 = vrot.slane %v8309_v22, 5  ;;  %v6637_v22 = vld [vmem:[#allocation3 + $0x1b0] sm:$0xff]  }
 0x296   : > { %3498 = vmatmul.mubr.bf16.gmra.mrb[120].mxu0 %v8311_v13  ;;  %v4027_v13 = vrot.slane %v8265_v43, 5 }
 0x297   : > { %3505 = vmatprep.mubr.bf16.mxu0 %v8341_v14  ;;  %v8447_v49 = vsel %vm7439_vm5, %v5274_v57, %v3985_v4  ;;  %v6639_v57 = vld [vmem:[#allocation3 + $0x1f8] sm:$0xff]  }
 0x298   : > { %5856 = vmatpush3.bf16.msra.mxu1 %v6611_v52  ;;  %v4029_v29 = vrot.slane %v4027_v13, 4  ;;  %v6627_v52 = vld [vmem:[#allocation3 + $0x1a0] sm:$0xff]   ;;  %v5284_v23 = vcombine.low %v8447_v49, %v8236_v39  ;;  %v6650_v39 = vld [vmem:[#allocation3 + $0x230] sm:$0xff]  }
 0x299   : > { %5857 = vmatprep.subr.bf16.mxu1 %v6615_v12  ;;  %v8450_v12 = vcombine.low %v3993_v1, %v8374_v17  ;;  %v5278_v17 = vrot.slane %v3961_v47, 9  ;;  %v6646_v47 = vld [vmem:[#allocation3 + $0x210] sm:$0xff]  }
 0x29a   : > { %v4031_v31 = vsel %vm7439_vm5, %v4029_v29, %v4030_v28  ;;  %v3964_v28 = vld [vmem:[#allocation2 + $0x54] sm:$0xe] }
 0x29b   : > { %6094 = vmatmul.mubr.bf16.gmra.mrb[64].mxu1 %v8417_v5  ;;  %v4014_v21 = vsel %vm7439_vm5, %v5278_v17, %v4013_v44  ;;  %v5281_v44 = vrot.slane %v3964_v28, 9 }
 0x29c   : > { %5858 = vmatpush3.bf16.msra.mxu1 %v6617_v11  ;;  %6097 = vmatprep.mubr.bf16.mxu1 %v8422_v30 }
 0x29d   : > { %5859 = vmatprep.subr.bf16.mxu1 %v6619_v56  ;;  %v3963_v56 = vld [vmem:[#allocation2 + $0x48] sm:$0xe] }
 0x29e   : > { %3506 = vmatmul.mubr.bf16.gmra.mrb[124].mxu0 %v8327_v51  ;;  %v5276_v51 = vrot.slane %v3959_v2, 9  ;;  %v5280_v60 = vrot.slane %v3963_v56, 9 }
 0x29f   : > { %3513 = vmatprep.mubr.bf16.mxu0 %v8351_v55  ;;  %v5277_v55 = vrot.slane %v3960_v20, 9 }
 0x2a0   : > { %5860 = vmatpush3.bf16.msra.mxu1 %v6621_v25  ;;  %v4000_v4 = vsel %vm7439_vm5, %v5276_v51, %v3999_v41  ;;  %v5279_v41 = vrot.slane %v3962_v50, 9  ;;  %v4028_v34 = vsel %vm7439_vm5, %v5280_v60, %v4027_v13  ;;  %v4045_v25 = vrot.slane %v4043_v18, 4  ;;  %v3966_v13 = vld [vmem:[#allocation2 + $0x6c] sm:$0xe] }
 0x2a1   : > { %5861 = vmatprep.subr.bf16.mxu1 %v6625_v58  ;;  %v8464_v11 = vcombine.low %v4000_v4, %v8388_v37  ;;  %v4007_v3 = vsel %vm7439_vm5, %v5277_v55, %v4006_v27  ;;  %v8478_v37 = vcombine.low %v4014_v21, %v4017_v40  ;;  %v5215_v27 = vcombine.low %v8316_v61, %v8325_v36  ;;  %v6635_v40 = vld [vmem:[#allocation3 + $0x1f0] sm:$0xff]   ;;  %v3965_v61 = vld [vmem:[#allocation2 + $0x60] sm:$0xe]  ;;  %v6644_v55 = vld [vmem:[#allocation3 + $0x200] sm:$0xff]  }
 0x2a2   : > { %v8471_v10 = vcombine.low %v4007_v3, %v8400_v59  ;;  %v4021_v63 = vsel %vm7439_vm5, %v5279_v41, %v4020_v9  ;;  %v4037_v59 = vrot.slane %v8294_v15, 5  ;;  %v8498_v9 = vcombine.low %v4028_v34, %v4031_v31 }
 0x2a3   : > { %6098 = vmatmul.mubr.bf16.gmra.mrb[68].mxu1 %v8436_v0  ;;  %v8489_v29 = vcombine.low %v4021_v63, %v4024_v38  ;;  %v4035_v15 = vsel %vm7439_vm5, %v5281_v44, %v4034_v26  ;;  %v5282_v38 = vrot.slane %v3965_v61, 9  ;;  %v4052_v58 = vrot.slane %v8325_v36, 5 }
 0x2a4   : > { %5862 = vmatpush3.bf16.msra.mxu1 %v6627_v52  ;;  %6101 = vmatprep.mubr.bf16.mxu1 %v8457_v42  ;;  %v5283_v48 = vrot.slane %v3966_v13, 9  ;;  %v4047_v2 = vsel %vm7439_vm5, %v4045_v25, %v4046_v46 }
 0x2a5   : > { %5863 = vmatprep.subr.bf16.mxu1 %v6629_v24  ;;  %v4044_v31 = vsel %vm7439_vm5, %v5282_v38, %v4043_v18  ;;  %v4054_v52 = vrot.slane %v4052_v58, 4 }
 0x2a6   : > { %3514 = vmatmul.mubr.bf16.gmra.mrb[128].mxu0 %v8341_v14  ;;  %v4038_v14 = vsel %vm7439_vm5, %v4036_v35, %v4037_v59  ;;  %v8512_v1 = vcombine.low %v4044_v31, %v4047_v2  ;;  %v8516_v51 = vsel %vm7439_vm5, %v5283_v48, %v4052_v58 }
 0x2a7   : > { %3795 = vmatprep.mubr.bf16.mxu0 %v8187_v16  ;;  %v8504_v43 = vcombine.low %v4035_v15, %v4038_v14  ;;  %v8520_v36 = vsel %vm7439_vm5, %v4054_v52, %v4055_v8 }
 0x2a8   : > { %5864 = vmatpush3.bf16.msra.mxu1 %v6631_v7  ;;  %v5293_v20 = vcombine.low %v8516_v51, %v8520_v36 }
 0x2a9   : > { %5865 = vmatprep.subr.bf16.mxu1 %v6635_v40 }
 0x2ab   : > { %6102 = vmatmul.mubr.bf16.gmra.mrb[72].mxu1 %v5215_v27 }
 0x2ac   : > { %5866 = vmatpush3.bf16.msra.mxu1 %v6637_v22  ;;  %4322 = vmatprep.mubr.bf16.mxu1 %v8450_v12 }
 0x2ad   : > { %5867 = vmatprep.subr.bf16.mxu1 %v6639_v57 }
 0x2ae   : > { %3796 = vmatmul.mubr.bf16.vlgmr.msra.gmra.mrb[132].mxu0 %v5206_v45  ;;  %v6651_v45 = vld [vmem:[#allocation3 + $0x238] sm:$0xff]  }
 0x2af   : > { %3803 = vmatprep.mubr.bf16.mxu0 %v8364_v6 }
 0x2b0   : > { %5868 = vmatpush3.bf16.msra.mxu1 %v6641_v32 }
 0x2b1   : > { %6105 = vmatprep.subr.bf16.mxu1 %v6644_v55 }
 0x2b3   : > { %4323 = vmatmul.mubr.bf16.vlgmr.msra.gmra.mrb[76].mxu1 %v5284_v23 }
 0x2b4   : > { %6106 = vmatpush3.bf16.msra.mxu1 %v6644_v55  ;;  %4330 = vmatprep.mubr.bf16.mxu1 %v8464_v11 }
 0x2b5   : > { %6107 = vmatprep.subr.bf16.mxu1 %v6645_v33 }
 0x2b6   : > { %3804 = vmatmul.mubr.bf16.gmra.mrb[136].mxu0 %v8187_v16  ;;  %v6649_v16 = vld [vmem:[#allocation3 + $0x228] sm:$0xff]  }
 0x2b7   : > { %3811 = vmatprep.mubr.bf16.mxu0 %v8384_v19 }
 0x2b8   : > { %6108 = vmatpush3.bf16.msra.mxu1 %v6645_v33 }
 0x2b9   : > { %6109 = vmatprep.subr.bf16.mxu1 %v6646_v47 }
 0x2bb   : > { %4331 = vmatmul.mubr.bf16.gmra.mrb[80].mxu1 %v8450_v12 }
 0x2bc   : > { %4338 = vmatprep.mubr.bf16.mxu1 %v8471_v10  ;;  %6110 = vmatpush3.bf16.msra.mxu1 %v6646_v47 }
 0x2bd   : > { %6111 = vmatprep.subr.bf16.mxu1 %v6647_v53 }
 0x2be   : > { %3812 = vmatmul.mubr.bf16.gmra.mrb[140].mxu0 %v8364_v6 }
 0x2bf   : > { %3819 = vmatprep.mubr.bf16.mxu0 %v8393_v54 }
 0x2c0   : > { %6112 = vmatpush3.bf16.msra.mxu1 %v6647_v53 }
 0x2c1   : > { %6113 = vmatprep.subr.bf16.mxu1 %v6648_v62 }
 0x2c3   : > { %4339 = vmatmul.mubr.bf16.gmra.mrb[84].mxu1 %v8464_v11 }
 0x2c4   : > { %4346 = vmatprep.mubr.bf16.mxu1 %v8478_v37  ;;  %6114 = vmatpush3.bf16.msra.mxu1 %v6648_v62 }
 0x2c5   : > { %6115 = vmatprep.subr.bf16.mxu1 %v6649_v16 }
 0x2c6   : > { %3820 = vmatmul.mubr.bf16.gmra.mrb[144].mxu0 %v8384_v19 }
 0x2c7   : > { %3827 = vmatprep.mubr.bf16.mxu0 %v8417_v5 }
 0x2c8   : > { %6116 = vmatpush3.bf16.msra.mxu1 %v6649_v16 }
 0x2c9   : > { %6117 = vmatprep.subr.bf16.mxu1 %v6650_v39 }
 0x2cb   : > { %4347 = vmatmul.mubr.bf16.gmra.mrb[88].mxu1 %v8471_v10 }
 0x2cc   : > { %4354 = vmatprep.mubr.bf16.mxu1 %v8489_v29  ;;  %6118 = vmatpush3.bf16.msra.mxu1 %v6650_v39 }
 0x2cd   : > { %6119 = vmatprep.subr.bf16.mxu1 %v6651_v45 }
 0x2ce   : > { %3828 = vmatmul.mubr.bf16.gmra.mrb[148].mxu0 %v8393_v54 }
 0x2cf   : > { %3835 = vmatprep.mubr.bf16.mxu0 %v8422_v30 }
 0x2d0   : > { %6120 = vmatpush3.bf16.msra.mxu1 %v6651_v45 }
 0x2d3   : > { %4355 = vmatmul.mubr.bf16.gmra.mrb[92].mxu1 %v8478_v37 }
 0x2d4   : > { %4362 = vmatprep.mubr.bf16.mxu1 %v8498_v9 }
 0x2d6   : > { %3836 = vmatmul.mubr.bf16.gmra.mrb[152].mxu0 %v8417_v5 }
 0x2d7   : > { %3843 = vmatprep.mubr.bf16.mxu0 %v8436_v0 }
 0x2db   : > { %4363 = vmatmul.mubr.bf16.gmra.mrb[96].mxu1 %v8489_v29 }
 0x2dc   : > { %4370 = vmatprep.mubr.bf16.mxu1 %v8504_v43 }
 0x2de   : > { %3844 = vmatmul.mubr.bf16.gmra.mrb[156].mxu0 %v8422_v30 }
 0x2df   : > { %3851 = vmatprep.mubr.bf16.mxu0 %v8457_v42 }
 0x2e3   : > { %4371 = vmatmul.mubr.bf16.gmra.mrb[100].mxu1 %v8498_v9 }
 0x2e4   : > { %4378 = vmatprep.mubr.bf16.mxu1 %v8512_v1 }
 0x2e6   : > { %3852 = vmatmul.mubr.bf16.gmra.mrb[160].mxu0 %v8436_v0 }
 0x2eb   : > { %4379 = vmatmul.mubr.bf16.gmra.mrb[104].mxu1 %v8504_v43 }
 0x2ec   : > { %6121 = vmatprep.mubr.bf16.mxu1 %v8464_v11 }
 0x2f3   : > { %6122 = vmatmul.mubr.bf16.vlgmr.msra.gmra.mrb[60].mxu1 %v8471_v10 }
 0x2f4   : > { %6125 = vmatprep.mubr.bf16.mxu1 %v8478_v37 }
 0x2fb   : > { %6126 = vmatmul.mubr.bf16.gmra.mrb[64].mxu1 %v8489_v29 }
 0x2fc   : > { %6129 = vmatprep.mubr.bf16.mxu1 %v8498_v9 }
 0x303   : > { %6130 = vmatmul.mubr.bf16.gmra.mrb[68].mxu1 %v8504_v43 }
 0x304   : > { %6133 = vmatprep.mubr.bf16.mxu1 %v8512_v1 }
 0x30b   : > { %6134 = vmatmul.mubr.bf16.gmra.mrb[72].mxu1 %v5293_v20 }
 0x341   : > { %v5709_v6 = vpop.f32.mrb[100].mxu0 }
 0x342   : > { %v5710_v19 = vpop.f32.mrb[101].mxu0 }
 0x343   : > { %v5711_v54 = vadd.f32 %v5710_v19, %v5709_v6  ;;  %v5712_v5 = vpop.f32.mrb[102].mxu0 }
 0x344   : > { %v5713_v30 = vpop.f32.mrb[103].mxu0 }
 0x345   : > { %v5714_v0 = vadd.f32 %v5713_v30, %v5712_v5 }
 0x349   : > { %v5715_v49 = vpop.f32.mrb[104].mxu0 }
 0x34a   : > { %v5716_v12 = vpop.f32.mrb[105].mxu0 }
 0x34b   : > { %v5717_v23 = vadd.f32 %v5716_v12, %v5715_v49  ;;  %v5718_v26 = vpop.f32.mrb[106].mxu0 }
 0x34c   : > { %v5719_v24 = vpop.f32.mrb[107].mxu0 }
 0x34d   : > { %v5720_v42 = vadd.f32 %v5719_v24, %v5718_v26 }
 0x351   : > { %v5721_v4 = vpop.f32.mrb[108].mxu0 }
 0x352   : > { %v5722_v17 = vpop.f32.mrb[109].mxu0 }
 0x353   : > { %v8569_v11 = vadd.f32 %v5722_v17, %v5721_v4  ;;  %v5724_v3 = vpop.f32.mrb[110].mxu0 }
 0x354   : > { %v5725_v50 = vpop.f32.mrb[111].mxu0 }
 0x355   : > { %v8571_v7 = vadd.f32 %v5725_v50, %v5724_v3 }
 0x359   : > { %v5727_v10 = vpop.f32.mrb[112].mxu0 }
 0x35a   : > { %v5728_v21 = vpop.f32.mrb[113].mxu0 }
 0x35b   : > { %v8573_v41 = vadd.f32 %v5728_v21, %v5727_v10  ;;  %v5730_v56 = vpop.f32.mrb[114].mxu0 }
 0x35c   : > { %v5731_v37 = vpop.f32.mrb[115].mxu0 }
 0x35d   : > { %v8575_v60 = vadd.f32 %v5731_v37, %v5730_v56 }
 0x361   : > { %v5733_v28 = vpop.f32.mrb[116].mxu0 }
 0x362   : > { %v5734_v35 = vpop.f32.mrb[117].mxu0 }
 0x363   : > { %v8577_v27 = vadd.f32 %v5734_v35, %v5733_v28  ;;  %v5736_v63 = vpop.f32.mrb[118].mxu0 }
 0x364   : > { %v5737_v44 = vpop.f32.mrb[119].mxu0 }
 0x365   : > { %v8579_v59 = vadd.f32 %v5737_v44, %v5736_v63 }
 0x369   : > { %v5739_v40 = vpop.f32.mrb[120].mxu0 }
 0x36a   : > { %v5740_v29 = vpop.f32.mrb[121].mxu0 }
 0x36b   : > { %v8581_v34 = vadd.f32 %v5740_v29, %v5739_v40  ;;  %v5742_v61 = vpop.f32.mrb[122].mxu0 }
 0x36c   : > { %v5743_v18 = vpop.f32.mrb[123].mxu0 }
 0x36d   : > { %v8583_v46 = vadd.f32 %v5743_v18, %v5742_v61 }
 0x371   : > { %v5745_v9 = vpop.f32.mrb[124].mxu0 }
 0x372   : > { %v5746_v15 = vpop.f32.mrb[125].mxu0 }
 0x373   : > { %v8585_v14 = vadd.f32 %v5746_v15, %v5745_v9  ;;  %v5748_v38 = vpop.f32.mrb[126].mxu0 }
 0x374   : > { %v5749_v43 = vpop.f32.mrb[127].mxu0 }
 0x375   : > { %v8587_v25 = vadd.f32 %v5749_v43, %v5748_v38 }
 0x379   : > { %v5751_v13 = vpop.f32.mrb[128].mxu0 }
 0x37a   : > { %v5752_v58 = vpop.f32.mrb[129].mxu0 }
 0x37b   : > { %v8589_v8 = vadd.f32 %v5752_v58, %v5751_v13  ;;  %v5754_v22 = vpop.f32.mrb[130].mxu0 }
 0x37c   : > { %v5755_v31 = vpop.f32.mrb[131].mxu0 }
 0x37d   : > { %v8591_v48 = vadd.f32 %v5755_v31, %v5754_v22 }
 0x381   : > { %v5789_v57 = vpop.f32.mrb[132].mxu0 }
 0x382   : > { %v5790_v2 = vpop.f32.mrb[133].mxu0 }
 0x383   : > { %v5791_v52 = vadd.f32 %v5790_v2, %v5789_v57  ;;  %v5792_v1 = vpop.f32.mrb[134].mxu0 }
 0x384   : > { %v5793_v51 = vpop.f32.mrb[135].mxu0 }
 0x385   : > { %v6220_v36 = vadd.f32 %v5791_v52, %v5711_v54  ;;  %v5794_v32 = vadd.f32 %v5793_v51, %v5792_v1 }
 0x386   : > { %v5869_v20 = vpop.f32.mrb[76].mxu1 }
 0x387   : > { %v6226_v55 = vadd.f32 %v5794_v32, %v5714_v0  ;;  %v5870_v33 = vpop.f32.mrb[77].mxu1 }
 0x388   : > { %v5871_v47 = vadd.f32 %v5870_v33, %v5869_v20  ;;  %v5872_v53 = vpop.f32.mrb[78].mxu1 }
 0x389   : > { %v5795_v62 = vpop.f32.mrb[136].mxu0  ;;  %v5873_v16 = vpop.f32.mrb[79].mxu1 }
 0x38a   : > { %v5796_v39 = vpop.f32.mrb[137].mxu0  ;;  %v5874_v45 = vadd.f32 %v5873_v16, %v5872_v53  ;;  %v8593_v5 = vadd.f32 %v6220_v36, %v5871_v47 }
 0x38b   : > { %v5797_v6 = vadd.f32 %v5796_v39, %v5795_v62  ;;  %v5798_v19 = vpop.f32.mrb[138].mxu0 }
 0x38c   : > { %v5799_v30 = vpop.f32.mrb[139].mxu0  ;;  %v8595_v26 = vadd.f32 %v6226_v55, %v5874_v45 }
 0x38d   : > { %v6217_v49 = vadd.f32 %v5797_v6, %v5717_v23  ;;  %v5800_v12 = vadd.f32 %v5799_v30, %v5798_v19 }
 0x38e   : > { %v5875_v54 = vpop.f32.mrb[80].mxu1 }
 0x38f   : > { %v6223_v24 = vadd.f32 %v5800_v12, %v5720_v42  ;;  %v5876_v4 = vpop.f32.mrb[81].mxu1 }
 0x390   : > { %v5877_v0 = vadd.f32 %v5876_v4, %v5875_v54  ;;  %v5878_v17 = vpop.f32.mrb[82].mxu1 }
 0x391   : > { %v5801_v3 = vpop.f32.mrb[140].mxu0  ;;  %v5879_v50 = vpop.f32.mrb[83].mxu1 }
 0x392   : > { %v5802_v10 = vpop.f32.mrb[141].mxu0  ;;  %v5880_v21 = vadd.f32 %v5879_v50, %v5878_v17  ;;  %v8597_v28 = vadd.f32 %v6217_v49, %v5877_v0 }
 0x393   : > { %v5803_v56 = vadd.f32 %v5802_v10, %v5801_v3  ;;  %v5804_v37 = vpop.f32.mrb[142].mxu0 }
 0x394   : > { %v5805_v35 = vpop.f32.mrb[143].mxu0  ;;  %v8600_v44 = vadd.f32 %v6223_v24, %v5880_v21 }
 0x395   : > { %v6232_v63 = vadd.f32 %v5803_v56, %v8569_v11  ;;  %v5806_v23 = vadd.f32 %v5805_v35, %v5804_v37 }
 0x396   : > { %v5881_v40 = vpop.f32.mrb[84].mxu1 }
 0x397   : > { %v6238_v42 = vadd.f32 %v5806_v23, %v8571_v7  ;;  %v5882_v29 = vpop.f32.mrb[85].mxu1 }
 0x398   : > { %v5883_v61 = vadd.f32 %v5882_v29, %v5881_v40  ;;  %v5884_v18 = vpop.f32.mrb[86].mxu1 }
 0x399   : > { %v5807_v9 = vpop.f32.mrb[144].mxu0  ;;  %v5885_v15 = vpop.f32.mrb[87].mxu1 }
 0x39a   : > { %v5808_v38 = vpop.f32.mrb[145].mxu0  ;;  %v5886_v43 = vadd.f32 %v5885_v15, %v5884_v18  ;;  %v8603_v22 = vadd.f32 %v6232_v63, %v5883_v61 }
 0x39b   : > { %v5809_v13 = vadd.f32 %v5808_v38, %v5807_v9  ;;  %v5810_v58 = vpop.f32.mrb[146].mxu0 }
 0x39c   : > { %v5811_v31 = vpop.f32.mrb[147].mxu0  ;;  %v8606_v2 = vadd.f32 %v6238_v42, %v5886_v43 }
 0x39d   : > { %v6229_v11 = vadd.f32 %v5809_v13, %v8573_v41  ;;  %v5812_v57 = vadd.f32 %v5811_v31, %v5810_v58 }
 0x39e   : > { %v5887_v52 = vpop.f32.mrb[88].mxu1 }
 0x39f   : > { %v6235_v7 = vadd.f32 %v5812_v57, %v8575_v60  ;;  %v5888_v1 = vpop.f32.mrb[89].mxu1 }
 0x3a0   : > { %v5889_v51 = vadd.f32 %v5888_v1, %v5887_v52  ;;  %v5890_v36 = vpop.f32.mrb[90].mxu1 }
 0x3a1   : > { %v5813_v32 = vpop.f32.mrb[148].mxu0  ;;  %v5891_v20 = vpop.f32.mrb[91].mxu1 }
 0x3a2   : > { %v5814_v55 = vpop.f32.mrb[149].mxu0  ;;  %v5892_v33 = vadd.f32 %v5891_v20, %v5890_v36  ;;  %v8609_v62 = vadd.f32 %v6229_v11, %v5889_v51 }
 0x3a3   : > { %v5815_v47 = vadd.f32 %v5814_v55, %v5813_v32  ;;  %v5816_v53 = vpop.f32.mrb[150].mxu0 }
 0x3a4   : > { %v5817_v16 = vpop.f32.mrb[151].mxu0  ;;  %v8612_v45 = vadd.f32 %v6235_v7, %v5892_v33 }
 0x3a5   : > { %v6244_v41 = vadd.f32 %v5815_v47, %v8577_v27  ;;  %v5818_v39 = vadd.f32 %v5817_v16, %v5816_v53 }
 0x3a6   : > { %v5893_v6 = vpop.f32.mrb[92].mxu1 }
 0x3a7   : > { %v6250_v60 = vadd.f32 %v5818_v39, %v8579_v59  ;;  %v5894_v19 = vpop.f32.mrb[93].mxu1 }
 0x3a8   : > { %v5895_v30 = vadd.f32 %v5894_v19, %v5893_v6  ;;  %v5896_v49 = vpop.f32.mrb[94].mxu1 }
 0x3a9   : > { %v5819_v12 = vpop.f32.mrb[152].mxu0  ;;  %v5897_v54 = vpop.f32.mrb[95].mxu1 }
 0x3aa   : > { %v5820_v24 = vpop.f32.mrb[153].mxu0  ;;  %v5898_v4 = vadd.f32 %v5897_v54, %v5896_v49  ;;  %v8615_v3 = vadd.f32 %v6244_v41, %v5895_v30  ;;  %v8647_v54 = vld [vmem:[%s8900_s6] ss:$0 sm:$0xff] }
 0x3ab   : > { %v5821_v0 = vadd.f32 %v5820_v24, %v5819_v12  ;;  %v5822_v17 = vpop.f32.mrb[154].mxu0  ;;  %v5341_v12 = vld [vmem:[%s7099_s22 + $0x24] sm:$0xff]  }
 0x3ac   : > { %v5823_v50 = vpop.f32.mrb[155].mxu0  ;;  %v8618_v21 = vadd.f32 %v6250_v60, %v5898_v4 }
 0x3ad   : > { %v6241_v27 = vadd.f32 %v5821_v0, %v8581_v34  ;;  %v5824_v10 = vadd.f32 %v5823_v50, %v5822_v17 }
 0x3ae   : > { %v5899_v56 = vpop.f32.mrb[96].mxu1 }
 0x3af   : > { %v6247_v59 = vadd.f32 %v5824_v10, %v8583_v46  ;;  %v5900_v37 = vpop.f32.mrb[97].mxu1 }
 0x3b0   : > { %v5901_v35 = vadd.f32 %v5900_v37, %v5899_v56  ;;  %v5902_v63 = vpop.f32.mrb[98].mxu1  ;;  %v4690_v37 = vunpack.c.h.bf16 %v5341_v12 }
 0x3b1   : > { %v5825_v23 = vpop.f32.mrb[156].mxu0  ;;  %v5903_v40 = vpop.f32.mrb[99].mxu1 }
 0x3b2   : > { %v5826_v42 = vpop.f32.mrb[157].mxu0  ;;  %v5904_v29 = vadd.f32 %v5903_v40, %v5902_v63  ;;  %v8621_v9 = vadd.f32 %v6241_v27, %v5901_v35  ;;  %v4689_v27 = vunpack.c.l.bf16 %v5341_v12 }
 0x3b3   : > { %v5827_v61 = vadd.f32 %v5826_v42, %v5825_v23  ;;  %v5828_v18 = vpop.f32.mrb[158].mxu0  ;;  %v5343_v42 = vld [vmem:[%s7099_s22 + $0x2c] sm:$0x1] }
 0x3b4   : > { %v5829_v15 = vpop.f32.mrb[159].mxu0  ;;  %v8624_v43 = vadd.f32 %v6247_v59, %v5904_v29  ;;  %v4740_v29 = vrot.slane %v4689_v27, 1 }
 0x3b5   : > { %v6256_v34 = vadd.f32 %v5827_v61, %v8585_v14  ;;  %v5830_v38 = vadd.f32 %v5829_v15, %v5828_v18  ;;  %v5340_v15 = vld [vmem:[%s7099_s22 + $0x20] sm:$0x1] }
 0x3b6   : > { %v5905_v13 = vpop.f32.mrb[100].mxu1 }
 0x3b7   : > { %v6262_v46 = vadd.f32 %v5830_v38, %v8587_v25  ;;  %v5906_v58 = vpop.f32.mrb[101].mxu1  ;;  %v4741_v38 = vrot.slane %v4690_v37, 1 }
 0x3b8   : > { %v5907_v31 = vadd.f32 %v5906_v58, %v5905_v13  ;;  %v5908_v11 = vpop.f32.mrb[102].mxu1 }
 0x3b9   : > { %v5831_v57 = vpop.f32.mrb[160].mxu0  ;;  %v5909_v52 = vpop.f32.mrb[103].mxu1 }
 0x3ba   : > { %v5832_v7 = vpop.f32.mrb[161].mxu0  ;;  %v5910_v1 = vadd.f32 %v5909_v52, %v5908_v11  ;;  %v8627_v32 = vadd.f32 %v6256_v34, %v5907_v31  ;;  %v4691_v31 = vunpack.c.l.bf16 %v5343_v42 }
 0x3bb   : > { %v5833_v51 = vadd.f32 %v5832_v7, %v5831_v57  ;;  %v5834_v36 = vpop.f32.mrb[162].mxu0  ;;  %v4688_v7 = vunpack.c.l.bf16 %v5340_v15 }
 0x3bc   : > { %v5835_v20 = vpop.f32.mrb[163].mxu0  ;;  %v8630_v33 = vadd.f32 %v6262_v46, %v5910_v1 }
 0x3bd   : > { %v6253_v14 = vadd.f32 %v5833_v51, %v8589_v8  ;;  %v5836_v55 = vadd.f32 %v5835_v20, %v5834_v36  ;;  %v8640_v8 = vld [vmem:[%s8899_s5] ss:$0 sm:$0xff] }
 0x3be   : > { %v5911_v47 = vpop.f32.mrb[104].mxu1 }
 0x3bf   : > { %v6259_v25 = vadd.f32 %v5836_v55, %v8591_v48  ;;  %v5912_v53 = vpop.f32.mrb[105].mxu1 }
 0x3c0   : > { %v5913_v16 = vadd.f32 %v5912_v53, %v5911_v47  ;;  %v5914_v41 = vpop.f32.mrb[106].mxu1 }
 0x3c1   : > { %v5915_v39 = vpop.f32.mrb[107].mxu1 }
 0x3c2   : > { %v5916_v6 = vadd.f32 %v5915_v39, %v5914_v41  ;;  %v8633_v60 = vadd.f32 %v6253_v14, %v5913_v16  ;;  %v4738_v16 = vrot.slane %v4688_v7, 1 }
 0x3c4   : > { %v8635_v19 = vadd.f32 %v6259_v25, %v5916_v6  ;;  %v4743_v25 = vrot.slane %v4691_v31, 1 }
 0x3c6   : > { %v6123_v30 = vpop.f32.mrb[60].mxu1 }
 0x3c7   : > { %v6219_v49 = vadd.f32 %v8597_v28, %v6123_v30  ;;  %v4421_v48 = vpop.f32.mrb[61].mxu1  ;;  %v5407_v28 = vld [vmem:[%s7099_s22 + $0x18] sm:$0xff]  }
 0x3c8   : > { %v6222_v24 = vadd.f32 %v8593_v5, %v4421_v48  ;;  %v6124_v4 = vpop.f32.mrb[62].mxu1  ;;  %v5393_v23 = vunpack.c.l.bf16 %v5407_v28  ;;  %v5394_v61 = vunpack.c.h.bf16 %v5407_v28 }
 0x3c9   : > { %v4509_v0 = vmul.f32 %v6219_v49, %v8640_v8  ;;  %v6225_v17 = vadd.f32 %v8600_v44, %v6124_v4  ;;  %v4424_v50 = vpop.f32.mrb[63].mxu1 }
 0x3ca   : > { %v4507_v10 = vmul.f32 %v6222_v24, %v8640_v8  ;;  %v6228_v56 = vadd.f32 %v8595_v26, %v4424_v50  ;;  %v4735_v14 = vrot.slane %v5393_v23, 1  ;;  %v4736_v55 = vrot.slane %v5394_v61, 1 }
 0x3cb   : > { %v8656_v59 = vadd.f32 %v8647_v54, %v4509_v0  ;;  %v4510_v5 = vmul.f32 %v6225_v17, %v8640_v8  ;;  %v8706_v0 = vsel %vm4734_vm15, %v4741_v38, %v4743_v25  ;;  %v8709_v17 = vld [vmem:[%s7099_s22 + $0x3c] sm:$0xff]  }
 0x3cc   : > { %v8660_v35 = vadd.f32 %v8647_v54, %v4507_v10  ;;  %v4508_v63 = vmul.f32 %v6228_v56, %v8640_v8  ;;  %v8701_v12 = vsel %vm4734_vm15, %v4735_v14, %v4736_v55  ;;  %v8714_v56 = vsel %vm4734_vm15, %v4736_v55, %v4738_v16 }
 0x3cd   : > { %v5322_v44 = vmul.f32 -1.442695, %v8656_v59  ;;  %v8665_v40 = vadd.f32 %v8647_v54, %v4510_v5 }
 0x3ce   : > { %v5320_v26 = vmul.f32 -1.442695, %v8660_v35  ;;  %v8670_v18 = vadd.f32 %v8647_v54, %v4508_v63  ;;  %v6127_v34 = vpop.f32.mrb[64].mxu1 }
 0x3cf   : > { %6652 = vpow2.f32 %v5322_v44  ;;  %v5323_v13 = vmul.f32 -1.442695, %v8665_v40  ;;  %v6231_v46 = vadd.f32 %v8609_v62, %v6127_v34  ;;  %v4437_v58 = vpop.f32.mrb[65].mxu1 }
 0x3d0   : > { %6654 = vpow2.f32 %v5320_v26  ;;  %v5321_v11 = vmul.f32 -1.442695, %v8670_v18  ;;  %v6234_v57 = vadd.f32 %v8603_v22, %v4437_v58  ;;  %v6128_v52 = vpop.f32.mrb[66].mxu1  ;;  %v4695_v26 = vunpack.c.l.bf16 %v8709_v17 }
 0x3d1   : > { %6656 = vpow2.f32 %v5323_v13  ;;  %v4513_v1 = vmul.f32 %v6231_v46, %v8640_v8  ;;  %v6237_v51 = vadd.f32 %v8612_v45, %v6128_v52  ;;  %v4440_v36 = vpop.f32.mrb[67].mxu1 }
 0x3d2   : > { %6658 = vpow2.f32 %v5321_v11  ;;  %v4511_v20 = vmul.f32 %v6234_v57, %v8640_v8  ;;  %v6240_v62 = vadd.f32 %v8606_v2, %v4440_v36  ;;  %v8694_v2 = vsel %vm4734_vm15, %v4740_v29, %v4741_v38  ;;  %v8726_v38 = vld [vmem:[%s7099_s22 + $0x30] sm:$0xff]  }
 0x3d3   : > { %v8682_v47 = vadd.f32 %v8647_v54, %v4513_v1  ;;  %v4514_v22 = vmul.f32 %v6237_v51, %v8640_v8  ;;  %v4696_v11 = vunpack.c.h.bf16 %v8709_v17  ;;  %v5397_v1 = vunpack.c.l.bf16 %v8726_v38 }
 0x3d4   : > { %v8686_v53 = vadd.f32 %v8647_v54, %v4511_v20  ;;  %v4512_v45 = vmul.f32 %v6240_v62, %v8640_v8  ;;  %v5398_v62 = vunpack.c.h.bf16 %v8726_v38 }
 0x3d5   : > { %v5326_v41 = vmul.f32 -1.442695, %v8682_v47  ;;  %v8691_v39 = vadd.f32 %v8647_v54, %v4514_v22 }
 0x3d6   : > { %v5324_v6 = vmul.f32 -1.442695, %v8686_v53  ;;  %v8698_v30 = vadd.f32 %v8647_v54, %v4512_v45  ;;  %v6131_v49 = vpop.f32.mrb[68].mxu1  ;;  %v8747_v45 = vrot.slane %v4695_v26, 1 }
 0x3d7   : > { %6660 = vpow2.f32 %v5326_v41  ;;  %v5327_v48 = vmul.f32 -1.442695, %v8691_v39  ;;  %v6243_v24 = vadd.f32 %v8621_v9, %v6131_v49  ;;  %v4453_v4 = vpop.f32.mrb[69].mxu1 }
 0x3d8   : > { %6662 = vpow2.f32 %v5324_v6  ;;  %v5325_v50 = vmul.f32 -1.442695, %v8698_v30  ;;  %v6246_v27 = vadd.f32 %v8615_v3, %v4453_v4  ;;  %v6132_v10 = vpop.f32.mrb[70].mxu1 }
 0x3d9   : > { %v6653_v28 = vpop.eup %6652  ;;  %6664 = vpow2.f32 %v5327_v48  ;;  %v4517_v37 = vmul.f32 %v6243_v24, %v8640_v8  ;;  %v6249_v9 = vadd.f32 %v8624_v43, %v6132_v10  ;;  %v4456_v5 = vpop.f32.mrb[71].mxu1  ;;  %v5349_v10 = vld [vmem:[%s7099_s22 + $0x44] sm:$0x1] }
 0x3da   : > { %v6655_v63 = vpop.eup %6654  ;;  %v4596_v44 = vadd.f32 1.0, %v6653_v28  ;;  %6666 = vpow2.f32 %v5325_v50  ;;  %v4515_v23 = vmul.f32 %v6246_v27, %v8640_v8  ;;  %v6252_v42 = vadd.f32 %v8618_v21, %v4456_v5 }
 0x3db   : > { %v6657_v3 = vpop.eup %6656  ;;  %v4594_v29 = vadd.f32 1.0, %v6655_v63  ;;  %v8722_v61 = vadd.f32 %v8647_v54, %v4517_v37  ;;  %v4518_v15 = vmul.f32 %v6249_v9, %v8640_v8 }
 0x3dc   : > { %v6659_v34 = vpop.eup %6658  ;;  %6668 = vrcp.f32 %v4596_v44  ;;  %v4597_v43 = vadd.f32 1.0, %v6657_v3  ;;  %v8729_v13 = vadd.f32 %v8647_v54, %v4515_v23  ;;  %v4516_v46 = vmul.f32 %v6252_v42, %v8640_v8 }
 0x3dd   : > { %6670 = vrcp.f32 %v4594_v29  ;;  %v4595_v21 = vadd.f32 1.0, %v6659_v34  ;;  %v5330_v58 = vmul.f32 -1.442695, %v8722_v61  ;;  %v8734_v31 = vadd.f32 %v8647_v54, %v4518_v15 }
 0x3de   : > { %6672 = vrcp.f32 %v4597_v43  ;;  %v5328_v57 = vmul.f32 -1.442695, %v8729_v13  ;;  %v8739_v52 = vadd.f32 %v8647_v54, %v4516_v46  ;;  %v6135_v7 = vpop.f32.mrb[72].mxu1  ;;  %v4751_v23 = vrot.slane %v4696_v11, 1 }
 0x3df   : > { %6674 = vrcp.f32 %v4595_v21  ;;  %v5331_v51 = vmul.f32 -1.442695, %v8734_v31  ;;  %v6255_v36 = vadd.f32 %v8633_v60, %v6135_v7  ;;  %v4469_v20 = vpop.f32.mrb[73].mxu1 }
 0x3e0   : > { %6676 = vpow2.f32 %v5330_v58  ;;  %v5329_v14 = vmul.f32 -1.442695, %v8739_v52  ;;  %v6258_v55 = vadd.f32 %v8627_v32, %v4469_v20  ;;  %v6136_v22 = vpop.f32.mrb[74].mxu1 }
 0x3e1   : > { %v6661_v25 = vpop.eup %6660  ;;  %6678 = vpow2.f32 %v5328_v57  ;;  %v4521_v16 = vmul.f32 %v6255_v36, %v8640_v8  ;;  %v6261_v41 = vadd.f32 %v8635_v19, %v6136_v22  ;;  %v4472_v6 = vpop.f32.mrb[75].mxu1  ;;  %v4752_v22 = vsel %vm4734_vm15, %v8747_v45, %v4751_v23 }
 0x3e2   : > { %v6663_v60 = vpop.eup %6662  ;;  %v4600_v49 = vadd.f32 1.0, %v6661_v25  ;;  %6680 = vpow2.f32 %v5331_v51  ;;  %v4519_v48 = vmul.f32 %v6258_v55, %v8640_v8  ;;  %v6264_v24 = vadd.f32 %v8630_v33, %v4472_v6  ;;  %v5346_v33 = vld [vmem:[%s7099_s22 + $0x38] sm:$0x1] }
 0x3e3   : > { %v6665_v32 = vpop.eup %6664  ;;  %v4598_v4 = vadd.f32 1.0, %v6663_v60  ;;  %6682 = vpow2.f32 %v5329_v14  ;;  %v8754_v17 = vadd.f32 %v8647_v54, %v4521_v16  ;;  %v4522_v50 = vmul.f32 %v6261_v41, %v8640_v8  ;;  %v5353_v51 = vld [vmem:[%s7099_s22 + $0x54] sm:$0xff]  }
 0x3e4   : > { %v6667_v27 = vpop.eup %6666  ;;  %6684 = vrcp.f32 %v4600_v49  ;;  %v4601_v19 = vadd.f32 1.0, %v6665_v32  ;;  %v8759_v28 = vadd.f32 %v8647_v54, %v4519_v48  ;;  %v4520_v37 = vmul.f32 %v6264_v24, %v8640_v8 }
 0x3e5   : > { %6686 = vrcp.f32 %v4598_v4  ;;  %v4599_v9 = vadd.f32 1.0, %v6667_v27  ;;  %v5334_v5 = vmul.f32 -1.442695, %v8754_v17  ;;  %v8765_v63 = vadd.f32 %v8647_v54, %v4522_v50  ;;  %v5352_v4 = vld [vmem:[%s7099_s22 + $0x50] sm:$0x1] }
 0x3e6   : > { %v6669_v44 = vpop.eup %6668  ;;  %6688 = vrcp.f32 %v4601_v19  ;;  %v5332_v42 = vmul.f32 -1.442695, %v8759_v28  ;;  %v8769_v3 = vadd.f32 %v8647_v54, %v4520_v37  ;;  %v4697_v8 = vunpack.c.l.bf16 %v5349_v10 }
 0x3e7   : > { %v6671_v29 = vpop.eup %6670  ;;  %v4644_v26 = vmul.f32 %v6669_v44, %v8656_v59  ;;  %6690 = vrcp.f32 %v4599_v9  ;;  %v5335_v15 = vmul.f32 -1.442695, %v8765_v63  ;;  %v4694_v38 = vunpack.c.l.bf16 %v5346_v33 }
 0x3e8   : > { %v6673_v34 = vpop.eup %6672  ;;  %v4642_v43 = vmul.f32 %v6671_v29, %v8660_v35  ;;  %6692 = vpow2.f32 %v5334_v5  ;;  %v5333_v46 = vmul.f32 -1.442695, %v8769_v3  ;;  %v4745_v59 = vrot.slane %v5397_v1, 1 }
 0x3e9   : > { %v6675_v21 = vpop.eup %6674  ;;  %v4793_v54 = vadd.f32 %v8694_v2, %v4644_v26  ;;  %v4645_v58 = vmul.f32 %v6673_v34, %v8665_v40  ;;  %6694 = vpow2.f32 %v5332_v42  ;;  %v4746_v35 = vrot.slane %v5398_v62, 1 }
 0x3ea   : > { %v6677_v11 = vpop.eup %6676  ;;  %v4791_v57 = vadd.f32 %v8701_v12, %v4642_v43  ;;  %v4643_v7 = vmul.f32 %v6675_v21, %v8670_v18  ;;  %6696 = vpow2.f32 %v5335_v15  ;;  %v4753_v12 = vrot.slane %v4697_v8, 1  ;;  %v5409_v18 = vld [vmem:[%s7099_s22 + $0x48] sm:$0xff]  }
 0x3eb   : > { %v6679_v36 = vpop.eup %6678  ;;  %4809 = vst [vmem:[%s8168_s11 + $0x10] sm:$0xff] %v4793_v54  ;;  %v4794_v20 = vadd.f32 %v8706_v0, %v4645_v58  ;;  %v4604_v2 = vadd.f32 1.0, %v6677_v11  ;;  %6698 = vpow2.f32 %v5333_v46  ;;  %v4748_v14 = vrot.slane %v4694_v38, 1  ;;  %v5359_v38 = vld [vmem:[%s7099_s22 + $0x6c] sm:$0xff]   ;;  %v5410_v54 = vld [vmem:[%s7099_s22 + $0x60] sm:$0xff]  }
 0x3ec   : > { %v6681_v40 = vpop.eup %6680  ;;  %4807 = vst [vmem:[%s8168_s11] sm:$0xff] %v4791_v57  ;;  %v4792_v1 = vadd.f32 %v8714_v56, %v4643_v7  ;;  %v4602_v55 = vadd.f32 1.0, %v6679_v36  ;;  %v4701_v0 = vunpack.c.l.bf16 %v5353_v51  ;;  %v4747_v41 = vsel %vm4734_vm15, %v4745_v59, %v4746_v35  ;;  %v5355_v56 = vld [vmem:[%s7099_s22 + $0x5c] sm:$0x1]  ;;  %v5361_v57 = vld [vmem:[%s7099_s22 + $0x74] sm:$0x1] }
 0x3ed   : > { %v6683_v62 = vpop.eup %6682  ;;  %4810 = vst [vmem:[%s8168_s11 + $0x18] sm:$0xff] %v4794_v20  ;;  %6700 = vrcp.f32 %v4604_v2  ;;  %v4605_v25 = vadd.f32 1.0, %v6681_v40  ;;  %v4702_v6 = vunpack.c.h.bf16 %v5353_v51  ;;  %v5401_v24 = vunpack.c.l.bf16 %v5409_v18  ;;  %v5358_v2 = vld [vmem:[%s7099_s22 + $0x68] sm:$0x1]  ;;  %s5390_s22 = sshll.u32 %s6826_s27, 4 }
 0x3ee   : > { %v6685_v16 = vpop.eup %6684  ;;  %4808 = vst [vmem:[%s8168_s11 + $0x8] sm:$0xff] %v4792_v1  ;;  %6702 = vrcp.f32 %v4602_v55  ;;  %v4603_v60 = vadd.f32 1.0, %v6683_v62  ;;  %v5402_v32 = vunpack.c.h.bf16 %v5409_v18  ;;  %v4754_v27 = vsel %vm4734_vm15, %v4751_v23, %v4753_v12  ;;  %s4837_s13 = sadd.s32 %s5390_s22, %s5365_s10 }
 0x3ef   : > { %v6687_v49 = vpop.eup %6686  ;;  %v4648_v48 = vmul.f32 %v6685_v16, %v8682_v47  ;;  %6704 = vrcp.f32 %v4605_v25  ;;  %v4749_v19 = vsel %vm4734_vm15, %v4746_v35, %v4748_v14  ;;  %v4760_v33 = vrot.slane %v4701_v0, 1  ;;  %s5366_s27 = sshll.u32 %s4837_s13, 7 }
 0x3f0   : > { %v6689_v45 = vpop.eup %6688  ;;  %v4646_v50 = vmul.f32 %v6687_v49, %v8686_v53  ;;  %6706 = vrcp.f32 %v4603_v60  ;;  %v4703_v47 = vunpack.c.l.bf16 %v5355_v56  ;;  %v4761_v29 = vrot.slane %v4702_v6, 1  ;;  %s8833_s12 = scalar_lea.hbm %s8901_s7, %s5366_s27 }
 0x3f1   : > { %v6691_v10 = vpop.eup %6690  ;;  %v4797_v37 = vadd.f32 %v4752_v22, %v4648_v48  ;;  %v4649_v9 = vmul.f32 %v6689_v45, %v8691_v39  ;;  %v4700_v53 = vunpack.c.l.bf16 %v5352_v4  ;;  %v4755_v8 = vrot.slane %v5401_v24, 1 }
 0x3f2   : > { %v6693_v5 = vpop.eup %6692  ;;  %v4795_v44 = vadd.f32 %v4747_v41, %v4646_v50  ;;  %v4647_v42 = vmul.f32 %v6691_v10, %v8698_v30  ;;  %v4756_v15 = vrot.slane %v5402_v32, 1  ;;  %v4763_v30 = vrot.slane %v4703_v47, 1 }
 0x3f3   : > { %v6695_v23 = vpop.eup %6694  ;;  %4813 = vst [vmem:[%s8168_s11 + $0x30] sm:$0xff] %v4797_v37  ;;  %v4798_v26 = vadd.f32 %v4754_v27, %v4649_v9  ;;  %v4608_v34 = vadd.f32 1.0, %v6693_v5  ;;  %v4762_v59 = vsel %vm4734_vm15, %v4760_v33, %v4761_v29  ;;  %v4758_v11 = vrot.slane %v4700_v53, 1 }
 0x3f4   : > { %v6697_v39 = vpop.eup %6696  ;;  %4811 = vst [vmem:[%s8168_s11 + $0x20] sm:$0xff] %v4795_v44  ;;  %v4796_v43 = vadd.f32 %v4749_v19, %v4647_v42  ;;  %v4606_v46 = vadd.f32 1.0, %v6695_v23  ;;  %v4757_v51 = vsel %vm4734_vm15, %v4755_v8, %v4756_v15  ;;  %v4707_v36 = vunpack.c.l.bf16 %v5359_v38 }
 0x3f5   : > { %v6699_v21 = vpop.eup %6698  ;;  %4814 = vst [vmem:[%s8168_s11 + $0x38] sm:$0xff] %v4798_v26  ;;  %6708 = vrcp.f32 %v4608_v34  ;;  %v4609_v58 = vadd.f32 1.0, %v6697_v39  ;;  %v4708_v20 = vunpack.c.h.bf16 %v5359_v38  ;;  %v5405_v12 = vunpack.c.l.bf16 %v5410_v54 }
 0x3f6   : > { %4812 = vst [vmem:[%s8168_s11 + $0x28] sm:$0xff] %v4796_v43  ;;  %6710 = vrcp.f32 %v4606_v46  ;;  %v4607_v7 = vadd.f32 1.0, %v6699_v21  ;;  %v5406_v14 = vunpack.c.h.bf16 %v5410_v54  ;;  %v4764_v62 = vsel %vm4734_vm15, %v4761_v29, %v4763_v30 }
 0x3f7   : > { %v6701_v35 = vpop.eup %6700  ;;  %6712 = vrcp.f32 %v4609_v58  ;;  %v4709_v22 = vunpack.c.l.bf16 %v5361_v57  ;;  %v4706_v41 = vunpack.c.l.bf16 %v5358_v2  ;;  %v4770_v60 = vrot.slane %v4707_v36, 1 }
 0x3f8   : > { %v6703_v40 = vpop.eup %6702  ;;  %v4652_v1 = vmul.f32 %v6701_v35, %v8722_v61  ;;  %6714 = vrcp.f32 %v4607_v7  ;;  %v4759_v61 = vsel %vm4734_vm15, %v4756_v15, %v4758_v11  ;;  %v4771_v49 = vrot.slane %v4708_v20, 1 }
 0x3f9   : > { %v6705_v55 = vpop.eup %6704  ;;  %v4650_v18 = vmul.f32 %v6703_v40, %v8729_v13  ;;  %v4765_v48 = vrot.slane %v5405_v12, 1  ;;  %v4766_v24 = vrot.slane %v5406_v14, 1  ;;  %v4768_v4 = vrot.slane %v4706_v41, 1 }
 0x3fa   : > { %v6707_v0 = vpop.eup %6706  ;;  %v4801_v25 = vadd.f32 %v4762_v59, %v4652_v1  ;;  %v4653_v16 = vmul.f32 %v6705_v55, %v8734_v31  ;;  %v4773_v31 = vrot.slane %v4709_v22, 1 }
 0x3fb   : > { %v4799_v6 = vadd.f32 %v4757_v51, %v4650_v18  ;;  %v4651_v56 = vmul.f32 %v6707_v0, %v8739_v52  ;;  %v4772_v52 = vsel %vm4734_vm15, %v4770_v60, %v4771_v49  ;;  %v4767_v19 = vsel %vm4734_vm15, %v4765_v48, %v4766_v24 }
 0x3fc   : > { %4817 = vst [vmem:[%s8168_s11 + $0x50] sm:$0xff] %v4801_v25  ;;  %v4802_v13 = vadd.f32 %v4764_v62, %v4653_v16  ;;  %v4774_v9 = vsel %vm4734_vm15, %v4771_v49, %v4773_v31 }
 0x3fd   : > { %4815 = vst [vmem:[%s8168_s11 + $0x40] sm:$0xff] %v4799_v6  ;;  %v4800_v32 = vadd.f32 %v4759_v61, %v4651_v56 }
 0x3fe   : > { %4818 = vst [vmem:[%s8168_s11 + $0x58] sm:$0xff] %v4802_v13 }
 0x3ff   : > { %v6709_v45 = vpop.eup %6708  ;;  %4816 = vst [vmem:[%s8168_s11 + $0x48] sm:$0xff] %v4800_v32 }
 0x400   : > { %v6711_v50 = vpop.eup %6710  ;;  %v4656_v27 = vmul.f32 %v6709_v45, %v8754_v17  ;;  %v4769_v17 = vsel %vm4734_vm15, %v4766_v24, %v4768_v4 }
 0x401   : > { %v6713_v10 = vpop.eup %6712  ;;  %v4654_v37 = vmul.f32 %v6711_v50, %v8759_v28 }
 0x402   : > { %v6715_v33 = vpop.eup %6714  ;;  %v4805_v47 = vadd.f32 %v4772_v52, %v4656_v27  ;;  %v4657_v5 = vmul.f32 %v6713_v10, %v8765_v63 }
 0x403   : > { %v4803_v44 = vadd.f32 %v4767_v19, %v4654_v37  ;;  %v4655_v42 = vmul.f32 %v6715_v33, %v8769_v3 }
 0x404   : > { %4821 = vst [vmem:[%s8168_s11 + $0x70] sm:$0xff] %v4805_v47  ;;  %v4806_v29 = vadd.f32 %v4774_v9, %v4657_v5 }
 0x405   : > { %4819 = vst [vmem:[%s8168_s11 + $0x60] sm:$0xff] %v4803_v44  ;;  %v4804_v28 = vadd.f32 %v4769_v17, %v4655_v42 }
 0x406   : > { %4822 = vst [vmem:[%s8168_s11 + $0x78] sm:$0xff] %v4806_v29 }
 0x407   : > { %4820 = vst [vmem:[%s8168_s11 + $0x68] sm:$0xff] %v4804_v28 }
 0x408   : > { %6757 = shalt.err (!%p6754_p11)
}
 0x409   : > { %s6758_s11 = scalar_lea.hbm %s8833_s12, 2048  ;;  %s6762_s10 = scalar_lea.hbm %s8901_s7, 8192 }
 0x40a   : > { %p6759_p13 = scmp.ne.s32.totalorder %s8833_s12, %s6758_s11  ;;  %p6763_p3 = scmp.lt.u32.totalorder %s8833_s12, %s8901_s7 }
 0x40b   : > { %p6764_p8 = scmp.lt.u32.totalorder %s6762_s10, %s6758_s11  ;;  %p6766_p12 = scmp.lt.u32.totalorder %s6758_s11, %s8833_s12 }
 0x40c   : > { %p6760_p1 = pnand %p6759_p13, %p8935_p0 }
 0x40d   : > { %p6765_p10 = por %p6764_p8, %p6763_p3 }
 0x40e   : > { %p6761_p4 = pneg %p6760_p1 }
 0x40f   : > { %p6767_p2 = por %p6766_p12, %p6765_p10 }
 0x411   : > { %p6768_p5 = pnand %p6767_p2, %p6761_p4 }
 0x413   : > { %6771 = shalt.err (!%p6768_p5)
}
 0x414   : > { %s6850_s4 = smov 128   ;;  %s6851_s30 = smov 8  }
 0x415   : > { %6322 = dma.vmem_to_hbm [thread:$0]  (%p8935_p0), %s8835_s28, 2048, %s8833_s12, %s8842_s23, %s6850_s4, %s6850_s4, %s6851_s30  }
 0x416 PF: > { %p6334_p6 = scmp.ge.s32.totalorder %s6842_s8, 2  ;;  %s4855_s19 = sand.u32 1, %s6814_s24  }
 0x417   : > { %p8936_p7 = scmp.ne.s32.totalorder %s8915_s16, 0  ;;  %s4856_s20 = scalar_lea.sflag [#allocation5], %s4855_s19 }
 0x419   : > { %p6329_p9 = pnand %p6334_p6, %p8936_p7 }
 0x41b   : > { %6809 = dma.done.wait (!%p6329_p9), %s4856_s20, 2048  }
 0x41c   : > { %6811 = vsyncadd (!%p6329_p9), %s4856_s20, 4294965248  ;;  %s21_s8 = sadd.s32 1, %s6842_s8   ;;  %s8937_s28 = sld [smem:[#allocation9_spill]] }
 0x41d   : > { %p18_p11 = scmp.ge.s32.totalorder %s21_s8, 6   ;;  %s8938_s15 = sld [smem:[#allocation10_spill]] }
 0x41e   : > { %s8939_s30 = sld [smem:[#allocation11_spill]]  ;;  %s8940_s24 = smov %s6818_s25 }
 0x41f   : > { %s8941_s25 = smov %s6822_s26  ;;  %s8942_s26 = smov %s6971_s21 }
 0x420   : > { %s8943_s27 = smov %s6834_s29  ;;  %20 = sbr.rel (!%p18_p11) target bundleno = 8 (0x8), region = 103 }
 0x423   : > { %s8944_s29 = smov %s8938_s15 }
 0x427   :  { %4861 = vsyncpa [#allocation4], 1 }
 0x428   :  { %4863 = vsyncpa [#allocation4 + $0x1], 1 }
 0x429   :  { %4864 = vsyncpa [#allocation5], 1 }
 0x42a   :  { %4866 = vsyncpa [#allocation5 + $0x1], 1 }

</bundles_post_ra>
